<compile_context>
chip_gen: v5e
topology: v5e:2x2
jax: 0.10.0
libtpu: 0.0.40
codegen_flags: <defaults>
</compile_context>

<pallas_src>
import functools

import jax
import jax.numpy as jnp
from jax.experimental import pallas as pl
from jax.experimental.pallas import tpu as pltpu


def deepfm_kernel(idx_ref, table_ref, b1_ref, w2_ref, b2_ref, w3row_ref,
                  bias_ref, out_ref, *, embed_dim, hidden1):
    """Fused gather + FM second order + deep MLP for one batch tile."""
    tb, num_fields = idx_ref.shape
    k_stack = table_ref.shape[0]

    # ---- fused gather: build multi-hot rows on the VPU, one MXU matmul does the rest ----
    idx = idx_ref[...]                                              # (TB, F) int32 (stacked)
    col = jax.lax.broadcasted_iota(jnp.int32, (tb, k_stack), 1)     # lane iota over F*V
    hit = idx[:, 0:1] == col
    for f in range(1, num_fields):                                  # F is small & static
        hit = jnp.logical_or(hit, idx[:, f:f + 1] == col)
    multihot = jnp.where(hit, 1.0, 0.0).astype(jnp.bfloat16)        # exact 0/1

    # fused cols: [0:D]=sum_f emb, [D:D+h1]=emb@w1 pre-act, [D+h1]=lin - 0.5*sum_sq
    fused = jnp.dot(multihot, table_ref[...],
                    preferred_element_type=jnp.float32)             # (TB, D+h1+1) f32

    sum_vec = fused[:, :embed_dim]                                  # (TB, D)

    # ---- deep MLP (first layer matmul already folded into `fused`) ----
    h = jnp.maximum(fused[:, embed_dim:embed_dim + hidden1] + b1_ref[...], 0.0)
    h = jnp.dot(h.astype(jnp.bfloat16), w2_ref[...],
                preferred_element_type=jnp.float32) + b2_ref[...]
    h = jnp.maximum(h, 0.0)                                         # (TB, h2)

    # ---- single cross-lane reduction; scalar column + bias added as (TB,1) columns ----
    contrib = jnp.concatenate([0.5 * sum_vec * sum_vec, h * w3row_ref[...]], axis=-1)
    res = (jnp.sum(contrib, axis=-1, keepdims=True)
           + fused[:, embed_dim + hidden1:embed_dim + hidden1 + 1]
           + bias_ref[0])                                           # (TB, 1)
    out_ref[0, :] = res[:, 0]                                       # one column->row relayout


def init_params(key, field_dims, embed_dim, mlp_dims):
    total = int(sum(field_dims))
    in_dim = embed_dim * len(field_dims)
    keys = jax.random.split(key, 8)
    params = {
        "offsets": jnp.array(
            [0] + list(jnp.cumsum(jnp.array(field_dims))[:-1]), jnp.int32),
        "linear_w": jax.random.normal(keys[0], (total, 1), jnp.float32) * 0.01,
        "linear_bias": jnp.zeros((1,), jnp.float32),
        "emb_w": jax.random.normal(keys[1], (total, embed_dim), jnp.float32) * 0.01,
        "w1": jax.random.normal(keys[2], (in_dim, mlp_dims[0]), jnp.float32) * 0.1,
        "b1": jax.random.normal(keys[3], (1, mlp_dims[0]), jnp.float32) * 0.1,
        "w2": jax.random.normal(keys[4], (mlp_dims[0], mlp_dims[1]), jnp.float32) * 0.1,
        "b2": jax.random.normal(keys[5], (1, mlp_dims[1]), jnp.float32) * 0.1,
        "w3": jax.random.normal(keys[6], (mlp_dims[1], 1), jnp.float32) * 0.1,
        "b3": jax.random.normal(keys[7], (1, 1), jnp.float32) * 0.1,
    }
    return params


def deepfm_forward(x, params, field_dims, embed_dim, mlp_dims, *, block_b=256):
    num_fields = len(field_dims)
    total = int(sum(field_dims))
    d = embed_dim
    h1, h2 = mlp_dims
    batch = x.shape[0]
    k_stack = num_fields * total          # stacked table rows (field-major)
    n_cols = d + h1 + 1                   # [emb | emb@w1_f | lin - 0.5*sumsq]

    tb = block_b
    assert tb % 128 == 0, "block_b must be a multiple of 128 (lane-dense tiles)"
    pb = pl.cdiv(batch, tb) * tb

    emb_w = params["emb_w"]                             # (V, D) f32
    linear_w = params["linear_w"][:, 0]                 # (V,)
    w1 = params["w1"]                                   # (F*D, h1)

    # ---- fused gather table: all linear-before-ReLU math precomputed in f32, stored bf16 ----
    w1_blocks = w1.reshape(num_fields, d, h1)
    fused_w1 = jnp.einsum("vd,fdh->fvh", emb_w, w1_blocks)             # (F, V, h1)
    emb_rep = jnp.broadcast_to(emb_w[None], (num_fields, total, d))    # (F, V, D)
    scalar_col = linear_w - 0.5 * jnp.sum(emb_w * emb_w, axis=-1)      # (V,)
    scalar_rep = jnp.broadcast_to(scalar_col[None, :, None], (num_fields, total, 1))
    table = jnp.concatenate([emb_rep, fused_w1, scalar_rep], axis=-1)
    table = table.reshape(k_stack, n_cols).astype(jnp.bfloat16)        # (F*V, D+h1+1)

    # ---- stacked per-sample indices: the only per-sample HBM stream ----
    field_base = jnp.arange(num_fields, dtype=jnp.int32) * total
    idx = x.astype(jnp.int32) + params["offsets"][None, :] + field_base[None, :]
    idx = jnp.pad(idx, ((0, pb - batch), (0, 0)))       # padded rows produce garbage, sliced off

    b1 = params["b1"]
    w2 = params["w2"].astype(jnp.bfloat16)              # bf16 MXU feed (v5e fast path)
    b2 = params["b2"]
    w3row = params["w3"].T                              # (1, h2): final Linear(1) as a row
    bias = (params["linear_bias"][0] + params["b3"][0, 0]).reshape(1)  # f32 scalar -> SMEM

    grid = (pb // tb,)

    flops = 2 * pb * (k_stack * n_cols + h1 * h2) + 6 * pb * (d + h2)
    bytes_accessed = (idx.size * 4 + pb * 4 + table.size * 2 + w2.size * 2
                      + (b1.size + b2.size + w3row.size + 1) * 4)
    cost = pl.CostEstimate(flops=flops, transcendentals=0, bytes_accessed=bytes_accessed)

    # per-tile working set: double-buffered idx/out blocks, resident table/weights, transients
    est_bytes = (2 * tb * num_fields * 4 + 2 * tb * 4
                 + k_stack * n_cols * 2
                 + tb * k_stack * (2 + 4 + 4)            # multihot bf16 + f32 temp + lane iota
                 + tb * (n_cols + h1 + 2 * h2 + 2 * d) * 4
                 + w2.size * 2 + (b1.size + b2.size + w3row.size) * 4
                 + 64 * 1024)
    vmem_limit = int(min(112 * 2 ** 20, max(4 * 2 ** 20, 2 * est_bytes)))

    out = pl.pallas_call(
        functools.partial(deepfm_kernel, embed_dim=d, hidden1=h1),
        out_shape=jax.ShapeDtypeStruct((1, pb), jnp.float32),
        grid=grid,
        in_specs=[
            pl.BlockSpec((tb, num_fields), lambda i: (i, 0)),      # index tile (pipelined)
            pl.BlockSpec((k_stack, n_cols), lambda i: (0, 0)),     # fused table (resident)
            pl.BlockSpec((1, h1), lambda i: (0, 0)),               # b1
            pl.BlockSpec((h1, h2), lambda i: (0, 0)),              # w2 (bf16)
            pl.BlockSpec((1, h2), lambda i: (0, 0)),               # b2
            pl.BlockSpec((1, h2), lambda i: (0, 0)),               # w3 as a row
            pl.BlockSpec(memory_space=pltpu.MemorySpace.SMEM),     # linear_bias + b3 scalar
        ],
        out_specs=pl.BlockSpec((1, tb), lambda i: (0, i)),         # lane-dense output row
        compiler_params=pltpu.CompilerParams(
            dimension_semantics=("parallel",),     # shards batch tiles across TCs on v7x
            vmem_limit_bytes=vmem_limit),
        cost_estimate=cost,
    )(idx, table, b1, w2, b2, w3row, bias)

    return out[0, :batch]                                          # (B,)


def deepfm_reference(x, params, field_dims, embed_dim, mlp_dims):
    """Pure-JAX f32 reference mirroring the PyTorch forward (eval mode)."""
    idx = x + params["offsets"][None, :]
    first = jnp.sum(params["linear_w"][idx], axis=1) + params["linear_bias"]   # (B,1)
    emb = params["emb_w"][idx]                                                 # (B,F,D)
    sum_vec = jnp.sum(emb, axis=1)
    sum_sq = jnp.sum(emb * emb, axis=1)
    second = 0.5 * jnp.sum(sum_vec ** 2 - sum_sq, axis=-1)                     # (B,)
    e = emb.reshape(emb.shape[0], -1)
    h = jnp.maximum(e @ params["w1"] + params["b1"], 0.0)
    h = jnp.maximum(h @ params["w2"] + params["b2"], 0.0)
    deep = (h @ params["w3"] + params["b3"])[:, 0]                             # (B,)
    return first[:, 0] + second + deep


if __name__ == "__main__":
    # small, DeepFM-consistent shapes; batch chosen so the grid has 8 tiles at block_b=256
    field_dims = [8, 12, 16, 20]     # 4 categorical fields
    embed_dim = 16
    mlp_dims = [32, 16]
    batch = 2048

    key = jax.random.PRNGKey(0)
    k_param, k_x = jax.random.split(key)
    params = init_params(k_param, field_dims, embed_dim, mlp_dims)

    # integer field indices, one column per field
    cols = []
    for i, fd in enumerate(field_dims):
        cols.append(jax.random.randint(jax.random.fold_in(k_x, i),
                                       (batch, 1), 0, fd, jnp.int32))
    x = jnp.concatenate(cols, axis=1)                                 # (B, F) int32

    out = deepfm_forward(x, params, field_dims, embed_dim, mlp_dims, block_b=256)
    out = jax.block_until_ready(out)

    ref = deepfm_reference(x, params, field_dims, embed_dim, mlp_dims)
    assert out.shape == (batch,)
    # fused table / w2 are fed to the MXU in bf16 (f32 accumulation) -> bf16-level tolerance
    assert jnp.allclose(out, ref, atol=5e-3, rtol=5e-3), \
        float(jnp.max(jnp.abs(out - ref)))

    print("KERNEL_OK")
</pallas_src>

<mosaic_0001>
module attributes {stable_mosaic.version = 11 : i64} {
  func.func @deepfm_kernel(%arg0: i32, %arg1: memref<256x4xi32, #tpu.memory_space<vmem>>, %arg2: memref<224x49xbf16, #tpu.memory_space<vmem>>, %arg3: memref<1x32xf32, #tpu.memory_space<vmem>>, %arg4: memref<32x16xbf16, #tpu.memory_space<vmem>>, %arg5: memref<1x16xf32, #tpu.memory_space<vmem>>, %arg6: memref<1x16xf32, #tpu.memory_space<vmem>>, %arg7: memref<1xf32, #tpu.memory_space<smem>>, %arg8: memref<1x256xf32, #tpu.memory_space<vmem>>) attributes {dimension_semantics = [#tpu.dimension_semantics<parallel>], iteration_bounds = array<i64: 8>, scalar_prefetch = 0 : i64, scratch_operands = 0 : i64, tpu.core_type = #tpu.core_type<tc>, window_params = [{transform_indices = @transform_0, window_bounds = array<i64: 256, 4>}, {pipeline_mode = #tpu.pipeline_mode<synchronous>, transform_indices = @transform_1, window_bounds = array<i64: 224, 49>}, {pipeline_mode = #tpu.pipeline_mode<synchronous>, transform_indices = @transform_2, window_bounds = array<i64: 1, 32>}, {pipeline_mode = #tpu.pipeline_mode<synchronous>, transform_indices = @transform_3, window_bounds = array<i64: 32, 16>}, {pipeline_mode = #tpu.pipeline_mode<synchronous>, transform_indices = @transform_4, window_bounds = array<i64: 1, 16>}, {pipeline_mode = #tpu.pipeline_mode<synchronous>, transform_indices = @transform_5, window_bounds = array<i64: 1, 16>}, {transform_indices = @transform_6, window_bounds = array<i64: 1>}, {transform_indices = @transform_7, window_bounds = array<i64: 1, 256>}]} {
    %c0 = arith.constant 0 : index
    %c0_0 = arith.constant 0 : index
    %0 = vector.load %arg1[%c0, %c0_0] : memref<256x4xi32, #tpu.memory_space<vmem>>, vector<256x4xi32>
    %1 = tpu.iota {dimensions = array<i32: 1>} : vector<256x224xi32>
    %2 = vector.extract_strided_slice %0 {offsets = [0, 0], sizes = [256, 1], strides = [1, 1]} : vector<256x4xi32> to vector<256x1xi32>
    %3 = vector.broadcast %2 : vector<256x1xi32> to vector<256x224xi32>
    %4 = arith.cmpi eq, %3, %1 : vector<256x224xi32>
    %5 = vector.extract_strided_slice %0 {offsets = [0, 1], sizes = [256, 1], strides = [1, 1]} : vector<256x4xi32> to vector<256x1xi32>
    %6 = vector.broadcast %5 : vector<256x1xi32> to vector<256x224xi32>
    %7 = arith.cmpi eq, %6, %1 : vector<256x224xi32>
    %8 = arith.ori %4, %7 : vector<256x224xi1>
    %9 = vector.extract_strided_slice %0 {offsets = [0, 2], sizes = [256, 1], strides = [1, 1]} : vector<256x4xi32> to vector<256x1xi32>
    %10 = vector.broadcast %9 : vector<256x1xi32> to vector<256x224xi32>
    %11 = arith.cmpi eq, %10, %1 : vector<256x224xi32>
    %12 = arith.ori %8, %11 : vector<256x224xi1>
    %13 = vector.extract_strided_slice %0 {offsets = [0, 3], sizes = [256, 1], strides = [1, 1]} : vector<256x4xi32> to vector<256x1xi32>
    %14 = vector.broadcast %13 : vector<256x1xi32> to vector<256x224xi32>
    %15 = arith.cmpi eq, %14, %1 : vector<256x224xi32>
    %16 = arith.ori %12, %15 : vector<256x224xi1>
    %cst = arith.constant 1.000000e+00 : f32
    %cst_1 = arith.constant 0.000000e+00 : f32
    %17 = vector.broadcast %cst : f32 to vector<256x224xf32>
    %18 = vector.broadcast %cst_1 : f32 to vector<256x224xf32>
    %19 = arith.select %16, %17, %18 : vector<256x224xi1>, vector<256x224xf32>
    %20 = arith.truncf %19 : vector<256x224xf32> to vector<256x224xbf16>
    %c0_2 = arith.constant 0 : index
    %c0_3 = arith.constant 0 : index
    %21 = vector.load %arg2[%c0_2, %c0_3] : memref<224x49xbf16, #tpu.memory_space<vmem>>, vector<224x49xbf16>
    %cst_4 = arith.constant dense<0.000000e+00> : vector<256x49xf32>
    %22 = tpu.matmul %20, %21, %cst_4 {dimension_numbers = #tpu.dot_dimension_numbers<[1], [0], [0], [1], [0, 0, 1, 1], [], []>} : vector<256x224xbf16>, vector<224x49xbf16>, vector<256x49xf32> -> vector<256x49xf32>
    %23 = vector.extract_strided_slice %22 {offsets = [0, 0], sizes = [256, 16], strides = [1, 1]} : vector<256x49xf32> to vector<256x16xf32>
    %24 = vector.extract_strided_slice %22 {offsets = [0, 16], sizes = [256, 32], strides = [1, 1]} : vector<256x49xf32> to vector<256x32xf32>
    %c0_5 = arith.constant 0 : index
    %c0_6 = arith.constant 0 : index
    %25 = vector.load %arg3[%c0_5, %c0_6] : memref<1x32xf32, #tpu.memory_space<vmem>>, vector<1x32xf32>
    %26 = vector.broadcast %25 : vector<1x32xf32> to vector<256x32xf32>
    %27 = arith.addf %24, %26 : vector<256x32xf32>
    %cst_7 = arith.constant 0.000000e+00 : f32
    %28 = vector.broadcast %cst_7 : f32 to vector<256x32xf32>
    %29 = arith.maximumf %27, %28 : vector<256x32xf32>
    %30 = arith.truncf %29 : vector<256x32xf32> to vector<256x32xbf16>
    %c0_8 = arith.constant 0 : index
    %c0_9 = arith.constant 0 : index
    %31 = vector.load %arg4[%c0_8, %c0_9] : memref<32x16xbf16, #tpu.memory_space<vmem>>, vector<32x16xbf16>
    %cst_10 = arith.constant dense<0.000000e+00> : vector<256x16xf32>
    %32 = tpu.matmul %30, %31, %cst_10 {dimension_numbers = #tpu.dot_dimension_numbers<[1], [0], [0], [1], [0, 0, 1, 1], [], []>} : vector<256x32xbf16>, vector<32x16xbf16>, vector<256x16xf32> -> vector<256x16xf32>
    %c0_11 = arith.constant 0 : index
    %c0_12 = arith.constant 0 : index
    %33 = vector.load %arg5[%c0_11, %c0_12] : memref<1x16xf32, #tpu.memory_space<vmem>>, vector<1x16xf32>
    %34 = vector.broadcast %33 : vector<1x16xf32> to vector<256x16xf32>
    %35 = arith.addf %32, %34 : vector<256x16xf32>
    %cst_13 = arith.constant 0.000000e+00 : f32
    %36 = vector.broadcast %cst_13 : f32 to vector<256x16xf32>
    %37 = arith.maximumf %35, %36 : vector<256x16xf32>
    %cst_14 = arith.constant 5.000000e-01 : f32
    %38 = vector.broadcast %cst_14 : f32 to vector<256x16xf32>
    %39 = arith.mulf %38, %23 : vector<256x16xf32>
    %40 = arith.mulf %39, %23 : vector<256x16xf32>
    %c0_15 = arith.constant 0 : index
    %c0_16 = arith.constant 0 : index
    %41 = vector.load %arg6[%c0_15, %c0_16] : memref<1x16xf32, #tpu.memory_space<vmem>>, vector<1x16xf32>
    %42 = vector.broadcast %41 : vector<1x16xf32> to vector<256x16xf32>
    %43 = arith.mulf %37, %42 : vector<256x16xf32>
    %44 = tpu.concatenate %40, %43 in 1 : vector<256x16xf32>, vector<256x16xf32> -> vector<256x32xf32>
    %cst_17 = arith.constant dense<0.000000e+00> : vector<256xf32>
    %45 = vector.multi_reduction <add>, %44, %cst_17 [1] : vector<256x32xf32> to vector<256xf32>
    %46 = vector.shape_cast %45 : vector<256xf32> to vector<256x1xf32>
    %47 = vector.extract_strided_slice %22 {offsets = [0, 48], sizes = [256, 1], strides = [1, 1]} : vector<256x49xf32> to vector<256x1xf32>
    %48 = arith.addf %46, %47 : vector<256x1xf32>
    %c0_18 = arith.constant 0 : index
    %49 = memref.load %arg7[%c0_18] : memref<1xf32, #tpu.memory_space<smem>>
    %50 = vector.broadcast %49 : f32 to vector<256x1xf32>
    %51 = arith.addf %48, %50 : vector<256x1xf32>
    %52 = vector.shape_cast %51 : vector<256x1xf32> to vector<256xf32>
    %c0_19 = arith.constant 0 : index
    %c0_20 = arith.constant 0 : index
    %53 = vector.load %arg8[%c0_19, %c0_20] : memref<1x256xf32, #tpu.memory_space<vmem>>, vector<1x256xf32>
    %54 = vector.shape_cast %53 : vector<1x256xf32> to vector<256xf32>
    %55 = vector.shape_cast %52 : vector<256xf32> to vector<1x256xf32>
    tpu.vector_store %arg8[%c0_19, %c0_20], %55 {strides = array<i32>} : memref<1x256xf32, #tpu.memory_space<vmem>>, vector<1x256xf32>,
    return
  }
  func.func @transform_0(%arg0: i32) -> (i32, i32) {
    %c0_i32 = arith.constant 0 : i32
    %c0_i32_0 = arith.constant 0 : i32
    return %arg0, %c0_i32 : i32, i32
  }
  func.func @transform_1(%arg0: i32) -> (i32, i32) {
    %c0_i32 = arith.constant 0 : i32
    %c0_i32_0 = arith.constant 0 : i32
    %c0_i32_1 = arith.constant 0 : i32
    return %c0_i32, %c0_i32_0 : i32, i32
  }
  func.func @transform_2(%arg0: i32) -> (i32, i32) {
    %c0_i32 = arith.constant 0 : i32
    %c0_i32_0 = arith.constant 0 : i32
    %c0_i32_1 = arith.constant 0 : i32
    return %c0_i32, %c0_i32_0 : i32, i32
  }
  func.func @transform_3(%arg0: i32) -> (i32, i32) {
    %c0_i32 = arith.constant 0 : i32
    %c0_i32_0 = arith.constant 0 : i32
    %c0_i32_1 = arith.constant 0 : i32
    return %c0_i32, %c0_i32_0 : i32, i32
  }
  func.func @transform_4(%arg0: i32) -> (i32, i32) {
    %c0_i32 = arith.constant 0 : i32
    %c0_i32_0 = arith.constant 0 : i32
    %c0_i32_1 = arith.constant 0 : i32
    return %c0_i32, %c0_i32_0 : i32, i32
  }
  func.func @transform_5(%arg0: i32) -> (i32, i32) {
    %c0_i32 = arith.constant 0 : i32
    %c0_i32_0 = arith.constant 0 : i32
    %c0_i32_1 = arith.constant 0 : i32
    return %c0_i32, %c0_i32_0 : i32, i32
  }
  func.func @transform_6(%arg0: i32) -> i32 {
    %c0_i32 = arith.constant 0 : i32
    %c0_i32_0 = arith.constant 0 : i32
    return %c0_i32 : i32
  }
  func.func @transform_7(%arg0: i32) -> (i32, i32) {
    %c0_i32 = arith.constant 0 : i32
    %c0_i32_0 = arith.constant 0 : i32
    return %c0_i32, %arg0 : i32, i32
  }
}

</mosaic_0001>

<bundles_post_ra>
// kernel: tpu_custom_call.1
= control target key start
LH: loop header
LB: loop body
LE: loop exit
PB: predicated region body
PF: predicated region fallthrough
CT: control target
= control target key end

     0   :  { %s5853_s0 = inlined_call_operand.vmem [shape: s32[2048,4], index: 0, kind: input, shape index: {}]   ;;  %s5854_s1 = inlined_call_operand.vmem [shape: bf16[224,49], index: 1, kind: input, shape index: {}]   ;;  %s5855_s2 = inlined_call_operand.vmem [shape: f32[1,32], index: 2, kind: input, shape index: {}]   ;;  %s5856_s3 = inlined_call_operand.vmem [shape: bf16[32,16], index: 3, kind: input, shape index: {}]   ;;  %s5857_s4 = inlined_call_operand.vmem [shape: f32[1,16], index: 4, kind: input, shape index: {}]   ;;  %s5858_s5 = inlined_call_operand.vmem [shape: f32[1,16], index: 5, kind: input, shape index: {}]   ;;  %s5859_s6 = inlined_call_operand.<no memory space> [shape: f32[1], index: 6, kind: input, shape index: {}]   ;;  %s5860_s7 = inlined_call_operand.hbm [shape: f32[1,2048], index: 7, kind: output, shape index: {}]  }
   0x1   :  { %12 = sst [smem:[#allocation2]] %s5859_s6 }
   0x2   :  { %13 = vsyncpa [#allocation4], 0 }
   0x3   :  { %15 = vsyncpa [#allocation4 + $0x1], 0  ;;  %s3532_s26 = smov 0   ;;  %s3534_s27 = smov 0  }
   0x4   :  { %s3536_s28 = smov 0   ;;  %s3538_s29 = smov 0  }
   0x5 LB: > { %s3553_s6 = sadd.s32 4294967295, %s3478_s29   ;;  %s3154_s30 = sadd.s32 4294967294, %s3478_s29   ;;  %s3478_s29 = sphi %s3538_s29, %s6161_s29   ;;  %s3474_s28 = sphi %s3536_s28, %s6160_s28   ;;  %s3470_s27 = sphi %s3534_s27, %s6159_s27   ;;  %s3466_s26 = sphi %s3532_s26, %s6158_s26  }
   0x6   : > { %s3557_s8 = sadd.s32 1, %s3478_s29   ;;  %s180_s9 = sadd.s32 1, %s3474_s28 }
   0x7   : > { %s177_s10 = ssub.s32 %s3478_s29, %s3557_s8  ;;  %p190_p0 = scmp.ne.s32.totalorder %s3474_s28, %s3470_s27 }
   0x8   : > { %p178_p1 = scmp.eq.s32.totalorder %s177_s10, 0  ;;  %p191_p2 = scmp.eq.s32.totalorder %s3553_s6, 7 }
   0x9   : > { %p196_p3 = scmp.ne.s32.totalorder %s3470_s27, %s3466_s26  ;;  %p197_p4 = scmp.eq.s32.totalorder %s3154_s30, 7 }
   0xa   : > { %s3568_s11 = scalar_select %p178_p1, %s3474_s28, %s180_s9  }
   0xb   : > { %p3570_p5 = por %p191_p2, %p190_p0  ;;  %p3574_p6 = por %p197_p4, %p196_p3 }
   0xc   : > { %p3157_p7 = scmp.ge.s32.totalorder %s3478_s29, 1  ;;  %p242_p8 = scmp.lt.s32.totalorder %s3478_s29, 9 }
   0xe   : > { %p243_p9 = pnand %p3157_p7, %p242_p8 }
  0x10   : > { %246 = sbr.rel (%p243_p9) target bundleno = 1869 (0x74d), region = 48 }
  0x15   : > { %s3159_s14 = sshll.u32 %s3553_s6, 5  ;;  %v3480_v0 = vmov 0   ;;  %v3481_v33 = vmov 1   ;;  %v5861_v58 = vmov 2   ;;  %s3484_s21 = smov 16  }
  0x16   : > { %3375 = vset.pattern.permute.xlu2 %v3480_v0  ;;  %3374 = vset.pattern.permute.xlu1 %v3480_v0  ;;  %p275_p10 = scmp.lt.s32.totalorder %s3159_s14, 255  ;;  %s3487_s22 = smov 112  }
  0x17   : > { %3373 = vset.pattern.permute.xlu0 %v3480_v0  ;;  %s2297_s16 = sld [smem:[#allocation2]]  ;;  %s3290_s23 = sshll.u32 %s3553_s6, 1 }
  0x18   : > { %s6163_s14 = smov (!%p275_p10, %s3159_s14), 255  ;;  %s3090_s30 = scalar_lea.hbm %s5860_s7, %s3290_s23 }
  0x19   : > { %s3160_s15 = sshll.u32 %s6163_s14, 3  ;;  %s3094_s10 = sshll.u32 %s3090_s30, 4  ;;  %s3095_s10 = int_to_ptr.hbm [resolvable:$true] %s3094_s10 }
  0x1a   : > { %s3584_s18 = scalar_lea.vmem %s5853_s0, %s3160_s15  ;;  %s3430_s15 = sshra.s32 %s3095_s10, 4  ;;  %s3431_s15 = int_to_ptr.hbm [resolvable:$true] %s3430_s15 }
  0x1b   : > { %v3587_v1 = vld [vmem:[%s3584_s18 + $0x20] sm:$0xff]  ;;  %v3590_v2 = vld [vmem:[%s3584_s18 + $0x10] sm:$0xff]  ;;  %v3599_v4 = vld [vmem:[%s3584_s18 + $0x28] sm:$0xff]  ;;  %s3436_s19 = scalar_lea.hbm %s5860_s7, 16  ;;  %p3437_p0 = scmp.lt.s32.totalorder %s3431_s15, %s5860_s7 }
  0x1c   : > { %v3593_v3 = vld [vmem:[%s3584_s18] sm:$0xff]  ;;  %330 = vperm.xlu2 %3375, %v3587_v1   ;;  %324 = vperm.xlu1 %3374, %v3590_v2   ;;  %v3602_v5 = vld [vmem:[%s3584_s18 + $0x18] sm:$0xff]  ;;  %v3605_v6 = vld [vmem:[%s3584_s18 + $0x8] sm:$0xff] }
  0x1d   : > { %318 = vperm.xlu0 %3373, %v3593_v3   ;;  %v3611_v7 = vld [vmem:[%s3584_s18 + $0x40] sm:$0xff]  ;;  %v3614_v8 = vld [vmem:[%s3584_s18 + $0x38] sm:$0xff]  ;;  %v3617_v9 = vld [vmem:[%s3584_s18 + $0x30] sm:$0xff] }
  0x1e   : > { %v3623_v10 = vld [vmem:[%s3584_s18 + $0x58] sm:$0xff]  ;;  %v3626_v11 = vld [vmem:[%s3584_s18 + $0x50] sm:$0xff]  ;;  %v3629_v12 = vld [vmem:[%s3584_s18 + $0x48] sm:$0xff] }
  0x1f   : > { %v3635_v13 = vld [vmem:[%s3584_s18 + $0x70] sm:$0xff]  ;;  %v3638_v14 = vld [vmem:[%s3584_s18 + $0x68] sm:$0xff]  ;;  %v3641_v15 = vld [vmem:[%s3584_s18 + $0x60] sm:$0xff] }
  0x20   : > { %v3647_v16 = vld [vmem:[%s3584_s18 + $0x88] sm:$0xff]  ;;  %v3650_v17 = vld [vmem:[%s3584_s18 + $0x80] sm:$0xff]  ;;  %v3653_v18 = vld [vmem:[%s3584_s18 + $0x78] sm:$0xff] }
  0x21   : > { %v3659_v19 = vld [vmem:[%s3584_s18 + $0xa0] sm:$0xff]  ;;  %v3662_v20 = vld [vmem:[%s3584_s18 + $0x98] sm:$0xff]  ;;  %v3665_v21 = vld [vmem:[%s3584_s18 + $0x90] sm:$0xff] }
  0x22   : > { %v3671_v22 = vld [vmem:[%s3584_s18 + $0xb8] sm:$0xff]  ;;  %v3674_v23 = vld [vmem:[%s3584_s18 + $0xb0] sm:$0xff]  ;;  %v3677_v24 = vld [vmem:[%s3584_s18 + $0xa8] sm:$0xff] }
  0x23   : > { %v3683_v25 = vld [vmem:[%s3584_s18 + $0xd0] sm:$0xff]  ;;  %v3686_v26 = vld [vmem:[%s3584_s18 + $0xc8] sm:$0xff]  ;;  %v3689_v27 = vld [vmem:[%s3584_s18 + $0xc0] sm:$0xff] }
  0x24   : > { %333 = vperm.xlu2 %3375, %v3599_v4   ;;  %327 = vperm.xlu1 %3374, %v3602_v5   ;;  %v3695_v28 = vld [vmem:[%s3584_s18 + $0xe8] sm:$0xff]  ;;  %v3698_v29 = vld [vmem:[%s3584_s18 + $0xe0] sm:$0xff]  ;;  %v3701_v30 = vld [vmem:[%s3584_s18 + $0xd8] sm:$0xff] }
  0x25   : > { %321 = vperm.xlu0 %3373, %v3605_v6   ;;  %v3707_v31 = vld [vmem:[%s3584_s18 + $0xf8] sm:$0xff]  ;;  %v3710_v32 = vld [vmem:[%s3584_s18 + $0xf0] sm:$0xff] }
  0x2c   : > { %342 = vperm.xlu2 %3375, %v3611_v7   ;;  %339 = vperm.xlu1 %3374, %v3614_v8  }
  0x2d   : > { %336 = vperm.xlu0 %3373, %v3617_v9  }
  0x34   : > { %351 = vperm.xlu2 %3375, %v3623_v10   ;;  %348 = vperm.xlu1 %3374, %v3626_v11  }
  0x35   : > { %345 = vperm.xlu0 %3373, %v3629_v12  }
  0x3c   : > { %360 = vperm.xlu2 %3375, %v3635_v13   ;;  %357 = vperm.xlu1 %3374, %v3638_v14  }
  0x3d   : > { %354 = vperm.xlu0 %3373, %v3641_v15  }
  0x44   : > { %369 = vperm.xlu2 %3375, %v3647_v16   ;;  %366 = vperm.xlu1 %3374, %v3650_v17  }
  0x45   : > { %363 = vperm.xlu0 %3373, %v3653_v18  }
  0x4c   : > { %378 = vperm.xlu2 %3375, %v3659_v19   ;;  %375 = vperm.xlu1 %3374, %v3662_v20  }
  0x4d   : > { %372 = vperm.xlu0 %3373, %v3665_v21  }
  0x54   : > { %387 = vperm.xlu2 %3375, %v3671_v22   ;;  %384 = vperm.xlu1 %3374, %v3674_v23  }
  0x55   : > { %381 = vperm.xlu0 %3373, %v3677_v24  }
  0x5c   : > { %396 = vperm.xlu2 %3375, %v3683_v25   ;;  %393 = vperm.xlu1 %3374, %v3686_v26  }
  0x5d   : > { %390 = vperm.xlu0 %3373, %v3689_v27  }
  0x64   : > { %405 = vperm.xlu2 %3375, %v3695_v28   ;;  %402 = vperm.xlu1 %3374, %v3698_v29  }
  0x65   : > { %399 = vperm.xlu0 %3373, %v3701_v30  }
  0x6c   : > { %3376 = vset.pattern.permute.xlu2 %v3481_v33  ;;  %411 = vperm.xlu1 %3374, %v3707_v31  }
  0x6d   : > { %408 = vperm.xlu0 %3373, %v3710_v32   ;;  %478 = vperm.xlu2 %3376, %v3593_v3  }
  0x74   : > { %3378 = vset.pattern.permute.xlu1 %v3481_v33 }
  0x75   : > { %3377 = vset.pattern.permute.xlu0 %v3481_v33  ;;  %484 = vperm.xlu1 %3378, %v3590_v2  }
  0x76   : > { %487 = vperm.xlu2 %3376, %v3602_v5   ;;  %481 = vperm.xlu0 %3377, %v3605_v6   ;;  %v3718_v34 = vpop.permute.xlu2 %330 }
  0x7d   : > { %490 = vperm.xlu1 %3378, %v3587_v1  }
  0x7e   : > { %493 = vperm.xlu2 %3376, %v3599_v4   ;;  %496 = vperm.xlu0 %3377, %v3617_v9   ;;  %v3723_v35 = vpop.permute.xlu2 %333 }
  0x85   : > { %499 = vperm.xlu1 %3378, %v3614_v8  }
  0x86   : > { %502 = vperm.xlu2 %3376, %v3611_v7   ;;  %505 = vperm.xlu0 %3377, %v3629_v12   ;;  %v3728_v36 = vpop.permute.xlu2 %342 }
  0x8d   : > { %508 = vperm.xlu1 %3378, %v3626_v11  }
  0x8e   : > { %511 = vperm.xlu2 %3376, %v3623_v10   ;;  %514 = vperm.xlu0 %3377, %v3641_v15   ;;  %v3733_v37 = vpop.permute.xlu2 %351  ;;  %v3735_v38 = vpop.permute.xlu1 %324 }
  0x8f   : > { %v3737_v39 = vpop.permute.xlu0 %318 }
  0x95   : > { %517 = vperm.xlu1 %3378, %v3638_v14  }
  0x96   : > { %520 = vperm.xlu2 %3376, %v3635_v13   ;;  %523 = vperm.xlu0 %3377, %v3653_v18   ;;  %v3742_v40 = vpop.permute.xlu2 %360  ;;  %v3744_v41 = vpop.permute.xlu1 %327 }
  0x97   : > { %5904 = vst [vmem:[#allocation6_spill] sm:$0xff] %v3742_v40  ;;  %v3746_v42 = vpop.permute.xlu0 %321 }
  0x9d   : > { %526 = vperm.xlu1 %3378, %v3650_v17  }
  0x9e   : > { %529 = vperm.xlu2 %3376, %v3647_v16   ;;  %532 = vperm.xlu0 %3377, %v3665_v21   ;;  %v3751_v43 = vpop.permute.xlu2 %369  ;;  %v3753_v44 = vpop.permute.xlu1 %339 }
  0x9f   : > { %5905 = vst [vmem:[#allocation7_spill] sm:$0xff] %v3751_v43  ;;  %v3755_v45 = vpop.permute.xlu0 %336  ;;  %v5923_v43 = vmov 3  }
  0xa5   : > { %535 = vperm.xlu1 %3378, %v3662_v20  }
  0xa6   : > { %538 = vperm.xlu2 %3376, %v3659_v19   ;;  %541 = vperm.xlu0 %3377, %v3677_v24   ;;  %v3760_v46 = vpop.permute.xlu2 %378  ;;  %v3762_v47 = vpop.permute.xlu1 %348 }
  0xa7   : > { %5906 = vst [vmem:[#allocation8_spill] sm:$0xff] %v3760_v46  ;;  %v3764_v48 = vpop.permute.xlu0 %345 }
  0xad   : > { %544 = vperm.xlu1 %3378, %v3674_v23  }
  0xae   : > { %547 = vperm.xlu2 %3376, %v3671_v22   ;;  %550 = vperm.xlu0 %3377, %v3689_v27   ;;  %v3769_v49 = vpop.permute.xlu2 %387  ;;  %v3771_v50 = vpop.permute.xlu1 %357 }
  0xaf   : > { %5907 = vst [vmem:[#allocation9_spill] sm:$0xff] %v3769_v49  ;;  %v3773_v51 = vpop.permute.xlu0 %354 }
  0xb0   : > { %5908 = vst [vmem:[#allocation10_spill] sm:$0xff] %v3771_v50  ;;  %v3294_v50 = vld [vmem:[%s5854_s1 + $0x8] sm:$0xff] }
  0xb1   : > { %5909 = vst [vmem:[#allocation11_spill] sm:$0xff] %v3773_v51 }
  0xb5   : > { %553 = vperm.xlu1 %3378, %v3686_v26  }
  0xb6   : > { %556 = vperm.xlu2 %3376, %v3683_v25   ;;  %559 = vperm.xlu0 %3377, %v3701_v30   ;;  %v3778_v52 = vpop.permute.xlu2 %396  ;;  %v3780_v53 = vpop.permute.xlu1 %366 }
  0xb7   : > { %5910 = vst [vmem:[#allocation12_spill] sm:$0xff] %v3778_v52  ;;  %v3782_v54 = vpop.permute.xlu0 %363  ;;  %v3302_v52 = vld [vmem:[%s5854_s1 + $0x48] sm:$0xff] }
  0xb8   : > { %5911 = vst [vmem:[#allocation13_spill] sm:$0xff] %v3780_v53 }
  0xb9   : > { %5912 = vst [vmem:[#allocation14_spill] sm:$0xff] %v3782_v54 }
  0xbd   : > { %562 = vperm.xlu1 %3378, %v3698_v29  }
  0xbe   : > { %565 = vperm.xlu2 %3376, %v3695_v28   ;;  %568 = vperm.xlu0 %3377, %v3710_v32   ;;  %v3787_v55 = vpop.permute.xlu2 %405  ;;  %v3789_v56 = vpop.permute.xlu1 %375 }
  0xbf   : > { %5913 = vst [vmem:[#allocation15_spill] sm:$0xff] %v3787_v55  ;;  %v3791_v57 = vpop.permute.xlu0 %372 }
  0xc0   : > { %5914 = vst [vmem:[#allocation16_spill] sm:$0xff] %v3789_v56 }
  0xc1   : > { %5915 = vst [vmem:[#allocation17_spill] sm:$0xff] %v3791_v57 }
  0xc5   : > { %571 = vperm.xlu1 %3378, %v3707_v31  }
  0xc6   : > { %3379 = vset.pattern.permute.xlu2 %v5861_v58  ;;  %3380 = vset.pattern.permute.xlu0 %v5861_v58  ;;  %v3796_v59 = vpop.permute.xlu1 %384 }
  0xc7   : > { %5916 = vst [vmem:[#allocation18_spill] sm:$0xff] %v3796_v59  ;;  %702 = vperm.xlu2 %3379, %v3593_v3   ;;  %705 = vperm.xlu0 %3380, %v3605_v6   ;;  %v3800_v60 = vpop.permute.xlu0 %381  ;;  %v3802_v61 = vpop.permute.xlu2 %478 }
  0xc8   : > { %5917 = vst [vmem:[#allocation19_spill] sm:$0xff] %v3800_v60  ;;  %v5871_v60 = vmov 3  }
  0xcd   : > { %3381 = vset.pattern.permute.xlu1 %v5861_v58 }
  0xce   : > { %708 = vperm.xlu1 %3381, %v3590_v2   ;;  %v3806_v62 = vpop.permute.xlu1 %393 }
  0xcf   : > { %711 = vperm.xlu2 %3379, %v3602_v5   ;;  %720 = vperm.xlu0 %3380, %v3617_v9   ;;  %v3810_v63 = vpop.permute.xlu0 %390 }
  0xd0   : > { %v3812_v0 = vpop.permute.xlu2 %487 }
  0xd6   : > { %714 = vperm.xlu1 %3381, %v3587_v1   ;;  %v3815_v33 = vpop.permute.xlu1 %402 }
  0xd7   : > { %5918 = vst [vmem:[#allocation20_spill] sm:$0xff] %v3815_v33  ;;  %717 = vperm.xlu2 %3379, %v3599_v4   ;;  %729 = vperm.xlu0 %3380, %v3629_v12   ;;  %v3819_v58 = vpop.permute.xlu0 %399 }
  0xd8   : > { %5919 = vst [vmem:[#allocation21_spill] sm:$0xff] %v3819_v58  ;;  %v3821_v59 = vpop.permute.xlu2 %493 }
  0xde   : > { %723 = vperm.xlu1 %3381, %v3614_v8   ;;  %v3824_v49 = vpop.permute.xlu1 %411 }
  0xdf   : > { %5920 = vst [vmem:[#allocation22_spill] sm:$0xff] %v3824_v49  ;;  %726 = vperm.xlu2 %3379, %v3611_v7   ;;  %3382 = vset.pattern.permute.xlu0 %v5871_v60  ;;  %v3828_v46 = vpop.permute.xlu0 %408 }
  0xe0   : > { %5921 = vst [vmem:[#allocation23_spill] sm:$0xff] %v3828_v46  ;;  %v3830_v56 = vpop.permute.xlu2 %502  ;;  %926 = vperm.xlu0 %3382, %v3593_v3  }
  0xe6   : > { %732 = vperm.xlu1 %3381, %v3626_v11  }
  0xe7   : > { %735 = vperm.xlu2 %3379, %v3623_v10   ;;  %v3835_v57 = vpop.permute.xlu1 %484 }
  0xe8   : > { %v3837_v53 = vpop.permute.xlu2 %511  ;;  %938 = vperm.xlu0 %3382, %v3587_v1   ;;  %v3840_v49 = vpop.permute.xlu0 %481 }
  0xee   : > { %741 = vperm.xlu1 %3381, %v3638_v14  }
  0xef   : > { %744 = vperm.xlu2 %3379, %v3635_v13   ;;  %v3844_v60 = vpop.permute.xlu1 %490 }
  0xf0   : > { %v3846_v46 = vpop.permute.xlu2 %520  ;;  %944 = vperm.xlu0 %3382, %v3617_v9   ;;  %v3849_v3 = vpop.permute.xlu0 %496  ;;  %v5925_v9 = vmov 2  }
  0xf1   : > { %5922 = vst [vmem:[#allocation24_spill] sm:$0xff] %v3846_v46 }
  0xf6   : > { %3383 = vset.pattern.permute.xlu1 %v5923_v43 }
  0xf7   : > { %3384 = vset.pattern.permute.xlu2 %v5923_v43  ;;  %v3853_v55 = vpop.permute.xlu1 %499  ;;  %929 = vperm.xlu1 %3383, %v3605_v6  }
  0xf8   : > { %932 = vperm.xlu2 %3384, %v3590_v2   ;;  %v3857_v1 = vpop.permute.xlu2 %529  ;;  %953 = vperm.xlu0 %3382, %v3629_v12   ;;  %v3860_v33 = vpop.permute.xlu0 %505 }
  0xf9   : > { %5924 = vst [vmem:[#allocation25_spill] sm:$0xff] %v3857_v1 }
  0xff   : > { %v3862_v54 = vpop.permute.xlu1 %508  ;;  %935 = vperm.xlu1 %3383, %v3602_v5  }
 0x100   : > { %3385 = vset.pattern.permute.xlu2 %v5925_v9  ;;  %v3866_v40 = vpop.permute.xlu2 %538  ;;  %959 = vperm.xlu0 %3382, %v3623_v10   ;;  %v3869_v46 = vpop.permute.xlu0 %514 }
 0x101   : > { %5926 = vst [vmem:[#allocation26_spill] sm:$0xff] %v3866_v40  ;;  %747 = vperm.xlu2 %3385, %v3653_v18  }
 0x107   : > { %v3872_v2 = vpop.permute.xlu1 %517  ;;  %941 = vperm.xlu1 %3383, %v3599_v4  }
 0x108   : > { %5927 = vst [vmem:[#allocation27_spill] sm:$0xff] %v3872_v2  ;;  %v3875_v6 = vpop.permute.xlu2 %547  ;;  %965 = vperm.xlu0 %3382, %v3638_v14   ;;  %v3878_v12 = vpop.permute.xlu0 %523 }
 0x109   : > { %5928 = vst [vmem:[#allocation28_spill] sm:$0xff] %v3875_v6  ;;  %750 = vperm.xlu2 %3385, %v3650_v17  }
 0x10a   : > { %5929 = vst [vmem:[#allocation29_spill] sm:$0xff] %v3878_v12 }
 0x10f   : > { %v3881_v5 = vpop.permute.xlu1 %526  ;;  %947 = vperm.xlu1 %3383, %v3614_v8  }
 0x110   : > { %5930 = vst [vmem:[#allocation30_spill] sm:$0xff] %v3881_v5  ;;  %v3884_v10 = vpop.permute.xlu2 %556  ;;  %3388 = vset.pattern.permute.xlu0 %v5925_v9  ;;  %v3887_v40 = vpop.permute.xlu0 %532 }
 0x111   : > { %5931 = vst [vmem:[#allocation31_spill] sm:$0xff] %v3884_v10  ;;  %3386 = vset.pattern.permute.xlu2 %v5923_v43  ;;  %738 = vperm.xlu0 %3388, %v3641_v15  }
 0x112   : > { %5932 = vst [vmem:[#allocation32_spill] sm:$0xff] %v3887_v40  ;;  %950 = vperm.xlu2 %3386, %v3611_v7  }
 0x117   : > { %v3892_v4 = vpop.permute.xlu1 %535  ;;  %3387 = vset.pattern.permute.xlu1 %v5925_v9 }
 0x118   : > { %5933 = vst [vmem:[#allocation33_spill] sm:$0xff] %v3892_v4  ;;  %v3895_v14 = vpop.permute.xlu2 %565  ;;  %v3897_v6 = vpop.permute.xlu0 %541  ;;  %753 = vperm.xlu1 %3387, %v3647_v16  }
 0x119   : > { %5934 = vst [vmem:[#allocation34_spill] sm:$0xff] %v3895_v14  ;;  %774 = vperm.xlu0 %3388, %v3689_v27  }
 0x11a   : > { %5935 = vst [vmem:[#allocation35_spill] sm:$0xff] %v3897_v6  ;;  %956 = vperm.xlu2 %3386, %v3626_v11   ;;  %v3411_v11 = vld [vmem:[%s5855_s2] ss:$0 sm:$0xff] }
 0x11f   : > { %v3902_v8 = vpop.permute.xlu1 %544 }
 0x120   : > { %5936 = vst [vmem:[#allocation36_spill] sm:$0xff] %v3902_v8  ;;  %756 = vperm.xlu1 %3387, %v3665_v21   ;;  %v3907_v7 = vpop.permute.xlu0 %550 }
 0x121   : > { %v3905_v40 = vpop.permute.xlu2 %702  ;;  %3392 = vset.pattern.permute.xlu0 %v5923_v43 }
 0x122   : > { %962 = vperm.xlu2 %3386, %v3641_v15   ;;  %977 = vperm.xlu0 %3392, %v3647_v16   ;;  %v3300_v16 = vld [vmem:[%s5854_s1 + $0x38] sm:$0xff] }
 0x123   : > { %1406 = vmatpush.bf16.msra.mxu0 %v3300_v16  ;;  %3309 = vmatpush.bf16.msra.mxu3 %v3300_v16  ;;  %v3306_v16 = vld [vmem:[%s5854_s1 + $0x68] sm:$0xff] }
 0x124   : > { %1497 = vmatpush.bf16.msra.mxu1 %v3306_v16 }
 0x127   : > { %v3912_v6 = vpop.permute.xlu1 %553 }
 0x128   : > { %3389 = vset.pattern.permute.xlu1 %v5923_v43  ;;  %v3923_v15 = vpop.permute.xlu0 %559 }
 0x129   : > { %v3918_v8 = vpop.permute.xlu2 %711  ;;  %968 = vperm.xlu1 %3389, %v3635_v13   ;;  %v3299_v13 = vld [vmem:[%s5854_s1 + $0x30] sm:$0xff] }
 0x12a   : > { %971 = vperm.xlu2 %3386, %v3653_v18   ;;  %1587 = vrot.lane.b32.xlu0 %v3411_v11, %s3484_s21 }
 0x12b   : > { %1407 = vmatpush.bf16.msra.mxu0 %v3299_v13  ;;  %3310 = vmatpush.bf16.msra.mxu3 %v3299_v13  ;;  %v3297_v13 = vld [vmem:[%s5854_s1 + $0x20] sm:$0xff] }
 0x12f   : > { %v3928_v4 = vpop.permute.xlu1 %562 }
 0x130   : > { %5937 = vst [vmem:[#allocation37_spill] sm:$0xff] %v3928_v4  ;;  %v3939_v18 = vpop.permute.xlu0 %568  ;;  %v3304_v4 = vld [vmem:[%s5854_s1 + $0x58] sm:$0xff] }
 0x131   : > { %v3930_v5 = vpop.permute.xlu2 %717  ;;  %3390 = vset.pattern.permute.xlu1 %v5925_v9  ;;  %5938 = vst [vmem:[#allocation38_spill] sm:$0xff] %v3939_v18 }
 0x132   : > { %998 = vperm.xlu2 %3386, %v3689_v27   ;;  %777 = vperm.xlu1 %3390, %v3686_v26   ;;  %v3298_v27 = vld [vmem:[%s5854_s1 + $0x28] sm:$0xff] }
 0x133   : > { %983 = vperm.xlu0 %3392, %v3662_v20   ;;  %1408 = vmatpush.bf16.msra.mxu0 %v3298_v27 }
 0x134   : > { %3311 = vmatpush.bf16.msra.mxu3 %v3298_v27  ;;  %v3295_v27 = vld [vmem:[%s5854_s1 + $0x10] sm:$0xff] }
 0x137   : > { %v3941_v11 = vpop.permute.xlu1 %571  ;;  %1409 = vmatpush.bf16.msra.mxu0 %v3297_v13 }
 0x138   : > { %5939 = vst [vmem:[#allocation39_spill] sm:$0xff] %v3941_v11  ;;  %v3305_v11 = vld [vmem:[%s5854_s1 + $0x60] sm:$0xff]  ;;  %3312 = vmatpush.bf16.msra.mxu3 %v3297_v13  ;;  %v3303_v13 = vld [vmem:[%s5854_s1 + $0x50] sm:$0xff] }
 0x139   : > { %v3949_v1 = vpop.permute.xlu2 %726  ;;  %1498 = vmatpush.bf16.msra.mxu1 %v3305_v11  ;;  %v3961_v18 = vpop.permute.xlu0 %705 }
 0x13a   : > { %974 = vperm.xlu2 %3386, %v3650_v17   ;;  %3391 = vset.pattern.permute.xlu1 %v5923_v43 }
 0x13b   : > { %1010 = vperm.xlu0 %3392, %v3698_v29   ;;  %1001 = vperm.xlu1 %3391, %v3686_v26   ;;  %v3296_v26 = vld [vmem:[%s5854_s1 + $0x18] sm:$0xff] }
 0x13c   : > { %1410 = vmatpush.bf16.msra.mxu0 %v3296_v26  ;;  %3313 = vmatpush.bf16.msra.mxu3 %v3296_v26  ;;  %v3293_v26 = vld [vmem:[%s5854_s1] sm:$0xff] }
 0x13d   : > { %1499 = vmatpush.bf16.msra.mxu1 %v3304_v4 }
 0x140   : > { %v3963_v17 = vpop.permute.xlu1 %708  ;;  %1411 = vmatpush.bf16.msra.mxu0 %v3295_v27  ;;  %3314 = vmatpush.bf16.msra.mxu3 %v3295_v27  ;;  %v3301_v27 = vld [vmem:[%s5854_s1 + $0x40] sm:$0xff] }
 0x141   : > { %v3968_v14 = vpop.permute.xlu2 %735  ;;  %v3990_v2 = vpop.permute.xlu0 %720  ;;  %1500 = vmatpush.bf16.msra.mxu1 %v3303_v13 }
 0x142   : > { %3394 = vset.pattern.permute.xlu2 %v5925_v9 }
 0x143   : > { %3400 = vset.pattern.permute.xlu0 %v5925_v9  ;;  %783 = vperm.xlu2 %3394, %v3701_v30  }
 0x144   : > { %765 = vperm.xlu0 %3400, %v3677_v24   ;;  %3393 = vset.pattern.permute.xlu1 %v5925_v9 }
 0x145   : > { %780 = vperm.xlu1 %3393, %v3683_v25   ;;  %1412 = vmatpush.bf16.msra.mxu0 %v3294_v50 }
 0x146   : > { %1501 = vmatpush.bf16.msra.mxu1 %v3302_v52  ;;  %3315 = vmatpush.bf16.msra.mxu3 %v3294_v50 }
 0x148   : > { %v3985_v12 = vpop.permute.xlu1 %714 }
 0x149   : > { %v3996_v10 = vpop.permute.xlu2 %744  ;;  %1413 = vmatpush.bf16.msra.mxu0 %v3293_v26 }
 0x14a   : > { %5940 = vst [vmem:[#allocation40_spill] sm:$0xff] %v3996_v10  ;;  %1502 = vmatpush.bf16.msra.mxu1 %v3301_v27  ;;  %3316 = vmatpush.bf16.msra.mxu3 %v3293_v26  ;;  %v4011_v10 = vpop.permute.xlu0 %729 }
 0x14b   : > { %3396 = vset.pattern.permute.xlu2 %v5923_v43 }
 0x14c   : > { %1007 = vperm.xlu2 %3396, %v3701_v30   ;;  %3404 = vset.pattern.permute.xlu0 %v5923_v43 }
 0x14d   : > { %3395 = vset.pattern.permute.xlu1 %v5923_v43  ;;  %1016 = vperm.xlu0 %3404, %v3710_v32  }
 0x14e   : > { %1004 = vperm.xlu1 %3395, %v3683_v25   ;;  %3317 = vmatpush.bf16.msrb.mxu3 %v3306_v16  ;;  %v314_v25 = vlaneseq }
 0x150   : > { %v4009_v30 = vpop.permute.xlu1 %723  ;;  %v4022_v51 = vand.u32 127, %v314_v25 }
 0x152   : > { %v4014_v58 = vpop.permute.xlu2 %932  ;;  %3318 = vmatpush.bf16.msrb.mxu3 %v3305_v11  ;;  %v4027_v16 = vadd.s32 128, %v4022_v51  ;;  %vm573_vm0 = vcmp.eq.s32.totalorder %v3802_v61, %v4022_v51  ;;  %vm413_vm2 = vcmp.eq.s32.totalorder %v3737_v39, %v4022_v51  ;;  %vm575_vm3 = vcmp.eq.s32.totalorder %v3840_v49, %v4022_v51 }
 0x153   : > { %vm4044_vm5 = vmor %vm413_vm2, %vm573_vm0  ;;  %vm415_vm7 = vcmp.eq.s32.totalorder %v3746_v42, %v4022_v51  ;;  %vm797_vm12 = vcmp.eq.s32.totalorder %v3905_v40, %v4022_v51  ;;  %vm799_vm2 = vcmp.eq.s32.totalorder %v3961_v18, %v4022_v51 }
 0x154   : > { %980 = vperm.xlu2 %3396, %v3665_v21   ;;  %v927_v21 = vpop.permute.xlu0 %926  ;;  %vm574_vm1 = vcmp.eq.s32.totalorder %v3802_v61, %v4027_v16  ;;  %vm414_vm4 = vcmp.eq.s32.totalorder %v3737_v39, %v4027_v16  ;;  %vm576_vm6 = vcmp.eq.s32.totalorder %v3840_v49, %v4027_v16  ;;  %vm798_vm9 = vcmp.eq.s32.totalorder %v3905_v40, %v4027_v16  ;;  %vm4056_vm11 = vmor %vm415_vm7, %vm575_vm3 }
 0x155   : > { %995 = vperm.xlu0 %3404, %v3671_v22   ;;  %vm638_vm8 = vmor %vm414_vm4, %vm574_vm1  ;;  %vm416_vm10 = vcmp.eq.s32.totalorder %v3746_v42, %v4027_v16  ;;  %vm1022_vm14 = vcmp.eq.s32.totalorder %v927_v21, %v4027_v16  ;;  %vm800_vm15 = vcmp.eq.s32.totalorder %v3961_v18, %v4027_v16  ;;  %v5974_v39 = vmov 0 }
 0x156   : > { %3397 = vset.pattern.permute.xlu1 %v5925_v9  ;;  %3319 = vmatpush.bf16.msrb.mxu3 %v3304_v4  ;;  %vm640_vm13 = vmor %vm416_vm10, %vm576_vm6  ;;  %vm5900_vm10 = vcmask 785408  }
 0x157   : > { %759 = vperm.xlu1 %3397, %v3662_v20   ;;  %vm862_vm0 = vmor %vm638_vm8, %vm798_vm9  ;;  %vm1021_vm8 = vcmp.eq.s32.totalorder %v927_v21, %v4022_v51 }
 0x158   : > { %v4019_v50 = vpop.permute.xlu1 %732  ;;  %vm4072_vm1 = vmor %vm4044_vm5, %vm797_vm12 }
 0x159   : > { %vm1086_vm3 = vmor %vm862_vm0, %vm1022_vm14  ;;  %vm419_vm0 = vcmp.eq.s32.totalorder %v3744_v41, %v4022_v51 }
 0x15a   : > { %3320 = vmatpush.bf16.msrb.mxu3 %v3303_v13  ;;  %vm864_vm4 = vmor %vm640_vm13, %vm800_vm15  ;;  %vm579_vm15 = vcmp.eq.s32.totalorder %v3812_v0, %v4022_v51  ;;  %v3486_v13 = vmov 1.0|1.0  }
 0x15b   : > { %v4032_v20 = vpop.permute.xlu2 %747  ;;  %vm863_vm5 = vmor %vm4056_vm11, %vm799_vm2  ;;  %vm580_vm11 = vcmp.eq.s32.totalorder %v3812_v0, %v4027_v16  ;;  %vm420_vm2 = vcmp.eq.s32.totalorder %v3744_v41, %v4027_v16 }
 0x15c   : > { %3398 = vset.pattern.permute.xlu2 %v5925_v9  ;;  %v4067_v49 = vpop.permute.xlu0 %938  ;;  %vm1085_vm13 = vmor %vm4072_vm1, %vm1021_vm8  ;;  %vm578_vm1 = vcmp.eq.s32.totalorder %v3835_v57, %v4027_v16 }
 0x15d   : > { %789 = vperm.xlu2 %3398, %v3695_v28  }
 0x15e   : > { %3321 = vmatpush.bf16.msrb.mxu3 %v3302_v52 }
 0x15f   : > { %786 = vperm.xlu1 %3397, %v3698_v29  }
 0x160   : > { %v4034_v11 = vpop.permute.xlu1 %741 }
 0x162   : > { %3322 = vmatpush.bf16.msrb.mxu3 %v3301_v27  ;;  %v6118_v27 = vld [vmem:[#allocation39_spill] sm:$0xff] }
 0x163   : > { %v4078_v52 = vpop.permute.xlu2 %750 }
 0x165   : > { %762 = vperm.xlu2 %3398, %v3659_v19  }
 0x167   : > { %3399 = vset.pattern.permute.xlu1 %v5923_v43 }
 0x168   : > { %1013 = vperm.xlu1 %3399, %v3695_v28   ;;  %v3485_v28 = vmov 0.0  }
 0x169   : > { %v930_v40 = vpop.permute.xlu1 %929  ;;  %v1150_v61 = vsel %vm1086_vm3, 1.0, %v3485_v28  ;;  %vm4106_vm3 = vmor %vm419_vm0, %vm579_vm15 }
 0x16a   : > { %vm1023_vm6 = vcmp.eq.s32.totalorder %v930_v40, %v4022_v51  ;;  %vm1024_vm7 = vcmp.eq.s32.totalorder %v930_v40, %v4027_v16  ;;  %v5985_v40 = vmov 0 }
 0x16b   : > { %vm1088_vm9 = vmor %vm864_vm4, %vm1024_vm7  ;;  %vm804_vm4 = vcmp.eq.s32.totalorder %v3918_v8, %v4027_v16 }
 0x16c   : > { %v1152_v4 = vsel %vm1088_vm9, 1.0, %v3485_v28  ;;  %vm1087_vm12 = vmor %vm863_vm5, %vm1023_vm6  ;;  %vm418_vm6 = vcmp.eq.s32.totalorder %v3735_v38, %v4027_v16  ;;  %vm802_vm5 = vcmp.eq.s32.totalorder %v3963_v17, %v4027_v16 }
 0x16d   : > { %3401 = vset.pattern.permute.xlu2 %v5923_v43  ;;  %v1214_v18 = vpack.c.bf16 %v1152_v4, %v1150_v61  ;;  %vm3217_vm14 = vmpackc.low %vm1087_vm12, %vm1085_vm13  ;;  %vm1026_vm13 = vcmp.eq.s32.totalorder %v4014_v58, %v4027_v16 }
 0x16e   : > { %989 = vperm.xlu2 %3401, %v3677_v24   ;;  %3218 = vmatmul.msk.bf16.vlgmr.msra.gmra.mxu0 %vm3217_vm14, %v3486_v13  ;;  %v4102_v24 = vpop.permute.xlu0 %944  ;;  %vm644_vm7 = vmor %vm420_vm2, %vm580_vm11  ;;  %vm577_vm14 = vcmp.eq.s32.totalorder %v3835_v57, %v4022_v51  ;;  %vm803_vm11 = vcmp.eq.s32.totalorder %v3918_v8, %v4022_v51 }
 0x16f   : > { %3249 = vmatmul.msk.bf16.vlgmr.msra.gmra.mxu1 %vm5900_vm10, %v1214_v18  ;;  %vm642_vm9 = vmor %vm418_vm6, %vm578_vm1  ;;  %vm417_vm1 = vcmp.eq.s32.totalorder %v3735_v38, %v4022_v51 }
 0x170   : > { %986 = vperm.xlu1 %3399, %v3659_v19   ;;  %v4114_v19 = vpop.permute.xlu2 %950  ;;  %vm868_vm12 = vmor %vm644_vm7, %vm804_vm4  ;;  %vm801_vm7 = vcmp.eq.s32.totalorder %v3963_v17, %v4022_v51  ;;  %v6010_v17 = vmov 0 }
 0x171   : > { %v936_v26 = vpop.permute.xlu1 %935  ;;  %vm866_vm0 = vmor %vm642_vm9, %vm802_vm5 }
 0x172   : > { %vm1028_vm8 = vcmp.eq.s32.totalorder %v936_v26, %v4027_v16  ;;  %vm1090_vm2 = vmor %vm866_vm0, %vm1026_vm13  ;;  %vm1027_vm4 = vcmp.eq.s32.totalorder %v936_v26, %v4022_v51  ;;  %vm582_vm0 = vcmp.eq.s32.totalorder %v3844_v60, %v4027_v16 }
 0x173   : > { %vm1092_vm15 = vmor %vm868_vm12, %vm1028_vm8  ;;  %vm1025_vm8 = vcmp.eq.s32.totalorder %v4014_v58, %v4022_v51  ;;  %v1154_v38 = vsel %vm1090_vm2, 1.0, %v3485_v28 }
 0x174   : > { %vm641_vm6 = vmor %vm417_vm1, %vm577_vm14  ;;  %v1156_v57 = vsel %vm1092_vm15, 1.0, %v3485_v28  ;;  %vm583_vm15 = vcmp.eq.s32.totalorder %v3821_v59, %v4022_v51  ;;  %vm424_vm1 = vcmp.eq.s32.totalorder %v3723_v35, %v4027_v16 }
 0x175   : > { %vm867_vm9 = vmor %vm4106_vm3, %vm803_vm11  ;;  %vm584_vm3 = vcmp.eq.s32.totalorder %v3821_v59, %v4027_v16  ;;  %vm423_vm11 = vcmp.eq.s32.totalorder %v3723_v35, %v4022_v51 }
 0x176   : > { %3403 = vset.pattern.permute.xlu2 %v5925_v9  ;;  %v4139_v0 = vpop.permute.xlu0 %953  ;;  %vm1091_vm5 = vmor %vm867_vm9, %vm1027_vm4  ;;  %vm808_vm4 = vcmp.eq.s32.totalorder %v3930_v5, %v4027_v16 }
 0x177   : > { %795 = vperm.xlu2 %3403, %v3707_v31   ;;  %vm865_vm12 = vmor %vm641_vm6, %vm801_vm7  ;;  %vm422_vm6 = vcmp.eq.s32.totalorder %v3718_v34, %v4027_v16 }
 0x178   : > { %3402 = vset.pattern.permute.xlu1 %v5925_v9  ;;  %v4142_v8 = vpop.permute.xlu2 %956  ;;  %vm1089_vm13 = vmor %vm865_vm12, %vm1025_vm8 }
 0x179   : > { %792 = vperm.xlu1 %3402, %v3710_v32   ;;  %v942_v41 = vpop.permute.xlu1 %941  ;;  %v1216_v32 = vpack.c.bf16 %v1156_v57, %v1154_v38  ;;  %vm3219_vm14 = vmpackc.low %vm1091_vm5, %vm1089_vm13  ;;  %vm806_vm5 = vcmp.eq.s32.totalorder %v3985_v12, %v4027_v16  ;;  %vm1030_vm13 = vcmp.eq.s32.totalorder %v4067_v49, %v4027_v16  ;;  %v5999_v57 = vmov 0  ;;  %v6072_v38 = vld [vmem:[#allocation15_spill] sm:$0xff] }
 0x17a   : > { %vm4161_vm2 = vmor %vm423_vm11, %vm583_vm15  ;;  %vm1032_vm8 = vcmp.eq.s32.totalorder %v942_v41, %v4027_v16 }
 0x17b   : > { %vm648_vm7 = vmor %vm424_vm1, %vm584_vm3  ;;  %vm807_vm3 = vcmp.eq.s32.totalorder %v3930_v5, %v4022_v51 }
 0x17c   : > { %vm646_vm9 = vmor %vm422_vm6, %vm582_vm0  ;;  %vm421_vm0 = vcmp.eq.s32.totalorder %v3718_v34, %v4022_v51 }
 0x17d   : > { %vm872_vm12 = vmor %vm648_vm7, %vm808_vm4  ;;  %vm1031_vm4 = vcmp.eq.s32.totalorder %v942_v41, %v4022_v51  ;;  %vm805_vm7 = vcmp.eq.s32.totalorder %v3985_v12, %v4022_v51  ;;  %v6026_v12 = vmov 0 }
 0x17e   : > { %3220 = vmatmul.msk.bf16.gmra.mxu0 %vm3219_vm14, %v3486_v13  ;;  %vm581_vm14 = vcmp.eq.s32.totalorder %v3844_v60, %v4022_v51  ;;  %vm1096_vm15 = vmor %vm872_vm12, %vm1032_vm8  ;;  %vm1029_vm8 = vcmp.eq.s32.totalorder %v4067_v49, %v4022_v51  ;;  %v5979_v49 = vmov 0 }
 0x17f   : > { %768 = vperm.xlu2 %3403, %v3674_v23   ;;  %3250 = vmatmul.msk.bf16.gmra.mxu1 %vm5900_vm10, %v1216_v32  ;;  %vm870_vm11 = vmor %vm646_vm9, %vm806_vm5  ;;  %v1160_v59 = vsel %vm1096_vm15, 1.0, %v3485_v28  ;;  %vm585_vm15 = vcmp.eq.s32.totalorder %v3849_v3, %v4022_v51  ;;  %v6008_v32 = vmov 0 }
 0x180   : > { %v4181_v35 = vpop.permute.xlu2 %962  ;;  %vm1094_vm1 = vmor %vm870_vm11, %vm1030_vm13  ;;  %vm586_vm11 = vcmp.eq.s32.totalorder %v3849_v3, %v4027_v16  ;;  %v5951_v3 = vmov 0 }
 0x181   : > { %3405 = vset.pattern.permute.xlu1 %v5923_v43  ;;  %v4152_v58 = vpop.permute.xlu1 %947  ;;  %vm645_vm6 = vmor %vm421_vm0, %vm581_vm14  ;;  %vm426_vm0 = vcmp.eq.s32.totalorder %v3755_v45, %v4027_v16 }
 0x182   : > { %1019 = vperm.xlu1 %3405, %v3707_v31   ;;  %v4174_v31 = vpop.permute.xlu0 %959  ;;  %vm871_vm9 = vmor %vm4161_vm2, %vm807_vm3  ;;  %vm588_vm2 = vcmp.eq.s32.totalorder %v3853_v55, %v4027_v16  ;;  %vm425_vm3 = vcmp.eq.s32.totalorder %v3755_v45, %v4022_v51  ;;  %v5953_v45 = vmov 0 }
 0x183   : > { %vm1095_vm5 = vmor %vm871_vm9, %vm1031_vm4  ;;  %vm428_vm4 = vcmp.eq.s32.totalorder %v3753_v44, %v4027_v16 }
 0x184   : > { %vm869_vm12 = vmor %vm645_vm6, %vm805_vm7 }
 0x185   : > { %vm1093_vm13 = vmor %vm869_vm12, %vm1029_vm8  ;;  %vm1036_vm8 = vcmp.eq.s32.totalorder %v4152_v58, %v4027_v16  ;;  %vm590_vm12 = vcmp.eq.s32.totalorder %v3830_v56, %v4027_v16 }
 0x186   : > { %vm3221_vm14 = vmpackc.low %vm1095_vm5, %vm1093_vm13  ;;  %vm810_vm5 = vcmp.eq.s32.totalorder %v3990_v2, %v4027_v16 }
 0x187   : > { %3407 = vset.pattern.permute.xlu2 %v5923_v43  ;;  %vm4221_vm6 = vmor %vm425_vm3, %vm585_vm15  ;;  %vm589_vm15 = vcmp.eq.s32.totalorder %v3830_v56, %v4022_v51 }
 0x188   : > { %992 = vperm.xlu2 %3407, %v3674_v23   ;;  %v1158_v23 = vsel %vm1094_vm1, 1.0, %v3485_v28  ;;  %vm812_vm1 = vcmp.eq.s32.totalorder %v4009_v30, %v4027_v16  ;;  %v5952_v3 = vsel %vm4221_vm6, 4294967295, %v5951_v3  ;;  %vm650_vm7 = vmor %vm426_vm0, %vm586_vm11  ;;  %vm587_vm11 = vcmp.eq.s32.totalorder %v3853_v55, %v4022_v51 }
 0x189   : > { %v1218_v34 = vpack.c.bf16 %v1160_v59, %v1158_v23  ;;  %vm652_vm9 = vmor %vm428_vm4, %vm588_vm2  ;;  %vm430_vm2 = vcmp.eq.s32.totalorder %v3728_v36, %v4027_v16  ;;  %vm1035_vm6 = vcmp.eq.s32.totalorder %v4152_v58, %v4022_v51  ;;  %v5955_v55 = vmov 0  ;;  %v6012_v59 = vld [vmem:[#allocation12_spill] sm:$0xff] }
 0x18a   : > { %3406 = vset.pattern.permute.xlu1 %v5925_v9  ;;  %v4190_v43 = vpop.permute.xlu1 %753  ;;  %v4200_v60 = vpop.permute.xlu0 %965  ;;  %vm876_vm13 = vmor %vm652_vm9, %vm812_vm1  ;;  %vm429_vm1 = vcmp.eq.s32.totalorder %v3728_v36, %v4022_v51  ;;  %vm427_vm9 = vcmp.eq.s32.totalorder %v3753_v44, %v4022_v51 }
 0x18b   : > { %771 = vperm.xlu1 %3406, %v3671_v22   ;;  %v4209_v22 = vpop.permute.xlu2 %971  ;;  %vm1100_vm3 = vmor %vm876_vm13, %vm1036_vm8  ;;  %vm591_vm8 = vcmp.eq.s32.totalorder %v3860_v33, %v4022_v51 }
 0x18c   : > { %vm874_vm4 = vmor %vm650_vm7, %vm810_vm5  ;;  %vm809_vm5 = vcmp.eq.s32.totalorder %v3990_v2, %v4022_v51  ;;  %v1164_v44 = vsel %vm1100_vm3, 1.0, %v3485_v28 }
 0x18d   : > { %vm4253_vm0 = vmor %vm429_vm1, %vm589_vm15  ;;  %vm5957_vm15 = vcmp.eq.s32.totalorder %v4009_v30, %v4022_v51  ;;  %vm5960_vm1 = vnez %v5952_v3  ;;  %v6044_v30 = vmov 0 }
 0x18e   : > { %3222 = vmatmul.msk.bf16.gmra.mxu0 %vm3221_vm14, %v3486_v13  ;;  %vm1034_vm14 = vcmp.eq.s32.totalorder %v4102_v24, %v4027_v16  ;;  %v5956_v55 = vsel %vm4253_vm0, 4294967295, %v5955_v55  ;;  %vm651_vm7 = vmor %vm427_vm9, %vm587_vm11  ;;  %vm622_vm0 = vcmp.eq.s32.totalorder %v3907_v7, %v4027_v16 }
 0x18f   : > { %3251 = vmatmul.msk.bf16.gmra.mxu1 %vm5900_vm10, %v1218_v34  ;;  %vm4245_vm10 = vmor %vm430_vm2, %vm590_vm12  ;;  %vm431_vm12 = vcmp.eq.s32.totalorder %v3764_v48, %v4022_v51  ;;  %v6080_v34 = vmov 0 }
 0x190   : > { %v5954_v45 = vsel %vm4245_vm10, 4294967295, %v5953_v45  ;;  %vm1098_vm13 = vmor %vm874_vm4, %vm1034_vm14  ;;  %vm1033_vm14 = vcmp.eq.s32.totalorder %v4102_v24, %v4022_v51  ;;  %vm592_vm4 = vcmp.eq.s32.totalorder %v3860_v33, %v4027_v16 }
 0x191   : > { %vm875_vm2 = vmor %vm651_vm7, %vm5957_vm15  ;;  %v1162_v2 = vsel %vm1098_vm13, 1.0, %v3485_v28  ;;  %vm621_vm7 = vcmp.eq.s32.totalorder %v3907_v7, %v4022_v51 }
 0x192   : > { %v4211_v9 = vpop.permute.xlu1 %756  ;;  %v4259_v36 = vpop.permute.xlu0 %738  ;;  %vm4271_vm11 = vmor %vm431_vm12, %vm591_vm8  ;;  %v1220_v21 = vpack.c.bf16 %v1164_v44, %v1162_v2  ;;  %vm432_vm8 = vcmp.eq.s32.totalorder %v3764_v48, %v4027_v16  ;;  %vm5961_vm12 = vcmask 785408   ;;  %v5962_v48 = vmov 0 }
 0x193   : > { %v999_v5 = vpop.permute.xlu2 %998  ;;  %vm1099_vm3 = vmor %vm875_vm2, %vm1035_vm6  ;;  %vm814_vm6 = vcmp.eq.s32.totalorder %v3949_v1, %v4027_v16  ;;  %vm813_vm2 = vcmp.eq.s32.totalorder %v3949_v1, %v4022_v51  ;;  %v5967_v1 = vmov 0 }
 0x194   : > { %vm873_vm9 = vmor %vm5960_vm1, %vm809_vm5  ;;  %vm462_vm5 = vcmp.eq.s32.totalorder %v3810_v63, %v4027_v16  ;;  %vm816_vm1 = vcmp.eq.s32.totalorder %v4011_v10, %v4027_v16 }
 0x195   : > { %vm1097_vm10 = vmor %vm873_vm9, %vm1033_vm14  ;;  %vm461_vm14 = vcmp.eq.s32.totalorder %v3810_v63, %v4022_v51  ;;  %v5970_v63 = vmov 0 }
 0x196   : > { %vm3223_vm13 = vmpackc.low %vm1099_vm3, %vm1097_vm10  ;;  %vm5964_vm10 = vnez %v5954_v45 }
 0x197   : > { %vm656_vm15 = vmor %vm432_vm8, %vm592_vm4  ;;  %vm815_vm4 = vcmp.eq.s32.totalorder %v4011_v10, %v4022_v51 }
 0x198   : > { %vm4298_vm9 = vmor %vm462_vm5, %vm622_vm0  ;;  %vm1040_vm0 = vcmp.eq.s32.totalorder %v4139_v0, %v4027_v16 }
 0x199   : > { %v5963_v48 = vsel %vm4298_vm9, 4294967295, %v5962_v48  ;;  %vm4304_vm3 = vmor %vm5964_vm10, %vm814_vm6  ;;  %vm1038_vm10 = vcmp.eq.s32.totalorder %v4114_v19, %v4027_v16  ;;  %vm463_vm9 = vcmp.eq.s32.totalorder %v3806_v62, %v4022_v51 }
 0x19a   : > { %vm4310_vm8 = vmor %vm461_vm14, %vm621_vm7  ;;  %v775_v10 = vpop.permute.xlu0 %774  ;;  %vm464_vm7 = vcmp.eq.s32.totalorder %v3806_v62, %v4027_v16  ;;  %vm623_vm14 = vcmp.eq.s32.totalorder %v3912_v6, %v4022_v51 }
 0x19b   : > { %v4266_v56 = vpop.permute.xlu1 %968  ;;  %v5968_v1 = vsel %vm4310_vm8, 4294967295, %v5967_v1  ;;  %vm880_vm6 = vmor %vm656_vm15, %vm816_vm1  ;;  %vm1037_vm8 = vcmp.eq.s32.totalorder %v4114_v19, %v4022_v51  ;;  %vm1039_vm15 = vcmp.eq.s32.totalorder %v4139_v0, %v4022_v51  ;;  %v4340_v29 = vpop.permute.xlu2 %974  ;;  %v6003_v0 = vld [vmem:[#allocation31_spill] sm:$0xff] }
 0x19c   : > { %vm4336_vm1 = vmor %vm880_vm6, %vm1040_vm0 }
 0x19d   : > { %vm4352_vm0 = vmor %vm463_vm9, %vm623_vm14  ;;  %vm1070_vm9 = vcmp.eq.s32.totalorder %v999_v5, %v4027_v16  ;;  %vm5984_vm14 = vnez %v5968_v1  ;;  %v1168_v61 = vsel %vm4336_vm1, 1.0, %v3485_v28  ;;  %vm595_vm1 = vcmp.eq.s32.totalorder %v3837_v53, %v4022_v51 }
 0x19e   : > { %3224 = vmatmul.msk.bf16.gmra.mxu0 %vm3223_vm13, %v3486_v13  ;;  %vm624_vm13 = vcmp.eq.s32.totalorder %v3912_v6, %v4027_v16  ;;  %v5976_v6 = vmov 0 }
 0x19f   : > { %3252 = vmatmul.msk.bf16.gmra.mxu1 %vm5961_vm12, %v1220_v21  ;;  %vm5969_vm12 = vnez %v5956_v55  ;;  %v5977_v6 = vsel %vm4352_vm0, 4294967295, %v5976_v6  ;;  %vm1069_vm0 = vcmp.eq.s32.totalorder %v999_v5, %v4022_v51  ;;  %v6029_v5 = vmov 0 }
 0x1a0   : > { %vm4320_vm5 = vmor %vm5969_vm12, %vm813_vm2 }
 0x1a1   : > { %v5971_v63 = vsel %vm4320_vm5, 4294967295, %v5970_v63  ;;  %vm879_vm2 = vmor %vm4271_vm11, %vm815_vm4  ;;  %vm846_vm11 = vcmp.eq.s32.totalorder %v775_v10, %v4027_v16  ;;  %vm845_vm4 = vcmp.eq.s32.totalorder %v775_v10, %v4022_v51  ;;  %v6103_v10 = vld [vmem:[#allocation13_spill] sm:$0xff] }
 0x1a2   : > { %vm4342_vm12 = vmor %vm464_vm7, %vm624_vm13  ;;  %vm5978_vm6 = vnez %v5971_v63  ;;  %vm596_vm7 = vcmp.eq.s32.totalorder %v3837_v53, %v4027_v16  ;;  %v4481_v58 = vpop.permute.xlu0 %977  ;;  %v6038_v63 = vld [vmem:[#allocation6_spill] sm:$0xff] }
 0x1a3   : > { %v5975_v39 = vsel %vm4342_vm12, 4294967295, %v5974_v39  ;;  %vm1102_vm5 = vmor %vm4304_vm3, %vm1038_vm10  ;;  %vm5983_vm3 = vnez %v5963_v48  ;;  %v4413_v19 = vpop.permute.xlu2 %783  ;;  %v6034_v48 = vmov 0 }
 0x1a4   : > { %v778_v7 = vpop.permute.xlu1 %777  ;;  %vm4358_vm13 = vmor %vm5978_vm6, %vm1037_vm8  ;;  %v1166_v42 = vsel %vm1102_vm5, 1.0, %v3485_v28  ;;  %vm436_vm8 = vcmp.eq.s32.totalorder %v3733_v37, %v4027_v16 }
 0x1a5   : > { %v5980_v49 = vsel %vm4358_vm13, 4294967295, %v5979_v49  ;;  %vm4364_vm12 = vmor %vm879_vm2, %vm1039_vm15  ;;  %vm593_vm2 = vcmp.eq.s32.totalorder %v3862_v54, %v4022_v51  ;;  %vm848_vm5 = vcmp.eq.s32.totalorder %v778_v7, %v4027_v16  ;;  %v1222_v18 = vpack.c.bf16 %v1168_v61, %v1166_v42  ;;  %v6109_v42 = vld [vmem:[#allocation33_spill] sm:$0xff] }
 0x1a6   : > { %vm910_vm10 = vmor %vm5983_vm3, %vm846_vm11  ;;  %vm5987_vm15 = vnez %v5980_v49  ;;  %vm5995_vm3 = vcmask 785408   ;;  %v6050_v49 = vld [vmem:[#allocation14_spill] sm:$0xff] }
 0x1a7   : > { %vm909_vm6 = vmor %vm5984_vm14, %vm845_vm4 }
 0x1a8   : > { %vm4377_vm13 = vmor %vm436_vm8, %vm596_vm7  ;;  %vm433_vm7 = vcmp.eq.s32.totalorder %v3762_v47, %v4022_v51 }
 0x1a9   : > { %v5986_v40 = vsel %vm4377_vm13, 4294967295, %v5985_v40  ;;  %vm4391_vm4 = vmor %vm910_vm10, %vm1070_vm9  ;;  %vm5994_vm10 = vnez %v5975_v39  ;;  %v6046_v39 = vmov 0 }
 0x1aa   : > { %vm4398_vm8 = vmor %vm909_vm6, %vm1069_vm0  ;;  %v4428_v53 = vsel %vm4391_vm4, 1.0, %v3485_v28  ;;  %v4564_v21 = vpop.permute.xlu0 %1587 }
 0x1ab   : > { %vm4404_vm14 = vmor %vm433_vm7, %vm593_vm2  ;;  %vm435_vm2 = vcmp.eq.s32.totalorder %v3733_v37, %v4022_v51  ;;  %vm5998_vm7 = vnez %v5977_v6  ;;  %v4521_v3 = vpop.permute.xlu2 %1007  ;;  %v6048_v6 = vld [vmem:[#allocation29_spill] sm:$0xff] }
 0x1ac   : > { %vm912_vm9 = vmor %vm5994_vm10, %vm848_vm5  ;;  %vm594_vm5 = vcmp.eq.s32.totalorder %v3862_v54, %v4027_v16  ;;  %vm820_vm10 = vcmp.eq.s32.totalorder %v3968_v14, %v4027_v16  ;;  %v6001_v54 = vld [vmem:[#allocation11_spill] sm:$0xff] }
 0x1ad   : > { %v1002_v26 = vpop.permute.xlu1 %1001  ;;  %vm5996_vm6 = vmpackc.low %vm4364_vm12, %vm5987_vm15  ;;  %vm465_vm15 = vcmp.eq.s32.totalorder %v6012_v59, %v4022_v51 }
 0x1ae   : > { %vm1071_vm11 = vcmp.eq.s32.totalorder %v1002_v26, %v4022_v51  ;;  %vm1072_vm13 = vcmp.eq.s32.totalorder %v1002_v26, %v4027_v16  ;;  %3226 = vmatmul.msk.bf16.gmra.mxu0 %vm5996_vm6, %v3486_v13  ;;  %vm4437_vm12 = vmor %vm435_vm2, %vm595_vm1  ;;  %vm627_vm1 = vcmp.eq.s32.totalorder %v3923_v15, %v4022_v51  ;;  %vm438_vm2 = vcmp.eq.s32.totalorder %v6001_v54, %v4027_v16 }
 0x1af   : > { %3253 = vmatmul.msk.bf16.gmra.mxu1 %vm5995_vm3, %v1222_v18  ;;  %vm1136_vm0 = vmor %vm912_vm9, %vm1072_vm13  ;;  %vm5997_vm13 = vcmp.eq.s32.totalorder %v778_v7, %v4022_v51  ;;  %v6000_v57 = vsel %vm4437_vm12, 4294967295, %v5999_v57  ;;  %vm434_vm9 = vcmp.eq.s32.totalorder %v3762_v47, %v4027_v16  ;;  %v6002_v47 = vld [vmem:[#allocation21_spill] sm:$0xff]  ;;  %v6042_v7 = vmov 0  ;;  %v6057_v18 = vld [vmem:[#allocation20_spill] sm:$0xff] }
 0x1b0   : > { %vm911_vm3 = vmor %vm5998_vm7, %vm5997_vm13  ;;  %v4435_v41 = vsel %vm1136_vm0, 1.0, %v3485_v28  ;;  %vm818_vm0 = vcmp.eq.s32.totalorder %v4019_v50, %v4027_v16  ;;  %vm1042_vm7 = vcmp.eq.s32.totalorder %v4142_v8, %v4027_v16 }
 0x1b1   : > { %v1238_v37 = vpack.c.bf16 %v4435_v41, %v4428_v53  ;;  %vm1135_vm4 = vmor %vm911_vm3, %vm1071_vm11  ;;  %vm467_vm11 = vcmp.eq.s32.totalorder %v6002_v47, %v4022_v51 }
 0x1b2   : > { %vm3241_vm6 = vmpackc.low %vm1135_vm4, %vm4398_vm8  ;;  %vm6004_vm8 = vnez %v5986_v40  ;;  %v6054_v40 = vld [vmem:[#allocation37_spill] sm:$0xff]  ;;  %v4651_v61 = vpop.permute.xlu0 %983 }
 0x1b3   : > { %vm658_vm13 = vmor %vm434_vm9, %vm594_vm5  ;;  %3242 = vmatmul.msk.bf16.vlgmr.msra.gmra.mxu3 %vm3241_vm6, %v3486_v13  ;;  %vm6007_vm5 = vcmp.eq.s32.totalorder %v3869_v46, %v4027_v16  ;;  %vm626_vm6 = vcmp.eq.s32.totalorder %v6003_v0, %v4027_v16  ;;  %v4635_v62 = vpop.permute.xlu2 %980 }
 0x1b4   : > { %vm4470_vm4 = vmor %vm6004_vm8, %vm820_vm10  ;;  %vm1044_vm8 = vcmp.eq.s32.totalorder %v4174_v31, %v4027_v16 }
 0x1b5   : > { %vm4477_vm9 = vmor %vm438_vm2, %vm6007_vm5  ;;  %vm1041_vm2 = vcmp.eq.s32.totalorder %v4142_v8, %v4022_v51  ;;  %v6019_v8 = vld [vmem:[#allocation27_spill] sm:$0xff] }
 0x1b6   : > { %v6009_v32 = vsel %vm4477_vm9, 4294967295, %v6008_v32  ;;  %vm4485_vm3 = vmor %vm467_vm11, %vm627_vm1  ;;  %vm466_vm9 = vcmp.eq.s32.totalorder %v6012_v59, %v4027_v16  ;;  %vm819_vm1 = vcmp.eq.s32.totalorder %v3968_v14, %v4022_v51  ;;  %vm6016_vm11 = vcmp.eq.s32.totalorder %v4019_v50, %v4022_v51 }
 0x1b7   : > { %v6011_v17 = vsel %vm4485_vm3, 4294967295, %v6010_v17  ;;  %vm882_vm10 = vmor %vm658_vm13, %vm818_vm0  ;;  %v781_v23 = vpop.permute.xlu1 %780  ;;  %vm6013_vm0 = vcmp.eq.s32.totalorder %v6003_v0, %v4022_v51  ;;  %v6083_v14 = vmov 0  ;;  %v6124_v0 = vld [vmem:[#allocation22_spill] sm:$0xff] }
 0x1b8   : > { %vm1106_vm5 = vmor %vm882_vm10, %vm1042_vm7  ;;  %vm1043_vm10 = vcmp.eq.s32.totalorder %v4174_v31, %v4022_v51  ;;  %v6023_v31 = vld [vmem:[#allocation10_spill] sm:$0xff] }
 0x1b9   : > { %vm4502_vm13 = vmor %vm465_vm15, %vm6013_vm0  ;;  %vm600_vm15 = vcmp.eq.s32.totalorder %v6019_v8, %v4027_v16  ;;  %v1170_v45 = vsel %vm1106_vm5, 1.0, %v3485_v28  ;;  %vm597_vm5 = vcmp.eq.s32.totalorder %v3869_v46, %v4022_v51  ;;  %v6031_v46 = vld [vmem:[#allocation24_spill] sm:$0xff] }
 0x1ba   : > { %vm881_vm7 = vmor %vm4404_vm14, %vm6016_vm11  ;;  %vm822_vm14 = vcmp.eq.s32.totalorder %v4259_v36, %v4027_v16 }
 0x1bb   : > { %vm1108_vm3 = vmor %vm4470_vm4, %vm1044_vm8  ;;  %vm6022_vm4 = vnez %v6000_v57  ;;  %vm851_vm8 = vcmp.eq.s32.totalorder %v4413_v19, %v4022_v51  ;;  %v790_v59 = vpop.permute.xlu2 %789  ;;  %v6121_v57 = vld [vmem:[#allocation23_spill] sm:$0xff] }
 0x1bc   : > { %vm4515_vm12 = vmor %vm466_vm9, %vm626_vm6  ;;  %vm440_vm6 = vcmp.eq.s32.totalorder %v6023_v31, %v4027_v16  ;;  %v1172_v55 = vsel %vm1108_vm3, 1.0, %v3485_v28 }
 0x1bd   : > { %vm4523_vm0 = vmor %vm881_vm7, %vm1041_vm2  ;;  %v1224_v2 = vpack.c.bf16 %v1172_v55, %v1170_v45  ;;  %vm6028_vm7 = vnez %v6009_v32 }
 0x1be   : > { %vm883_vm9 = vmor %vm6022_vm4, %vm819_vm1  ;;  %vm1075_vm1 = vcmp.eq.s32.totalorder %v4521_v3, %v4022_v51  ;;  %vm437_vm4 = vcmp.eq.s32.totalorder %v6001_v54, %v4022_v51  ;;  %v6067_v54 = vld [vmem:[#allocation34_spill] sm:$0xff] }
 0x1bf   : > { %vm4537_vm2 = vmor %vm883_vm9, %vm1043_vm10  ;;  %vm441_vm9 = vcmp.eq.s32.totalorder %v6038_v63, %v4022_v51 }
 0x1c0   : > { %vm4543_vm11 = vmor %vm440_vm6, %vm600_vm15  ;;  %vm849_vm15 = vcmp.eq.s32.totalorder %v781_v23, %v4022_v51  ;;  %vm850_vm6 = vcmp.eq.s32.totalorder %v781_v23, %v4027_v16  ;;  %v1005_v33 = vpop.permute.xlu1 %1004 }
 0x1c1   : > { %v6027_v12 = vsel %vm4543_vm11, 4294967295, %v6026_v12  ;;  %vm3227_vm3 = vmpackc.low %vm4537_vm2, %vm4523_vm0  ;;  %vm6032_vm0 = vcmask 785408   ;;  %vm6033_vm2 = vnez %v6011_v17  ;;  %vm442_vm11 = vcmp.eq.s32.totalorder %v6038_v63, %v4027_v16  ;;  %v6102_v63 = vld [vmem:[#allocation7_spill] sm:$0xff] }
 0x1c2   : > { %vm4555_vm10 = vmor %vm6028_vm7, %vm822_vm14  ;;  %3254 = vmatmul.msk.bf16.gmra.mxu1 %vm6032_vm0, %v1224_v2  ;;  %3228 = vmatmul.msk.bf16.gmra.mxu0 %vm3227_vm3, %v3486_v13  ;;  %vm599_vm0 = vcmp.eq.s32.totalorder %v6019_v8, %v4022_v51  ;;  %vm602_vm3 = vcmp.eq.s32.totalorder %v6031_v46, %v4027_v16  ;;  %v6077_v17 = vmov 0 }
 0x1c3   : > { %v6030_v5 = vsel %vm4555_vm10, 4294967295, %v6029_v5  ;;  %vm915_vm14 = vmor %vm6033_vm2, %vm851_vm8  ;;  %v4790_v55 = vpop.permute.xlu2 %762 }
 0x1c4   : > { %vm4570_vm7 = vmor %vm437_vm4, %vm597_vm5  ;;  %vm1073_vm5 = vcmp.eq.s32.totalorder %v1005_v33, %v4022_v51  ;;  %vm1074_vm4 = vcmp.eq.s32.totalorder %v1005_v33, %v4027_v16  ;;  %v6100_v33 = vld [vmem:[#allocation30_spill] sm:$0xff] }
 0x1c5   : > { %v6035_v48 = vsel %vm4570_vm7, 4294967295, %v6034_v48  ;;  %vm4575_vm10 = vmor %vm915_vm14, %vm1075_vm1  ;;  %vm6039_vm1 = vcmp.eq.s32.totalorder %v6031_v46, %v4022_v51 }
 0x1c6   : > { %vm913_vm8 = vmor %vm4502_vm13, %vm849_vm15  ;;  %vm439_vm13 = vcmp.eq.s32.totalorder %v6023_v31, %v4022_v51  ;;  %vm824_vm15 = vcmp.eq.s32.totalorder %v4034_v11, %v4027_v16 }
 0x1c7   : > { %vm4592_vm2 = vmor %vm441_vm9, %vm6039_vm1 }
 0x1c8   : > { %vm914_vm14 = vmor %vm4515_vm12, %vm850_vm6  ;;  %vm1046_vm12 = vcmp.eq.s32.totalorder %v4181_v35, %v4027_v16 }
 0x1c9   : > { %vm4602_vm7 = vmor %vm914_vm14, %vm1074_vm4  ;;  %vm603_vm4 = vcmp.eq.s32.totalorder %v6048_v6, %v4022_v51  ;;  %vm1048_vm14 = vcmp.eq.s32.totalorder %v4200_v60, %v4027_v16  ;;  %v4653_v4 = vpop.permute.xlu1 %759 }
 0x1ca   : > { %v6043_v7 = vsel %vm4602_vm7, 4294967295, %v6042_v7  ;;  %vm4608_vm9 = vmor %vm439_vm13, %vm599_vm0  ;;  %vm6049_vm13 = vnez %v6027_v12 }
 0x1cb   : > { %v6045_v30 = vsel %vm4608_vm9, 4294967295, %v6044_v30  ;;  %vm1137_vm6 = vmor %vm913_vm8, %vm1073_vm5  ;;  %vm821_vm9 = vcmp.eq.s32.totalorder %v4259_v36, %v4022_v51  ;;  %vm604_vm8 = vcmp.eq.s32.totalorder %v6048_v6, %v4027_v16  ;;  %vm6051_vm5 = vnez %v6030_v5  ;;  %v6055_v36 = vld [vmem:[#allocation40_spill] sm:$0xff]  ;;  %v6099_v5 = vld [vmem:[#allocation25_spill] sm:$0xff] }
 0x1cc   : > { %vm4614_vm1 = vmor %vm442_vm11, %vm602_vm3  ;;  %vm443_vm11 = vcmp.eq.s32.totalorder %v6050_v49, %v4022_v51 }
 0x1cd   : > { %v6047_v39 = vsel %vm4614_vm1, 4294967295, %v6046_v39  ;;  %vm3243_vm0 = vmpackc.low %vm4575_vm10, %vm1137_vm6  ;;  %vm825_vm6 = vcmp.eq.s32.totalorder %v6055_v36, %v4022_v51  ;;  %vm1045_vm1 = vcmp.eq.s32.totalorder %v4181_v35, %v4022_v51  ;;  %v6060_v35 = vmov 0 }
 0x1ce   : > { %vm888_vm7 = vmor %vm6049_vm13, %vm824_vm15  ;;  %3244 = vmatmul.msk.bf16.gmra.mxu3 %vm3243_vm0, %v3486_v13  ;;  %vm630_vm15 = vcmp.eq.s32.totalorder %v6054_v40, %v4027_v16  ;;  %vm444_vm13 = vcmp.eq.s32.totalorder %v6050_v49, %v4027_v16  ;;  %v6108_v49 = vld [vmem:[#allocation32_spill] sm:$0xff] }
 0x1cf   : > { %vm1110_vm3 = vmor %vm6051_vm5, %vm1046_vm12  ;;  %vm6056_vm12 = vnez %v6035_v48 }
 0x1d0   : > { %vm4637_vm10 = vmor %vm443_vm11, %vm603_vm4  ;;  %vm470_vm4 = vcmp.eq.s32.totalorder %v6057_v18, %v4027_v16  ;;  %v1174_v24 = vsel %vm1110_vm3, 1.0, %v3485_v28  ;;  %vm469_vm3 = vcmp.eq.s32.totalorder %v6057_v18, %v4022_v51  ;;  %v6111_v18 = vld [vmem:[#allocation16_spill] sm:$0xff] }
 0x1d1   : > { %vm1112_vm0 = vmor %vm888_vm7, %vm1048_vm14  ;;  %vm823_vm7 = vcmp.eq.s32.totalorder %v4034_v11, %v4022_v51  ;;  %vm826_vm14 = vcmp.eq.s32.totalorder %v6055_v36, %v4027_v16  ;;  %v787_v23 = vpop.permute.xlu1 %786  ;;  %v6110_v36 = vld [vmem:[#allocation17_spill] sm:$0xff] }
 0x1d2   : > { %vm885_vm5 = vmor %vm6056_vm12, %vm821_vm9  ;;  %vm1047_vm9 = vcmp.eq.s32.totalorder %v4200_v60, %v4022_v51  ;;  %v1176_v11 = vsel %vm1112_vm0, 1.0, %v3485_v28 }
 0x1d3   : > { %vm4657_vm11 = vmor %vm444_vm13, %vm604_vm8  ;;  %v1226_v60 = vpack.c.bf16 %v1176_v11, %v1174_v24 }
 0x1d4   : > { %vm4668_vm12 = vmor %vm470_vm4, %vm630_vm15  ;;  %vm828_vm15 = vcmp.eq.s32.totalorder %v4032_v20, %v4027_v16  ;;  %vm6066_vm4 = vnez %v6045_v30  ;;  %v6104_v30 = vmov 0 }
 0x1d5   : > { %v6061_v35 = vsel %vm4668_vm12, 4294967295, %v6060_v35  ;;  %vm4674_vm8 = vmor %vm4592_vm2, %vm825_vm6  ;;  %vm6071_vm6 = vcmask 785408  }
 0x1d6   : > { %vm4679_vm13 = vmor %vm885_vm5, %vm1045_vm1  ;;  %vm6068_vm1 = vnez %v6047_v39  ;;  %3255 = vmatmul.msk.bf16.gmra.mxu1 %vm6071_vm6, %v1226_v60  ;;  %vm6076_vm6 = vcmp.eq.s32.totalorder %v6067_v54, %v4022_v51  ;;  %v6140_v39 = vld [vmem:[#allocation35_spill] sm:$0xff] }
 0x1d7   : > { %vm887_vm12 = vmor %vm6066_vm4, %vm823_vm7  ;;  %vm1052_vm4 = vcmp.eq.s32.totalorder %v4209_v22, %v4027_v16 }
 0x1d8   : > { %vm4695_vm0 = vmor %vm6068_vm1, %vm826_vm14  ;;  %vm471_vm14 = vcmp.eq.s32.totalorder %v6072_v38, %v4022_v51  ;;  %vm6073_vm1 = vcmp.eq.s32.totalorder %v6054_v40, %v4022_v51  ;;  %v4867_v40 = vpop.permute.xlu2 %989 }
 0x1d9   : > { %vm1111_vm5 = vmor %vm887_vm12, %vm1047_vm9  ;;  %vm1049_vm12 = vcmp.eq.s32.totalorder %v4266_v56, %v4022_v51 }
 0x1da   : > { %vm3229_vm2 = vmpackc.low %vm1111_vm5, %vm4679_vm13  ;;  %vm472_vm13 = vcmp.eq.s32.totalorder %v6072_v38, %v4027_v16  ;;  %v1014_v31 = vpop.permute.xlu1 %1013 }
 0x1db   : > { %vm892_vm9 = vmor %vm4657_vm11, %vm828_vm15  ;;  %3230 = vmatmul.msk.bf16.gmra.mxu0 %vm3229_vm2, %v3486_v13  ;;  %vm6079_vm11 = vcmp.eq.s32.totalorder %v4032_v20, %v4022_v51  ;;  %vm6082_vm2 = vcmp.eq.s32.totalorder %v6067_v54, %v4027_v16  ;;  %v1011_v20 = vpop.permute.xlu0 %1010 }
 0x1dc   : > { %vm4718_vm7 = vmor %vm469_vm3, %vm6073_vm1 }
 0x1dd   : > { %vm4727_vm5 = vmor %vm471_vm14, %vm6076_vm6  ;;  %vm854_vm14 = vcmp.eq.s32.totalorder %v787_v23, %v4027_v16  ;;  %vm1051_vm6 = vcmp.eq.s32.totalorder %v4209_v22, %v4022_v51 }
 0x1de   : > { %v6078_v17 = vsel %vm4727_vm5, 4294967295, %v6077_v17  ;;  %vm891_vm3 = vmor %vm4637_vm10, %vm6079_vm11  ;;  %vm856_vm5 = vcmp.eq.s32.totalorder %v790_v59, %v4027_v16 }
 0x1df   : > { %vm4736_vm15 = vmor %vm892_vm9, %vm1052_vm4  ;;  %vm1050_vm4 = vcmp.eq.s32.totalorder %v4266_v56, %v4027_v16  ;;  %vm1078_vm9 = vcmp.eq.s32.totalorder %v1011_v20, %v4027_v16 }
 0x1e0   : > { %v6081_v34 = vsel %vm4736_vm15, 4294967295, %v6080_v34  ;;  %vm4743_vm1 = vmor %vm472_vm13, %vm6082_vm2  ;;  %vm6087_vm13 = vnez %v6061_v35  ;;  %vm853_vm15 = vcmp.eq.s32.totalorder %v787_v23, %v4022_v51  ;;  %v4933_v23 = vpop.permute.xlu2 %795 }
 0x1e1   : > { %v6084_v14 = vsel %vm4743_vm1, 4294967295, %v6083_v14  ;;  %vm4752_vm10 = vmor %vm4674_vm8, %vm1049_vm12  ;;  %vm855_vm12 = vcmp.eq.s32.totalorder %v790_v59, %v4022_v51  ;;  %v6127_v59 = vmov 0 }
 0x1e2   : > { %vm918_vm11 = vmor %vm6087_vm13, %vm854_vm14  ;;  %v4857_v6 = vpop.permute.xlu1 %986 }
 0x1e3   : > { %vm4761_vm2 = vmor %vm918_vm11, %vm1078_vm9  ;;  %vm1079_vm11 = vcmp.eq.s32.totalorder %v1014_v31, %v4022_v51  ;;  %v4883_v24 = vpop.permute.xlu0 %765 }
 0x1e4   : > { %vm4766_vm1 = vmor %vm891_vm3, %vm1051_vm6  ;;  %vm6092_vm3 = vnez %v6078_v17  ;;  %v4808_v46 = vsel %vm4761_vm2, 1.0, %v3485_v28  ;;  %vm447_vm2 = vcmp.eq.s32.totalorder %v6102_v63, %v4022_v51 }
 0x1e5   : > { %vm1114_vm8 = vmor %vm4695_vm0, %vm1050_vm4  ;;  %vm1077_vm0 = vcmp.eq.s32.totalorder %v1011_v20, %v4022_v51  ;;  %vm6095_vm4 = vnez %v6084_v14 }
 0x1e6   : > { %vm3231_vm14 = vmpackc.low %vm4766_vm1, %vm4752_vm10  ;;  %v1178_v56 = vsel %vm1114_vm8, 1.0, %v3485_v28  ;;  %vm6098_vm8 = vnez %v6081_v34  ;;  %vm446_vm10 = vcmp.eq.s32.totalorder %v6103_v10, %v4027_v16  ;;  %v6153_v34 = vld [vmem:[#allocation18_spill] sm:$0xff] }
 0x1e7   : > { %vm917_vm9 = vmor %vm4718_vm7, %vm853_vm15  ;;  %vm1080_vm7 = vcmp.eq.s32.totalorder %v1014_v31, %v4027_v16  ;;  %v1180_v12 = vsel %vm6098_vm8, 1.0, %v3485_v28 }
 0x1e8   : > { %vm4783_vm6 = vmor %vm6092_vm3, %vm855_vm12  ;;  %v1228_v2 = vpack.c.bf16 %v1180_v12, %v1178_v56  ;;  %vm607_vm3 = vcmp.eq.s32.totalorder %v6099_v5, %v4022_v51 }
 0x1e9   : > { %vm920_vm13 = vmor %vm6095_vm4, %vm856_vm5  ;;  %vm608_vm5 = vcmp.eq.s32.totalorder %v6099_v5, %v4027_v16 }
 0x1ea   : > { %vm4794_vm15 = vmor %vm917_vm9, %vm1077_vm0  ;;  %vm605_vm0 = vcmp.eq.s32.totalorder %v6100_v33, %v4022_v51 }
 0x1eb   : > { %vm1144_vm12 = vmor %vm920_vm13, %vm1080_vm7  ;;  %vm6101_vm13 = vcmask 785408   ;;  %vm448_vm7 = vcmp.eq.s32.totalorder %v6102_v63, %v4027_v16  ;;  %3232 = vmatmul.msk.bf16.gmra.mxu0 %vm3231_vm14, %v3486_v13  ;;  %v4901_v11 = vpop.permute.xlu1 %792  ;;  %v1415_v32 = vpop.f32.mrf.mxu0 }
 0x1ec   : > { %v4811_v48 = vsel %vm1144_vm12, 1.0, %v3485_v28  ;;  %vm1143_vm9 = vmor %vm4783_vm6, %vm1079_vm11  ;;  %3256 = vmatmul.msk.bf16.gmra.mxu1 %vm6101_vm13, %v1228_v2  ;;  %vm606_vm6 = vcmp.eq.s32.totalorder %v6100_v33, %v4027_v16  ;;  %vm445_vm11 = vcmp.eq.s32.totalorder %v6103_v10, %v4022_v51  ;;  %vm832_vm12 = vcmp.eq.s32.totalorder %v4190_v43, %v4027_v16  ;;  %v1504_v60 = vpop.f32.mrf.mxu1  ;;  %v4948_v14 = vpop.permute.xlu0 %1016 }
 0x1ed   : > { %vm3245_vm4 = vmpackc.low %vm1143_vm9, %vm4794_vm15  ;;  %v1242_v1 = vpack.c.bf16 %v4811_v48, %v4808_v46  ;;  %vm830_vm15 = vcmp.eq.s32.totalorder %v4078_v52, %v4027_v16  ;;  %vm1054_vm9 = vcmp.eq.s32.totalorder %v4340_v29, %v4027_v16  ;;  %vm1056_vm13 = vcmp.eq.s32.totalorder %v4481_v58, %v4027_v16 }
 0x1ee   : > { %3246 = vmatmul.msk.bf16.gmra.mxu3 %vm3245_vm4, %v3486_v13  ;;  %vm4842_vm8 = vmor %vm447_vm2, %vm607_vm3  ;;  %vm610_vm4 = vcmp.eq.s32.totalorder %v6108_v49, %v4027_v16  ;;  %v4961_v8 = vadd.f32 %v1504_v60, %v1415_v32 }
 0x1ef   : > { %v6105_v30 = vsel %vm4842_vm8, 4294967295, %v6104_v30  ;;  %vm672_vm1 = vmor %vm448_vm7, %vm608_vm5  ;;  %vm450_vm7 = vcmp.eq.s32.totalorder %v6110_v36, %v4027_v16 }
 0x1f0   : > { %vm4851_vm14 = vmor %vm445_vm11, %vm605_vm0  ;;  %vm612_vm0 = vcmp.eq.s32.totalorder %v6109_v42, %v4027_v16  ;;  %v1590_v44 = vadd.f32 %v4564_v21, %v4961_v8 }
 0x1f1   : > { %vm670_vm3 = vmor %vm446_vm10, %vm606_vm6  ;;  %vm829_vm6 = vcmp.eq.s32.totalorder %v4078_v52, %v4022_v51  ;;  %vm452_vm10 = vcmp.eq.s32.totalorder %v6111_v18, %v4027_v16  ;;  %v6116_v52 = vld [vmem:[#allocation38_spill] sm:$0xff] }
 0x1f2   : > { %vm894_vm5 = vmor %vm670_vm3, %vm830_vm15  ;;  %vm831_vm15 = vcmp.eq.s32.totalorder %v4190_v43, %v4022_v51  ;;  %v1622_v2 = vmax.f32 %v1590_v44, 0.0 }
 0x1f3   : > { %vm896_vm2 = vmor %vm672_vm1, %vm832_vm12  ;;  %vm1053_vm12 = vcmp.eq.s32.totalorder %v4340_v29, %v4022_v51  ;;  %v1417_v45 = vpop.f32.mrf.mxu0 }
 0x1f4   : > { %vm1118_vm11 = vmor %vm894_vm5, %vm1054_vm9  ;;  %vm1055_vm9 = vcmp.eq.s32.totalorder %v4481_v58, %v4022_v51  ;;  %v4971_v22 = vpop.permute.xlu1 %1019  ;;  %v1506_v56 = vpop.f32.mrf.mxu1 }
 0x1f5   : > { %vm4877_vm3 = vmor %vm450_vm7, %vm610_vm4  ;;  %vm633_vm4 = vcmp.eq.s32.totalorder %v6116_v52, %v4022_v51  ;;  %v1182_v29 = vsel %vm1118_vm11, 1.0, %v3485_v28  ;;  %vm475_vm11 = vcmp.eq.s32.totalorder %v6124_v0, %v4022_v51  ;;  %v4979_v31 = vadd.f32 %v1506_v56, %v1417_v45 }
 0x1f6   : > { %vm1120_vm1 = vmor %vm896_vm2, %vm1056_vm13  ;;  %vm6117_vm13 = vnez %v6105_v30  ;;  %v6138_v30 = vld [vmem:[#allocation26_spill] sm:$0xff] }
 0x1f7   : > { %vm4885_vm8 = vmor %vm452_vm10, %vm612_vm0  ;;  %v1184_v43 = vsel %vm1120_vm1, 1.0, %v3485_v28  ;;  %vm635_vm0 = vcmp.eq.s32.totalorder %v6118_v27, %v4022_v51  ;;  %vm611_vm10 = vcmp.eq.s32.totalorder %v6109_v42, %v4022_v51  ;;  %v1591_v12 = vadd.f32 %v4564_v21, %v4979_v31 }
 0x1f8   : > { %vm893_vm5 = vmor %vm4851_vm14, %vm829_vm6  ;;  %vm473_vm14 = vcmp.eq.s32.totalorder %v6121_v57, %v4022_v51  ;;  %v1230_v17 = vpack.c.bf16 %v1184_v43, %v1182_v29  ;;  %v5041_v29 = vpop.permute.xlu2 %768 }
 0x1f9   : > { %vm895_vm2 = vmor %vm6117_vm13, %vm831_vm15  ;;  %vm834_vm15 = vcmp.eq.s32.totalorder %v4211_v9, %v4027_v16  ;;  %vm1058_vm13 = vcmp.eq.s32.totalorder %v4635_v62, %v4027_v16  ;;  %v1623_v5 = vmax.f32 %v1591_v12, 0.0 }
 0x1fa   : > { %vm4903_vm7 = vmor %vm893_vm5, %vm1053_vm12  ;;  %vm836_vm12 = vcmp.eq.s32.totalorder %v4653_v4, %v4027_v16  ;;  %vm451_vm5 = vcmp.eq.s32.totalorder %v6111_v18, %v4022_v51 }
 0x1fb   : > { %vm4909_vm6 = vmor %vm895_vm2, %vm1055_vm9  ;;  %vm6129_vm2 = vcmask 785408   ;;  %v1420_v10 = vpop.f32.mrf.mxu0 }
 0x1fc   : > { %vm4919_vm1 = vmor %vm473_vm14, %vm633_vm4  ;;  %3257 = vmatmul.msk.bf16.gmra.mxu1 %vm6129_vm2, %v1230_v17  ;;  %vm609_vm2 = vcmp.eq.s32.totalorder %v6108_v49, %v4022_v51  ;;  %v1509_v33 = vpop.f32.mrf.mxu1  ;;  %v6148_v17 = vld [vmem:[#allocation9_spill] sm:$0xff] }
 0x1fd   : > { %vm4925_vm9 = vmor %vm475_vm11, %vm635_vm0  ;;  %vm857_vm11 = vcmp.eq.s32.totalorder %v4901_v11, %v4022_v51  ;;  %v5015_v49 = vadd.f32 %v1509_v33, %v1420_v10 }
 0x1fe   : > { %v6128_v59 = vsel %vm4925_vm9, 4294967295, %v6127_v59  ;;  %vm3233_vm4 = vmpackc.low %vm4909_vm6, %vm4903_vm7  ;;  %vm1060_vm9 = vcmp.eq.s32.totalorder %v4651_v61, %v4027_v16 }
 0x1ff   : > { %vm898_vm0 = vmor %vm4877_vm3, %vm834_vm15  ;;  %3234 = vmatmul.msk.bf16.gmra.mxu0 %vm3233_vm4, %v3486_v13  ;;  %vm859_vm3 = vcmp.eq.s32.totalorder %v4933_v23, %v4022_v51  ;;  %vm1081_vm15 = vcmp.eq.s32.totalorder %v4948_v14, %v4022_v51  ;;  %v1592_v43 = vadd.f32 %v4564_v21, %v5015_v49 }
 0x200   : > { %vm4942_vm14 = vmor %vm451_vm5, %vm611_vm10 }
 0x201   : > { %vm900_vm7 = vmor %vm4885_vm8, %vm836_vm12  ;;  %vm6136_vm8 = vnez %v6128_v59  ;;  %v1624_v60 = vmax.f32 %v1592_v43, 0.0  ;;  %v996_v59 = vpop.permute.xlu0 %995 }
 0x202   : > { %vm4955_vm6 = vmor %vm898_vm0, %vm1058_vm13  ;;  %vm1083_vm13 = vcmp.eq.s32.totalorder %v4971_v22, %v4022_v51 }
 0x203   : > { %vm921_vm10 = vmor %vm4919_vm1, %vm857_vm11  ;;  %vm835_vm1 = vcmp.eq.s32.totalorder %v4653_v4, %v4022_v51  ;;  %vm449_vm11 = vcmp.eq.s32.totalorder %v6110_v36, %v4022_v51  ;;  %v1186_v63 = vsel %vm4955_vm6, 1.0, %v3485_v28  ;;  %v6143_v36 = vld [vmem:[#allocation19_spill] sm:$0xff]  ;;  %v1422_v26 = vpop.f32.mrf.mxu0 }
 0x204   : > { %vm4967_vm5 = vmor %vm900_vm7, %vm1060_vm9  ;;  %vm1059_vm7 = vcmp.eq.s32.totalorder %v4651_v61, %v4022_v51  ;;  %v1654_v61 = vpack.c.bf16 %v1623_v5, %v1622_v2  ;;  %v1511_v18 = vpop.f32.mrf.mxu1 }
 0x205   : > { %vm923_vm12 = vmor %vm6136_vm8, %vm859_vm3  ;;  %v1188_v4 = vsel %vm4967_vm5, 1.0, %v3485_v28  ;;  %vm1057_vm8 = vcmp.eq.s32.totalorder %v4635_v62, %v4022_v51  ;;  %v6139_v62 = vld [vmem:[#allocation8_spill] sm:$0xff]  ;;  %v5033_v35 = vadd.f32 %v1511_v18, %v1422_v26 }
 0x206   : > { %vm1145_vm4 = vmor %vm921_vm10, %vm1081_vm15  ;;  %vm833_vm10 = vcmp.eq.s32.totalorder %v4211_v9, %v4022_v51  ;;  %v1232_v9 = vpack.c.bf16 %v1188_v4, %v1186_v63  ;;  %1694 = vrot.lane.b32.xlu1 %v1654_v61, %s3487_s22  ;;  %vm453_vm6 = vcmp.eq.s32.totalorder %v6139_v62, %v4022_v51 }
 0x207   : > { %vm1147_vm9 = vmor %vm923_vm12, %vm1083_vm13  ;;  %v1593_v58 = vadd.f32 %v4564_v21, %v5033_v35 }
 0x208   : > { %vm3247_vm0 = vmpackc.low %vm1147_vm9, %vm1145_vm4  ;;  %vm613_vm4 = vcmp.eq.s32.totalorder %v6138_v30, %v4022_v51  ;;  %vm614_vm9 = vcmp.eq.s32.totalorder %v6138_v30, %v4027_v16 }
 0x209   : > { %vm899_vm3 = vmor %vm4942_vm14, %vm835_vm1  ;;  %3248 = vmatmul.msk.bf16.gmra.mxu3 %vm3247_vm0, %v3486_v13  ;;  %vm6137_vm1 = vcmask 785408   ;;  %vm454_vm0 = vcmp.eq.s32.totalorder %v6139_v62, %v4027_v16  ;;  %v1625_v54 = vmax.f32 %v1593_v58, 0.0 }
 0x20a   : > { %vm673_vm15 = vmor %vm449_vm11, %vm609_vm2  ;;  %vm616_vm2 = vcmp.eq.s32.totalorder %v6140_v39, %v4027_v16 }
 0x20b   : > { %vm1123_vm12 = vmor %vm899_vm3, %vm1059_vm7  ;;  %vm838_vm7 = vcmp.eq.s32.totalorder %v4790_v55, %v4027_v16  ;;  %vm456_vm3 = vcmp.eq.s32.totalorder %v6143_v36, %v4027_v16  ;;  %v1655_v53 = vpack.c.bf16 %v1625_v54, %v1624_v60 }
 0x20c   : > { %vm897_vm14 = vmor %vm673_vm15, %vm833_vm10  ;;  %3258 = vmatmul.msk.bf16.gmra.mxu1 %vm6137_vm1, %v1232_v9  ;;  %vm1062_vm15 = vcmp.eq.s32.totalorder %v4857_v6, %v4027_v16  ;;  %v1514_v38 = vpop.f32.mrf.mxu1 }
 0x20d   : > { %vm1121_vm5 = vmor %vm897_vm14, %vm1057_vm8  ;;  %1696 = vrot.lane.b32.xlu2 %v1655_v53, %s3487_s22 }
 0x20e   : > { %vm3235_vm13 = vmpackc.low %vm1123_vm12, %vm1121_vm5  ;;  %vm840_vm12 = vcmp.eq.s32.totalorder %v4883_v24, %v4027_v16  ;;  %vm1064_vm5 = vcmp.eq.s32.totalorder %v4867_v40, %v4027_v16 }
 0x20f   : > { %3236 = vmatmul.msk.bf16.gmra.mxu0 %vm3235_vm13, %v3486_v13  ;;  %vm5019_vm11 = vmor %vm453_vm6, %vm613_vm4  ;;  %vm615_vm13 = vcmp.eq.s32.totalorder %v6140_v39, %v4022_v51  ;;  %vm455_vm6 = vcmp.eq.s32.totalorder %v6143_v36, %v4022_v51 }
 0x210   : > { %vm678_vm10 = vmor %vm454_vm0, %vm614_vm9  ;;  %vm837_vm9 = vcmp.eq.s32.totalorder %v4790_v55, %v4022_v51  ;;  %vm1061_vm0 = vcmp.eq.s32.totalorder %v4857_v6, %v4022_v51 }
 0x211   : > { %vm680_vm8 = vmor %vm456_vm3, %vm616_vm2 }
 0x212   : > { %vm902_vm14 = vmor %vm678_vm10, %vm838_vm7  ;;  %vm6144_vm7 = vcmask 785408   ;;  %vm839_vm10 = vcmp.eq.s32.totalorder %v4883_v24, %v4022_v51  ;;  %v1425_v24 = vpop.f32.mrf.mxu0 }
 0x213   : > { %vm1126_vm1 = vmor %vm902_vm14, %vm1062_vm15 }
 0x214   : > { %vm904_vm4 = vmor %vm680_vm8, %vm840_vm12  ;;  %v1190_v55 = vsel %vm1126_vm1, 1.0, %v3485_v28  ;;  %vm1063_vm8 = vcmp.eq.s32.totalorder %v4867_v40, %v4022_v51  ;;  %v772_v40 = vpop.permute.xlu1 %771  ;;  %v1516_v50 = vpop.f32.mrf.mxu1 }
 0x215   : > { %vm1128_vm2 = vmor %vm904_vm4, %vm1064_vm5  ;;  %vm628_vm5 = vcmp.eq.s32.totalorder %v3923_v15, %v4027_v16  ;;  %vm459_vm4 = vcmp.eq.s32.totalorder %v6148_v17, %v4022_v51 }
 0x216   : > { %vm679_vm3 = vmor %vm455_vm6, %vm615_vm13  ;;  %v1192_v6 = vsel %vm1128_vm2, 1.0, %v3485_v28  ;;  %vm1076_vm6 = vcmp.eq.s32.totalorder %v4521_v3, %v4027_v16  ;;  %v5096_v3 = vadd.f32 %v1514_v38, %v1425_v24 }
 0x217   : > { %vm901_vm15 = vmor %vm5019_vm11, %vm837_vm9  ;;  %v1234_v32 = vpack.c.bf16 %v1192_v6, %v1190_v55  ;;  %vm852_vm11 = vcmp.eq.s32.totalorder %v4413_v19, %v4027_v16  ;;  %vm468_vm9 = vcmp.eq.s32.totalorder %v6002_v47, %v4027_v16  ;;  %v6152_v19 = vld [vmem:[#allocation36_spill] sm:$0xff]  ;;  %v993_v47 = vpop.permute.xlu2 %992 }
 0x218   : > { %vm5061_vm12 = vmor %vm901_vm15, %vm1061_vm0  ;;  %v1594_v12 = vadd.f32 %v4564_v21, %v5096_v3 }
 0x219   : > { %3261 = vmatmul.msk.bf16.vlgmr.msrb.gmra.mxu3 %vm6144_vm7, %v1238_v37  ;;  %v6147_v37 = vld [vmem:[#allocation28_spill] sm:$0xff]  ;;  %vm903_vm13 = vmor %vm679_vm3, %vm839_vm10 }
 0x21a   : > { %vm619_vm14 = vcmp.eq.s32.totalorder %v6147_v37, %v4022_v51  ;;  %vm1127_vm1 = vmor %vm903_vm13, %vm1063_vm8  ;;  %vm844_vm8 = vcmp.eq.s32.totalorder %v772_v40, %v4027_v16  ;;  %vm618_vm13 = vcmp.eq.s32.totalorder %v6152_v19, %v4027_v16  ;;  %v1427_v56 = vpop.f32.mrf.mxu0  ;;  %v1626_v5 = vmax.f32 %v1594_v12, 0.0 }
 0x21b   : > { %vm3237_vm2 = vmpackc.low %vm1127_vm1, %vm5061_vm12  ;;  %vm460_vm12 = vcmp.eq.s32.totalorder %v6148_v17, %v4027_v16  ;;  %v5109_v44 = vadd.f32 %v1516_v50, %v1427_v56  ;;  %v3308_v17 = vld [vmem:[%s5856_s3 + $0x8] sm:$0xff] }
 0x21c   : > { %vm6149_vm0 = vmmov %vm6144_vm7  ;;  %vm620_vm7 = vcmp.eq.s32.totalorder %v6147_v37, %v4027_v16  ;;  %v1519_v63 = vpop.f32.mrf.mxu1  ;;  %1793 = vmatpush.bf16.msra.mxu2 %v3308_v17  ;;  %3323 = vmatpush.bf16.msra.mxu3 %v3308_v17 }
 0x21d   : > { %3259 = vmatmul.msk.bf16.gmra.mxu1 %vm6149_vm0, %v1234_v32  ;;  %vm692_vm3 = vmor %vm468_vm9, %vm628_vm5  ;;  %v1595_v4 = vadd.f32 %v4564_v21, %v5109_v44 }
 0x21e   : > { %vm5086_vm10 = vmor %vm459_vm4, %vm619_vm14  ;;  %vm842_vm14 = vcmp.eq.s32.totalorder %v5041_v29, %v4027_v16  ;;  %vm6154_vm4 = vnez %v6043_v7 }
 0x21f   : > { %3238 = vmatmul.msk.bf16.gmra.mxu0 %vm3237_vm2, %v3486_v13  ;;  %vm916_vm15 = vmor %vm692_vm3, %vm852_vm11  ;;  %vm458_vm11 = vcmp.eq.s32.totalorder %v6153_v34, %v4027_v16  ;;  %v1202_v20 = vsel %vm6154_vm4, 1.0, %v3485_v28  ;;  %vm1068_vm3 = vcmp.eq.s32.totalorder %v996_v59, %v4027_v16  ;;  %v1627_v33 = vmax.f32 %v1595_v4, 0.0 }
 0x220   : > { %vm1140_vm1 = vmor %vm916_vm15, %vm1076_vm6  ;;  %vm1066_vm6 = vcmp.eq.s32.totalorder %v993_v47, %v4027_v16  ;;  %vm1065_vm4 = vcmp.eq.s32.totalorder %v993_v47, %v4022_v51 }
 0x221   : > { %vm684_vm5 = vmor %vm460_vm12, %vm620_vm7  ;;  %v1204_v45 = vsel %vm1140_vm1, 1.0, %v3485_v28  ;;  %vm843_vm7 = vcmp.eq.s32.totalorder %v772_v40, %v4022_v51  ;;  %v1656_v10 = vpack.c.bf16 %v1627_v33, %v1626_v5 }
 0x222   : > { %vm908_vm9 = vmor %vm684_vm5, %vm844_vm8  ;;  %v1240_v7 = vpack.c.bf16 %v1204_v45, %v1202_v20  ;;  %vm617_vm8 = vcmp.eq.s32.totalorder %v6152_v19, %v4022_v51  ;;  %vm841_vm5 = vcmp.eq.s32.totalorder %v5041_v29, %v4022_v51  ;;  %v1430_v9 = vpop.f32.mrf.mxu0 }
 0x223   : > { %vm682_vm2 = vmor %vm458_vm11, %vm618_vm13  ;;  %vm457_vm13 = vcmp.eq.s32.totalorder %v6153_v34, %v4022_v51  ;;  %1698 = vrot.lane.b32.xlu0 %v1656_v10, %s3487_s22  ;;  %v5131_v62 = vadd.f32 %v1519_v63, %v1430_v9 }
 0x224   : > { %vm906_vm0 = vmor %vm682_vm2, %vm842_vm14  ;;  %vm6155_vm14 = vcmask 785408   ;;  %v1521_v39 = vpop.f32.mrf.mxu1 }
 0x225   : > { %vm1132_vm15 = vmor %vm908_vm9, %vm1068_vm3  ;;  %vm1067_vm9 = vcmp.eq.s32.totalorder %v996_v59, %v4022_v51  ;;  %v1596_v18 = vadd.f32 %v4564_v21, %v5131_v62  ;;  %v3307_v59 = vld [vmem:[%s5856_s3] sm:$0xff] }
 0x226   : > { %vm1130_vm12 = vmor %vm906_vm0, %vm1066_vm6  ;;  %v1196_v2 = vsel %vm1132_vm15, 1.0, %v3485_v28  ;;  %vm634_vm15 = vcmp.eq.s32.totalorder %v6116_v52, %v4027_v16  ;;  %1794 = vmatpush.bf16.msra.mxu2 %v3307_v59  ;;  %3324 = vmatpush.bf16.msra.mxu3 %v3307_v59 }
 0x227   : > { %vm907_vm1 = vmor %vm5086_vm10, %vm843_vm7  ;;  %v1194_v61 = vsel %vm1130_vm12, 1.0, %v3485_v28  ;;  %vm474_vm12 = vcmp.eq.s32.totalorder %v6121_v57, %v4027_v16 }
 0x228   : > { %vm681_vm11 = vmor %vm457_vm13, %vm617_vm8  ;;  %v1236_v30 = vpack.c.bf16 %v1196_v2, %v1194_v61  ;;  %vm636_vm8 = vcmp.eq.s32.totalorder %v6118_v27, %v4027_v16  ;;  %vm860_vm13 = vcmp.eq.s32.totalorder %v4933_v23, %v4027_v16 }
 0x229   : > { %3262 = vmatmul.msk.bf16.gmra.mxu3 %vm6155_vm14, %v1240_v7  ;;  %vm1131_vm2 = vmor %vm907_vm1, %vm1067_vm9  ;;  %vm476_vm1 = vcmp.eq.s32.totalorder %v6124_v0, %v4027_v16 }
 0x22a   : > { %vm905_vm10 = vmor %vm681_vm11, %vm841_vm5  ;;  %v1432_v42 = vpop.f32.mrf.mxu0  ;;  %vm858_vm5 = vcmp.eq.s32.totalorder %v4901_v11, %v4027_v16 }
 0x22b   : > { %vm1129_vm6 = vmor %vm905_vm10, %vm1065_vm4  ;;  %v5133_v36 = vadd.f32 %v1521_v39, %v1432_v42  ;;  %vm1084_vm4 = vcmp.eq.s32.totalorder %v4971_v22, %v4027_v16  ;;  %vm1082_vm10 = vcmp.eq.s32.totalorder %v4948_v14, %v4027_v16 }
 0x22c   : > { %vm3239_vm0 = vmpackc.low %vm1131_vm2, %vm1129_vm6  ;;  %v1524_v29 = vpop.f32.mrf.mxu1 }
 0x22d   : > { %vm6156_vm3 = vmmov %vm6155_vm14  ;;  %v1597_v26 = vadd.f32 %v4564_v21, %v5133_v36 }
 0x22e   : > { %3260 = vmatmul.msk.bf16.gmra.mxu1 %vm6156_vm3, %v1236_v30  ;;  %vm6157_vm7 = vmmov %vm6156_vm3 }
 0x22f   : > { %3240 = vmatmul.msk.bf16.gmra.mxu0 %vm3239_vm0, %v3486_v13  ;;  %v1628_v13 = vmax.f32 %v1596_v18, 0.0  ;;  %v1629_v43 = vmax.f32 %v1597_v26, 0.0  ;;  %vm698_vm14 = vmor %vm474_vm12, %vm634_vm15  ;;  %vm2136_vm15 = vcmask 130048   ;;  %vm2985_vm12 = vcmask 195712  }
 0x230   : > { %vm700_vm11 = vmor %vm476_vm1, %vm636_vm8  ;;  %vm2981_vm8 = vcmask 130112   ;;  %vm2993_vm1 = vcmask 326912  }
 0x231   : > { %v1657_v58 = vpack.c.bf16 %v1629_v43, %v1628_v13  ;;  %vm924_vm9 = vmor %vm700_vm11, %vm860_vm13  ;;  %vm2989_vm13 = vcmask 261312   ;;  %vm3005_vm11 = vcmask 523712  }
 0x232   : > { %v1435_v46 = vpop.f32.mrf.mxu0  ;;  %vm922_vm2 = vmor %vm698_vm14, %vm858_vm5  ;;  %vm2997_vm14 = vcmask 392512   ;;  %vm3001_vm5 = vcmask 458112  }
 0x233   : > { %1700 = vrot.lane.b32.xlu1 %v1657_v58, %s3487_s22  ;;  %vm1148_vm6 = vmor %vm924_vm9, %vm1084_vm4  ;;  %v5160_v48 = vadd.f32 %v1524_v29, %v1435_v46  ;;  %vm3009_vm4 = vcmask 589312   ;;  %vm3013_vm9 = vcmask 654912  }
 0x234   : > { %vm1146_vm0 = vmor %vm922_vm2, %vm1082_vm10  ;;  %v1526_v52 = vpop.f32.mrf.mxu1  ;;  %vm3017_vm2 = vcmask 720512   ;;  %vm3021_vm10 = vcmask 786112  }
 0x235   : > { %v1210_v11 = vsel %vm1146_vm0, 1.0, %v3485_v28  ;;  %v1598_v0 = vadd.f32 %v4564_v21, %v5160_v48  ;;  %vm3029_vm0 = vcmask 917312  }
 0x236   : > { %v1475_v53 = vpop.f32.mrf.mxu3 }
 0x237   : > { %v1630_v16 = vmax.f32 %v1598_v0, 0.0 }
 0x239   : > { %3263 = vmatmul.msk.bf16.gmra.mxu3 %vm6157_vm7, %v1242_v1  ;;  %v1212_v1 = vsel %vm1148_vm6, 1.0, %v3485_v28  ;;  %vm1738_vm7 = vcmask 261120   ;;  %vm3025_vm6 = vcmask 851712  }
 0x23a   : > { %v1437_v27 = vpop.f32.mrf.mxu0  ;;  %v1244_v23 = vpack.c.bf16 %v1212_v1, %v1210_v11 }
 0x23b   : > { %v5164_v57 = vadd.f32 %v1526_v52, %v1437_v27 }
 0x23d   : > { %v1599_v22 = vadd.f32 %v4564_v21, %v5164_v57 }
 0x23e   : > { %v1477_v34 = vpop.f32.mrf.mxu3 }
 0x23f   : > { %v1631_v14 = vmax.f32 %v1599_v22, 0.0  ;;  %v1529_v55 = vpop.f32.mrf.mxu1 }
 0x241   : > { %v1658_v60 = vpack.c.bf16 %v1631_v14, %v1630_v16 }
 0x242   : > { %v1440_v54 = vpop.f32.mrf.mxu0 }
 0x243   : > { %1702 = vrot.lane.b32.xlu2 %v1658_v60, %s3487_s22  ;;  %v5172_v6 = vadd.f32 %v1529_v55, %v1440_v54 }
 0x245   : > { %v1600_v37 = vadd.f32 %v4564_v21, %v5172_v6 }
 0x247   : > { %v1531_v28 = vpop.f32.mrf.mxu1  ;;  %v1632_v32 = vmax.f32 %v1600_v37, 0.0 }
 0x249   : > { %3264 = vmatmul.msk.bf16.gmra.mxu3 %vm6156_vm3, %v1244_v23  ;;  %vm3033_vm3 = vcmask 982912  }
 0x24a   : > { %v1442_v38 = vpop.f32.mrf.mxu0 }
 0x24b   : > { %v5174_v41 = vadd.f32 %v1531_v28, %v1442_v38 }
 0x24d   : > { %v1601_v24 = vadd.f32 %v4564_v21, %v5174_v41 }
 0x24f   : > { %v1633_v40 = vmax.f32 %v1601_v24, 0.0 }
 0x251   : > { %v1659_v19 = vpack.c.bf16 %v1633_v40, %v1632_v32  ;;  %v1480_v7 = vpop.f32.mrf.mxu3 }
 0x253   : > { %v1534_v15 = vpop.f32.mrf.mxu1  ;;  %1704 = vrot.lane.b32.xlu0 %v1659_v19, %s3487_s22 }
 0x258   : > { %v1445_v47 = vpop.f32.mrf.mxu0 }
 0x259   : > { %v5187_v20 = vadd.f32 %v1534_v15, %v1445_v47  ;;  %v1482_v61 = vpop.f32.mrf.mxu3 }
 0x25b   : > { %v1536_v50 = vpop.f32.mrf.mxu1  ;;  %v1602_v12 = vadd.f32 %v4564_v21, %v5187_v20 }
 0x25d   : > { %v1634_v2 = vmax.f32 %v1602_v12, 0.0 }
 0x260   : > { %v1447_v56 = vpop.f32.mrf.mxu0 }
 0x261   : > { %v5189_v45 = vadd.f32 %v1536_v50, %v1447_v56 }
 0x263   : > { %v1603_v4 = vadd.f32 %v4564_v21, %v5189_v45 }
 0x265   : > { %v1635_v5 = vmax.f32 %v1603_v4, 0.0 }
 0x267   : > { %v1660_v33 = vpack.c.bf16 %v1635_v5, %v1634_v2  ;;  %v1697_v29 = vpop.permute.xlu2 %1696 }
 0x268   : > { %v1450_v10 = vpop.f32.mrf.mxu0 }
 0x269   : > { %1706 = vrot.lane.b32.xlu1 %v1660_v33, %s3487_s22  ;;  %v1539_v63 = vpop.f32.mrf.mxu1 }
 0x26a   : > { %v5235_v56 = vadd.f32 %v1539_v63, %v1450_v10 }
 0x270   : > { %v1452_v39 = vpop.f32.mrf.mxu0 }
 0x271   : > { %v1485_v9 = vpop.f32.mrf.mxu3  ;;  %v1541_v30 = vpop.f32.mrf.mxu1 }
 0x272   : > { %v5231_v59 = vadd.f32 %v1541_v30, %v1452_v39 }
 0x274   : > { %v1605_v5 = vadd.f32 %v4564_v21, %v5231_v59 }
 0x276   : > { %v1637_v39 = vmax.f32 %v1605_v5, 0.0 }
 0x278   : > { %v1695_v42 = vpop.permute.xlu1 %1694 }
 0x279   : > { %3273 = vmatmul.msk.bf16.vlgmr.msra.gmra.mxu2 %vm1738_vm7, %v1695_v42  ;;  %v1487_v18 = vpop.f32.mrf.mxu3  ;;  %v5197_v26 = vpop.f32.mrf.mxu1 }
 0x27c   : > { %v5199_v13 = vpop.f32.mrf.mxu0 }
 0x281   : > { %v1546_v58 = vpop.f32.mrf.mxu1 }
 0x284   : > { %v1457_v46 = vpop.f32.mrf.mxu0 }
 0x289   : > { %3274 = vmatmul.msk.bf16.gmra.mxu2 %vm1738_vm7, %v1697_v29  ;;  %v5206_v52 = vpop.f32.mrf.mxu1 }
 0x28c   : > { %v5201_v43 = vpop.f32.mrf.mxu3  ;;  %v5208_v27 = vpop.f32.mrf.mxu0 }
 0x291   : > { %v5213_v22 = vpop.f32.mrf.mxu1 }
 0x294   : > { %v5204_v1 = vpop.f32.mrf.mxu3  ;;  %v5219_v60 = vpop.f32.mrf.mxu0 }
 0x295   : > { %v1699_v0 = vpop.permute.xlu0 %1698 }
 0x299   : > { %3275 = vmatmul.msk.bf16.gmra.mxu2 %vm1738_vm7, %v1699_v0 }
 0x29a   : > { %v1554_v24 = vpop.f32.mrf.mxu1 }
 0x29c   : > { %v1564_v11 = vpop.f32.mrf.mxu3  ;;  %v1465_v32 = vpop.f32.mrf.mxu0 }
 0x29d   : > { %v5210_v23 = vadd.f32 %v1564_v11, %v1475_v53  ;;  %v1703_v42 = vpop.permute.xlu2 %1702  ;;  %v5244_v29 = vadd.f32 %v1554_v24, %v1465_v32  ;;  %v5264_v32 = vadd.f32 %v5197_v26, %v5199_v13 }
 0x29f   : > { %v1614_v55 = vadd.f32 %v4564_v21, %v5210_v23 }
 0x2a1   : > { %v1646_v28 = vmax.f32 %v1614_v55, 0.0 }
 0x2a2   : > { %v1556_v50 = vpop.f32.mrf.mxu1 }
 0x2a4   : > { %v1566_v16 = vpop.f32.mrf.mxu3 }
 0x2a5   : > { %v5215_v14 = vadd.f32 %v1566_v16, %v1477_v34  ;;  %v1701_v40 = vpop.permute.xlu1 %1700 }
 0x2a7   : > { %v1615_v54 = vadd.f32 %v4564_v21, %v5215_v14 }
 0x2a9   : > { %v1647_v38 = vmax.f32 %v1615_v54, 0.0  ;;  %3276 = vmatmul.msk.bf16.gmra.mxu2 %vm1738_vm7, %v1701_v40 }
 0x2ab   : > { %v1666_v37 = vpack.c.bf16 %v1647_v38, %v1646_v28  ;;  %v1559_v11 = vpop.f32.mrf.mxu1  ;;  %v1610_v28 = vadd.f32 %v4564_v21, %v5244_v29 }
 0x2ac   : > { %v1569_v53 = vpop.f32.mrf.mxu3 }
 0x2ad   : > { %1718 = vrot.lane.b32.xlu1 %v1666_v37, %s3487_s22  ;;  %v5224_v17 = vadd.f32 %v1569_v53, %v1480_v7  ;;  %v1467_v7 = vpop.f32.mrf.mxu0  ;;  %v5258_v37 = vadd.f32 %v1546_v58, %v1457_v46  ;;  %v1642_v40 = vmax.f32 %v1610_v28, 0.0  ;;  %v1606_v58 = vadd.f32 %v4564_v21, %v5264_v32 }
 0x2ae   : > { %v5242_v30 = vadd.f32 %v1556_v50, %v1467_v7 }
 0x2af   : > { %v1616_v47 = vadd.f32 %v4564_v21, %v5224_v17  ;;  %v1607_v50 = vadd.f32 %v4564_v21, %v5258_v37 }
 0x2b0   : > { %v1611_v0 = vadd.f32 %v4564_v21, %v5242_v30 }
 0x2b1   : > { %v1648_v12 = vmax.f32 %v1616_v47, 0.0  ;;  %v1639_v13 = vmax.f32 %v1607_v50, 0.0 }
 0x2b2   : > { %v1643_v53 = vmax.f32 %v1611_v0, 0.0 }
 0x2b4   : > { %v1571_v15 = vpop.f32.mrf.mxu3 }
 0x2b5   : > { %v5227_v19 = vadd.f32 %v1571_v15, %v1482_v61  ;;  %v1604_v61 = vadd.f32 %v4564_v21, %v5235_v56  ;;  %v1470_v55 = vpop.f32.mrf.mxu0 }
 0x2b7   : > { %v1617_v34 = vadd.f32 %v4564_v21, %v5227_v19  ;;  %v1636_v10 = vmax.f32 %v1604_v61, 0.0 }
 0x2b9   : > { %v1649_v4 = vmax.f32 %v1617_v34, 0.0  ;;  %3277 = vmatmul.msk.bf16.gmra.mxu2 %vm1738_vm7, %v1703_v42  ;;  %v1661_v16 = vpack.c.bf16 %v1637_v39, %v1636_v10  ;;  %v1664_v34 = vpack.c.bf16 %v1643_v53, %v1642_v40 }
 0x2bb   : > { %v1667_v2 = vpack.c.bf16 %v1649_v4, %v1648_v12  ;;  %v1561_v12 = vpop.f32.mrf.mxu1 }
 0x2bc   : > { %v1574_v33 = vpop.f32.mrf.mxu3 }
 0x2bd   : > { %1720 = vrot.lane.b32.xlu2 %v1667_v2, %s3487_s22  ;;  %v5246_v63 = vadd.f32 %v1574_v33, %v1485_v9  ;;  %v1472_v46 = vpop.f32.mrf.mxu0  ;;  %v5274_v2 = vadd.f32 %v1559_v11, %v1470_v55  ;;  %v1638_v33 = vmax.f32 %v1606_v58, 0.0  ;;  %v5292_v11 = vadd.f32 %v5213_v22, %v5219_v60 }
 0x2be   : > { %v5272_v26 = vadd.f32 %v1561_v12, %v1472_v46 }
 0x2bf   : > { %v1618_v9 = vadd.f32 %v4564_v21, %v5246_v63  ;;  %v1662_v61 = vpack.c.bf16 %v1639_v13, %v1638_v33  ;;  %v1609_v53 = vadd.f32 %v4564_v21, %v5292_v11 }
 0x2c0   : > { %v1613_v39 = vadd.f32 %v4564_v21, %v5272_v26 }
 0x2c1   : > { %v1650_v15 = vmax.f32 %v1618_v9, 0.0  ;;  %v1641_v60 = vmax.f32 %v1609_v53, 0.0 }
 0x2c2   : > { %v1645_v55 = vmax.f32 %v1613_v39, 0.0 }
 0x2c4   : > { %v1576_v54 = vpop.f32.mrf.mxu3 }
 0x2c5   : > { %v5253_v38 = vadd.f32 %v1576_v54, %v1487_v18  ;;  %1708 = vrot.lane.b32.xlu2 %v1661_v16, %s3487_s22  ;;  %v1705_v7 = vpop.permute.xlu0 %1704  ;;  %v5298_v54 = vadd.f32 %v5206_v52, %v5208_v27  ;;  %v5311_v27 = vld [vmem:[%s5857_s4] ss:$0 sm:$0xff] }
 0x2c7   : > { %v1619_v24 = vadd.f32 %v4564_v21, %v5253_v38  ;;  %v1608_v22 = vadd.f32 %v4564_v21, %v5298_v54 }
 0x2c9   : > { %v1651_v47 = vmax.f32 %v1619_v24, 0.0  ;;  %3278 = vmatmul.msk.bf16.gmra.mxu2 %vm1738_vm7, %v1705_v7 }
 0x2cb   : > { %v1668_v18 = vpack.c.bf16 %v1651_v47, %v1650_v15  ;;  %v1640_v47 = vmax.f32 %v1608_v22, 0.0 }
 0x2cc   : > { %v1579_v4 = vpop.f32.mrf.mxu3 }
 0x2cd   : > { %1722 = vrot.lane.b32.xlu0 %v1668_v18, %s3487_s22  ;;  %1714 = vrot.lane.b32.xlu2 %v1664_v34, %s3487_s22  ;;  %v5277_v5 = vadd.f32 %v1579_v4, %v5201_v43  ;;  %v1612_v43 = vadd.f32 %v4564_v21, %v5274_v2  ;;  %v1663_v52 = vpack.c.bf16 %v1641_v60, %v1640_v47  ;;  %v5317_v34 = vld [vmem:[%s5858_s5] ss:$0 sm:$0xff] }
 0x2cf   : > { %v1620_v10 = vadd.f32 %v4564_v21, %v5277_v5  ;;  %v1644_v9 = vmax.f32 %v1612_v43, 0.0 }
 0x2d1   : > { %v1652_v28 = vmax.f32 %v1620_v10, 0.0  ;;  %v1665_v40 = vpack.c.bf16 %v1645_v55, %v1644_v9 }
 0x2d4   : > { %v1581_v42 = vpop.f32.mrf.mxu3 }
 0x2d5   : > { %v5285_v0 = vadd.f32 %v1581_v42, %v5204_v1  ;;  %1710 = vrot.lane.b32.xlu0 %v1662_v61, %s3487_s22 }
 0x2d7   : > { %v1621_v16 = vadd.f32 %v4564_v21, %v5285_v0 }
 0x2d9   : > { %v1653_v1 = vmax.f32 %v1621_v16, 0.0 }
 0x2db   : > { %v1669_v24 = vpack.c.bf16 %v1653_v1, %v1652_v28  ;;  %v1707_v15 = vpop.permute.xlu1 %1706 }
 0x2dc   : > { %3279 = vmatmul.msk.bf16.gmra.mxu2 %vm1738_vm7, %v1707_v15 }
 0x2dd   : > { %1724 = vrot.lane.b32.xlu1 %v1669_v24, %s3487_s22  ;;  %1716 = vrot.lane.b32.xlu0 %v1665_v40, %s3487_s22 }
 0x2e5   : > { %1712 = vrot.lane.b32.xlu1 %v1663_v52, %s3487_s22 }
 0x2fc   : > { %v1796_v18 = vpop.f32.mrf.mxu2 }
 0x2fd   : > { %v1797_v21 = vadd.f32 %v5311_v27, %v1796_v18 }
 0x2ff   : > { %v1876_v50 = vmax.f32 %v1797_v21, 0.0 }
 0x301   : > { %v1976_v12 = vmul.f32 %v5317_v34, %v1876_v50 }
 0x303   : > { %2040 = vrot.lane.b32.xlu2 %v1976_v12, %s3484_s21 }
 0x304   : > { %v1798_v4 = vpop.f32.mrf.mxu2 }
 0x305   : > { %v1799_v58 = vadd.f32 %v5311_v27, %v1798_v4 }
 0x307   : > { %v1877_v46 = vmax.f32 %v1799_v58, 0.0 }
 0x309   : > { %v1977_v13 = vmul.f32 %v5317_v34, %v1877_v46 }
 0x30b   : > { %2042 = vrot.lane.b32.xlu0 %v1977_v13, %s3484_s21 }
 0x30c   : > { %v1801_v7 = vpop.f32.mrf.mxu2 }
 0x30d   : > { %v1802_v33 = vadd.f32 %v5311_v27, %v1801_v7 }
 0x30f   : > { %v1878_v61 = vmax.f32 %v1802_v33, 0.0 }
 0x311   : > { %v1978_v42 = vmul.f32 %v5317_v34, %v1878_v61 }
 0x313   : > { %2044 = vrot.lane.b32.xlu1 %v1978_v42, %s3484_s21 }
 0x314   : > { %v1803_v10 = vpop.f32.mrf.mxu2 }
 0x315   : > { %v1804_v43 = vadd.f32 %v5311_v27, %v1803_v10 }
 0x317   : > { %v1721_v39 = vpop.permute.xlu2 %1720  ;;  %v1879_v16 = vmax.f32 %v1804_v43, 0.0 }
 0x318   : > { %3286 = vmatmul.msk.bf16.vlgmr.msra.gmra.mxu3 %vm1738_vm7, %v1721_v39 }
 0x319   : > { %v1979_v28 = vmul.f32 %v5317_v34, %v1879_v16 }
 0x31b   : > { %2046 = vrot.lane.b32.xlu2 %v1979_v28, %s3484_s21 }
 0x31c   : > { %v1806_v1 = vpop.f32.mrf.mxu2 }
 0x31d   : > { %v1807_v9 = vadd.f32 %v5311_v27, %v1806_v1 }
 0x31f   : > { %v1709_v55 = vpop.permute.xlu2 %1708  ;;  %v1880_v53 = vmax.f32 %v1807_v9, 0.0  ;;  %v1719_v33 = vpop.permute.xlu1 %1718 }
 0x320   : > { %3280 = vmatmul.msk.bf16.gmra.mxu2 %vm1738_vm7, %v1709_v55 }
 0x321   : > { %v1980_v24 = vmul.f32 %v5317_v34, %v1880_v53 }
 0x323   : > { %2048 = vrot.lane.b32.xlu0 %v1980_v24, %s3484_s21 }
 0x324   : > { %v1808_v40 = vpop.f32.mrf.mxu2 }
 0x325   : > { %v1809_v22 = vadd.f32 %v5311_v27, %v1808_v40 }
 0x327   : > { %v1881_v60 = vmax.f32 %v1809_v22, 0.0 }
 0x329   : > { %v1981_v15 = vmul.f32 %v5317_v34, %v1881_v60 }
 0x32b   : > { %2050 = vrot.lane.b32.xlu1 %v1981_v15, %s3484_s21 }
 0x32c   : > { %v1811_v47 = vpop.f32.mrf.mxu2 }
 0x32d   : > { %v1812_v52 = vadd.f32 %v5311_v27, %v1811_v47 }
 0x32f   : > { %v1882_v18 = vmax.f32 %v1812_v52, 0.0 }
 0x331   : > { %v1982_v21 = vmul.f32 %v5317_v34, %v1882_v18  ;;  %v1715_v18 = vpop.permute.xlu2 %1714 }
 0x333   : > { %2052 = vrot.lane.b32.xlu2 %v1982_v21, %s3484_s21 }
 0x334   : > { %v1813_v50 = vpop.f32.mrf.mxu2 }
 0x335   : > { %v1814_v12 = vadd.f32 %v5311_v27, %v1813_v50 }
 0x337   : > { %v1883_v4 = vmax.f32 %v1814_v12, 0.0 }
 0x339   : > { %v1983_v46 = vmul.f32 %v5317_v34, %v1883_v4 }
 0x33b   : > { %2054 = vrot.lane.b32.xlu0 %v1983_v46, %s3484_s21  ;;  %v1908_v46 = vmul.f32 0.5, %v4961_v8 }
 0x33c   : > { %v1816_v13 = vpop.f32.mrf.mxu2 }
 0x33d   : > { %v1817_v7 = vadd.f32 %v5311_v27, %v1816_v13 }
 0x33f   : > { %v1723_v58 = vpop.permute.xlu0 %1722  ;;  %v1884_v61 = vmax.f32 %v1817_v7, 0.0  ;;  %v1940_v7 = vmul.f32 %v1908_v46, %v4961_v8 }
 0x340   : > { %3287 = vmatmul.msk.bf16.gmra.mxu3 %vm1738_vm7, %v1723_v58 }
 0x341   : > { %v1984_v42 = vmul.f32 %v5317_v34, %v1884_v61 }
 0x343   : > { %2056 = vrot.lane.b32.xlu1 %v1984_v42, %s3484_s21 }
 0x344   : > { %v1818_v10 = vpop.f32.mrf.mxu2 }
 0x345   : > { %v1819_v43 = vadd.f32 %v5311_v27, %v1818_v10 }
 0x347   : > { %v1711_v39 = vpop.permute.xlu0 %1710  ;;  %v1885_v16 = vmax.f32 %v1819_v43, 0.0 }
 0x348   : > { %3281 = vmatmul.msk.bf16.gmra.mxu2 %vm1738_vm7, %v1711_v39 }
 0x349   : > { %v1985_v28 = vmul.f32 %v5317_v34, %v1885_v16 }
 0x34b   : > { %2058 = vrot.lane.b32.xlu2 %v1985_v28, %s3484_s21 }
 0x34c   : > { %v1821_v1 = vpop.f32.mrf.mxu2 }
 0x34d   : > { %v1822_v9 = vadd.f32 %v5311_v27, %v1821_v1 }
 0x34f   : > { %v1725_v55 = vpop.permute.xlu1 %1724  ;;  %v1886_v53 = vmax.f32 %v1822_v9, 0.0  ;;  %v1717_v58 = vpop.permute.xlu0 %1716 }
 0x350   : > { %3288 = vmatmul.msk.bf16.gmra.mxu3 %vm1738_vm7, %v1725_v55 }
 0x351   : > { %v1986_v40 = vmul.f32 %v5317_v34, %v1886_v53 }
 0x353   : > { %2060 = vrot.lane.b32.xlu0 %v1986_v40, %s3484_s21 }
 0x354   : > { %v1823_v22 = vpop.f32.mrf.mxu2 }
 0x355   : > { %v1824_v60 = vadd.f32 %v5311_v27, %v1823_v22 }
 0x357   : > { %v1713_v24 = vpop.permute.xlu1 %1712  ;;  %v1887_v15 = vmax.f32 %v1824_v60, 0.0 }
 0x358   : > { %3282 = vmatmul.msk.bf16.gmra.mxu2 %vm1738_vm7, %v1713_v24 }
 0x359   : > { %v1987_v47 = vmul.f32 %v5317_v34, %v1887_v15 }
 0x35b   : > { %2062 = vrot.lane.b32.xlu1 %v1987_v47, %s3484_s21 }
 0x35d   : > { %v2041_v13 = vpop.permute.xlu2 %2040 }
 0x35e   : > { %v2137_v61 = vsel %vm2136_vm15, %v1940_v7, %v2041_v13 }
 0x35f   : > { %v1826_v52 = vpop.f32.mrf.mxu2  ;;  %v2169_v10 = vsel %vm1738_vm7, %v2137_v61, 0.0 }
 0x360   : > { %v1827_v24 = vadd.f32 %v5311_v27, %v1826_v52 }
 0x362   : > { %v1888_v60 = vmax.f32 %v1827_v24, 0.0  ;;  %v1910_v24 = vmul.f32 0.5, %v5015_v49 }
 0x364   : > { %v1988_v15 = vmul.f32 %v5317_v34, %v1888_v60 }
 0x367   : > { %v1828_v21 = vpop.f32.mrf.mxu2 }
 0x368   : > { %3283 = vmatmul.msk.bf16.gmra.mxu2 %vm1738_vm7, %v1715_v18  ;;  %v1829_v50 = vadd.f32 %v5311_v27, %v1828_v21 }
 0x36a   : > { %v1889_v12 = vmax.f32 %v1829_v50, 0.0 }
 0x36c   : > { %v1989_v4 = vmul.f32 %v5317_v34, %v1889_v12 }
 0x36e   : > { %2066 = vrot.lane.b32.xlu0 %v1989_v4, %s3484_s21  ;;  %v1909_v4 = vmul.f32 0.5, %v4979_v31 }
 0x370   : > { %v1941_v61 = vmul.f32 %v1909_v4, %v4979_v31 }
 0x375   : > { %v2047_v60 = vpop.permute.xlu2 %2046 }
 0x378   : > { %3284 = vmatmul.msk.bf16.gmra.mxu2 %vm1738_vm7, %v1717_v58 }
 0x37d   : > { %v2043_v7 = vpop.permute.xlu0 %2042 }
 0x388   : > { %3285 = vmatmul.msk.bf16.gmra.mxu2 %vm1738_vm7, %v1719_v33 }
 0x398   : > { %2170 = vadd.xlane.f32.xlu0 %v2169_v10 }
 0x39b   : > { %v1861_v39 = vpop.f32.mrf.mxu3 }
 0x39c   : > { %v1862_v42 = vadd.f32 %v5311_v27, %v1861_v39 }
 0x39e   : > { %v1902_v43 = vmax.f32 %v1862_v42, 0.0  ;;  %v2138_v42 = vsel %vm2136_vm15, %v1941_v61, %v2043_v7 }
 0x3a0   : > { %v2002_v16 = vmul.f32 %v5317_v34, %v1902_v43 }
 0x3a2   : > { %2092 = vrot.lane.b32.xlu2 %v2002_v16, %s3484_s21  ;;  %v2172_v16 = vsel %vm1738_vm7, %v2138_v42, 0.0 }
 0x3a3   : > { %v1831_v33 = vpop.f32.mrf.mxu2  ;;  %v1863_v55 = vpop.f32.mrf.mxu3 }
 0x3a4   : > { %v1832_v28 = vadd.f32 %v5311_v27, %v1831_v33  ;;  %v1864_v1 = vadd.f32 %v5311_v27, %v1863_v55 }
 0x3a6   : > { %v1890_v9 = vmax.f32 %v1832_v28, 0.0  ;;  %v1903_v53 = vmax.f32 %v1864_v1, 0.0 }
 0x3a8   : > { %v1990_v40 = vmul.f32 %v5317_v34, %v1890_v9  ;;  %v2003_v22 = vmul.f32 %v5317_v34, %v1903_v53  ;;  %v2049_v53 = vpop.permute.xlu0 %2048 }
 0x3aa   : > { %2094 = vrot.lane.b32.xlu2 %v2003_v22, %s3484_s21  ;;  %2068 = vrot.lane.b32.xlu1 %v1990_v40, %s3484_s21  ;;  %v1911_v40 = vmul.f32 0.5, %v5033_v35  ;;  %v2045_v22 = vpop.permute.xlu1 %2044 }
 0x3ab   : > { %v1833_v47 = vpop.f32.mrf.mxu2 }
 0x3ac   : > { %v1834_v52 = vadd.f32 %v5311_v27, %v1833_v47 }
 0x3ae   : > { %v1891_v46 = vmax.f32 %v1834_v52, 0.0 }
 0x3b0   : > { %v1991_v10 = vmul.f32 %v5317_v34, %v1891_v46  ;;  %v5404_v52 = vpop.permute.xlu0 %2054 }
 0x3b2   : > { %2064 = vrot.lane.b32.xlu2 %v1988_v15, %s3484_s21  ;;  %v1942_v15 = vmul.f32 %v1910_v24, %v5015_v49  ;;  %v2051_v46 = vpop.permute.xlu1 %2050 }
 0x3c3   : > { %v1866_v18 = vpop.f32.mrf.mxu3 }
 0x3c4   : > { %v1867_v21 = vadd.f32 %v5311_v27, %v1866_v18  ;;  %v1943_v18 = vmul.f32 %v1911_v40, %v5033_v35 }
 0x3c6   : > { %v1904_v50 = vmax.f32 %v1867_v21, 0.0  ;;  %v2139_v21 = vsel %vm2136_vm15, %v1942_v15, %v2045_v22 }
 0x3c7   : > { %v2175_v4 = vsel %vm1738_vm7, %v2139_v21, 0.0 }
 0x3c8   : > { %v2004_v12 = vmul.f32 %v5317_v34, %v1904_v50  ;;  %v2140_v50 = vsel %vm2136_vm15, %v1943_v18, %v2047_v60 }
 0x3ca   : > { %2096 = vrot.lane.b32.xlu2 %v2004_v12, %s3484_s21  ;;  %v1913_v12 = vmul.f32 0.5, %v5109_v44 }
 0x3cb   : > { %v1836_v58 = vpop.f32.mrf.mxu2 }
 0x3cc   : > { %v1837_v13 = vadd.f32 %v5311_v27, %v1836_v58  ;;  %v2178_v58 = vsel %vm1738_vm7, %v2140_v50, 0.0 }
 0x3ce   : > { %v1892_v39 = vmax.f32 %v1837_v13, 0.0  ;;  %v1945_v13 = vmul.f32 %v1913_v12, %v5109_v44  ;;  %v1914_v12 = vmul.f32 0.5, %v5131_v62 }
 0x3d0   : > { %v1992_v43 = vmul.f32 %v5317_v34, %v1892_v39  ;;  %v2142_v61 = vsel %vm2136_vm15, %v1945_v13, %v2051_v46  ;;  %v5411_v39 = vpop.permute.xlu0 %2060 }
 0x3d1   : > { %v2184_v42 = vsel %vm1738_vm7, %v2142_v61, 0.0 }
 0x3d2   : > { %2070 = vrot.lane.b32.xlu2 %v1991_v10, %s3484_s21  ;;  %2072 = vrot.lane.b32.xlu0 %v1992_v43, %s3484_s21 }
 0x3d3   : > { %v1838_v33 = vpop.f32.mrf.mxu2 }
 0x3d4   : > { %2173 = vadd.xlane.f32.xlu1 %v2172_v16  ;;  %v1839_v55 = vadd.f32 %v5311_v27, %v1838_v33  ;;  %v1912_v33 = vmul.f32 0.5, %v5096_v3 }
 0x3d6   : > { %v1893_v28 = vmax.f32 %v1839_v55, 0.0  ;;  %v1944_v40 = vmul.f32 %v1912_v33, %v5096_v3  ;;  %v1946_v33 = vmul.f32 %v1914_v12, %v5131_v62 }
 0x3d8   : > { %v1993_v1 = vmul.f32 %v5317_v34, %v1893_v28 }
 0x3db   : > { %v1841_v9 = vpop.f32.mrf.mxu2 }
 0x3dc   : > { %v1842_v43 = vadd.f32 %v5311_v27, %v1841_v9  ;;  %v2141_v9 = vsel %vm2136_vm15, %v1944_v40, %v2049_v53 }
 0x3dd   : > { %v2181_v61 = vsel %vm1738_vm7, %v2141_v9, 0.0 }
 0x3de   : > { %v1894_v55 = vmax.f32 %v1842_v43, 0.0 }
 0x3e0   : > { %v5414_v10 = vpop.permute.xlu0 %2066  ;;  %v1994_v22 = vmul.f32 %v5317_v34, %v1894_v55 }
 0x3e3   : > { %v1843_v47 = vpop.f32.mrf.mxu2 }
 0x3e4   : > { %v1844_v60 = vadd.f32 %v5311_v27, %v1843_v47 }
 0x3eb   : > { %v1846_v7 = vpop.f32.mrf.mxu2 }
 0x3ec   : > { %v1847_v28 = vadd.f32 %v5311_v27, %v1846_v7 }
 0x3ed   : > { %2074 = vrot.lane.b32.xlu1 %v1993_v1, %s3484_s21  ;;  %v5419_v1 = vstv %s2297_s16  ;;  %s3432_s16 = scalar_lea.hbm %s3431_s15, 2 }
 0x3ee   : > { %v1896_v18 = vmax.f32 %v1847_v28, 0.0  ;;  %p3433_p11 = scmp.ne.s32.totalorder %s3431_s15, %s3432_s16  ;;  %p3438_p1 = scmp.lt.s32.totalorder %s3436_s19, %s3432_s16 }
 0x3f0   : > { %v1996_v7 = vmul.f32 %v5317_v34, %v1896_v18  ;;  %v2057_v18 = vpop.permute.xlu1 %2056  ;;  %p3434_p12 = pnand %p3433_p11, %p3570_p5  ;;  %p3439_p2 = por %p3438_p1, %p3437_p0 }
 0x3f2   : > { %p3435_p13 = pneg %p3434_p12 }
 0x3f3   : > { %v1848_v16 = vpop.f32.mrf.mxu2 }
 0x3f4   : > { %p3440_p3 = pnand %p3439_p2, %p3435_p13 }
 0x3fb   : > { %2176 = vadd.xlane.f32.xlu2 %v2175_v4  ;;  %v1851_v21 = vpop.f32.mrf.mxu2  ;;  %v1895_v4 = vmax.f32 %v1844_v60, 0.0 }
 0x3fc   : > { %2179 = vadd.xlane.f32.xlu0 %v2178_v58  ;;  %v1852_v47 = vadd.f32 %v5311_v27, %v1851_v21 }
 0x3fd   : > { %v1995_v55 = vmul.f32 %v5317_v34, %v1895_v4  ;;  %v1916_v4 = vmul.f32 0.5, %v5160_v48 }
 0x404   : > { %2185 = vadd.xlane.f32.xlu0 %v2184_v42  ;;  %v2053_v42 = vpop.permute.xlu2 %2052 }
 0x405   : > { %v2143_v40 = vsel %vm2136_vm15, %v1946_v33, %v2053_v42  ;;  %v5459_v42 = vpop.f32.mrf.mxu3 }
 0x406   : > { %v2187_v60 = vsel %vm1738_vm7, %v2143_v40, 0.0 }
 0x40b   : > { %v2171_v24 = vpop.xlane.xlu0 %2170 }
 0x40c   : > { %v2265_v15 = vadd.f32 %v2171_v24, %v4961_v8  ;;  %v1898_v24 = vmax.f32 %v1852_v47, 0.0  ;;  %v5444_v12 = vpop.permute.xlu2 %2058  ;;  %v1853_v47 = vpop.f32.mrf.mxu2 }
 0x40e   : > { %v2299_v50 = vadd.f32 %v5419_v1, %v2265_v15  ;;  %v1849_v15 = vadd.f32 %v5311_v27, %v1848_v16  ;;  %v1918_v16 = vmul.f32 0.5, %v5172_v6 }
 0x410   : > { %v2363_v58 = vrot.slane %v2299_v50, 1  ;;  %v2364_v46 = vrot.slane %v2299_v50, 2  ;;  %v2365_v13 = vrot.slane %v2299_v50, 3  ;;  %2587 = vst [vmem:[#allocation1] ss:$9 sm:$0xff] %v2299_v50  ;;  %v2366_v8 = vrot.slane %v2299_v50, 4 }
 0x411   : > { %v2367_v53 = vrot.slane %v2299_v50, 5  ;;  %v2368_v43 = vrot.slane %v2299_v50, 6  ;;  %v2369_v28 = vrot.slane %v2299_v50, 7  ;;  %v1897_v9 = vmax.f32 %v1849_v15, 0.0  ;;  %v5442_v50 = vpop.permute.xlu1 %2062 }
 0x412   : > { %2589 = vst [vmem:[#allocation1 + $0x1] ss:$9 sm:$0xff] %v2363_v58  ;;  %v1948_v58 = vmul.f32 %v1916_v4, %v5160_v48  ;;  %v1871_v4 = vpop.f32.mrf.mxu3 }
 0x413   : > { %2076 = vrot.lane.b32.xlu2 %v1994_v22, %s3484_s21  ;;  %2591 = vst [vmem:[#allocation1 + $0x2] ss:$9 sm:$0xff] %v2364_v46  ;;  %v1998_v22 = vmul.f32 %v5317_v34, %v1898_v24  ;;  %v1997_v21 = vmul.f32 %v5317_v34, %v1897_v9 }
 0x414   : > { %2593 = vst [vmem:[#allocation1 + $0x3] ss:$9 sm:$0xff] %v2365_v13  ;;  %v2145_v13 = vsel %vm2136_vm15, %v1948_v58, %v2057_v18  ;;  %v1856_v18 = vpop.f32.mrf.mxu2 }
 0x415   : > { %2595 = vst [vmem:[#allocation1 + $0x4] ss:$9 sm:$0xff] %v2366_v8  ;;  %v2193_v8 = vsel %vm1738_vm7, %v2145_v13, 0.0  ;;  %v1857_v58 = vadd.f32 %v5311_v27, %v1856_v18  ;;  %v1872_v13 = vadd.f32 %v5311_v27, %v1871_v4 }
 0x416   : > { %2597 = vst [vmem:[#allocation1 + $0x5] ss:$9 sm:$0xff] %v2367_v53 }
 0x417   : > { %2182 = vadd.xlane.f32.xlu1 %v2181_v61  ;;  %2599 = vst [vmem:[#allocation1 + $0x6] ss:$9 sm:$0xff] %v2368_v43  ;;  %v1950_v61 = vmul.f32 %v1918_v16, %v5172_v6 }
 0x418   : > { %2080 = vrot.lane.b32.xlu0 %v1996_v7, %s3484_s21  ;;  %2601 = vst [vmem:[#allocation1 + $0x7] ss:$9 sm:$0xff] %v2369_v28  ;;  %v5453_v7 = vpop.permute.xlu2 %2092 }
 0x419   : > { %v2147_v53 = vsel %vm2136_vm15, %v1950_v61, %v5411_v39 }
 0x41b   : > { %2078 = vrot.lane.b32.xlu2 %v1995_v55, %s3484_s21  ;;  %v2199_v55 = vsel %vm1738_vm7, %v2147_v53, 0.0  ;;  %v1915_v53 = vmul.f32 0.5, %v5133_v36 }
 0x41c   : > { %v5449_v46 = vpop.permute.xlu1 %2068  ;;  %v1858_v61 = vpop.f32.mrf.mxu2 }
 0x41f   : > { %2188 = vadd.xlane.f32.xlu1 %v2187_v60  ;;  %v5466_v40 = vld [vmem:[#allocation1] sm:$0xff] }
 0x420   : > { %2084 = vrot.lane.b32.xlu0 %v1998_v22, %s3484_s21  ;;  %v5463_v28 = vpop.permute.xlu2 %2094 }
 0x428   : > { %v5470_v16 = vpop.permute.xlu2 %2064 }
 0x438   : > { %2082 = vrot.lane.b32.xlu1 %v1997_v21, %s3484_s21 }
 0x444   : > { %2194 = vadd.xlane.f32.xlu2 %v2193_v8  ;;  %v1900_v8 = vmax.f32 %v1857_v58, 0.0  ;;  %v5488_v4 = vpop.permute.xlu0 %2072 }
 0x447   : > { %v2174_v43 = vpop.xlane.xlu1 %2173 }
 0x448   : > { %v2266_v33 = vadd.f32 %v2174_v43, %v4979_v31  ;;  %v1906_v43 = vmax.f32 %v1872_v13, 0.0  ;;  %v1854_v13 = vadd.f32 %v5311_v27, %v1853_v47 }
 0x44a   : > { %v2300_v24 = vadd.f32 %v5419_v1, %v2266_v33  ;;  %2200 = vadd.xlane.f32.xlu0 %v2199_v55  ;;  %v2000_v33 = vmul.f32 %v5317_v34, %v1900_v8  ;;  %v1859_v55 = vadd.f32 %v5311_v27, %v1858_v61 }
 0x44c   : > { %v2370_v22 = vrot.slane %v2300_v24, 1  ;;  %v2371_v60 = vrot.slane %v2300_v24, 2  ;;  %v2372_v15 = vrot.slane %v2300_v24, 3  ;;  %2603 = vst [vmem:[#allocation1] ss:$9 sm:$0xff] %v2300_v24  ;;  %v2373_v39 = vrot.slane %v2300_v24, 4 }
 0x44d   : > { %v2374_v9 = vrot.slane %v2300_v24, 5  ;;  %v2375_v21 = vrot.slane %v2300_v24, 6  ;;  %v2376_v31 = vrot.slane %v2300_v24, 7  ;;  %v1947_v24 = vmul.f32 %v1915_v53, %v5133_v36 }
 0x44e   : > { %2604 = vst [vmem:[#allocation1 + $0x1] ss:$9 sm:$0xff] %v2370_v22  ;;  %v2006_v22 = vmul.f32 %v5317_v34, %v1906_v43  ;;  %v1901_v18 = vmax.f32 %v1859_v55, 0.0  ;;  %v1899_v55 = vmax.f32 %v1854_v13, 0.0 }
 0x44f   : > { %2605 = vst [vmem:[#allocation1 + $0x2] ss:$9 sm:$0xff] %v2371_v60  ;;  %v5477_v60 = vpop.permute.xlu2 %2096 }
 0x450   : > { %2606 = vst [vmem:[#allocation1 + $0x3] ss:$9 sm:$0xff] %v2372_v15  ;;  %v2144_v15 = vsel %vm2136_vm15, %v1947_v24, %v5404_v52 }
 0x451   : > { %2607 = vst [vmem:[#allocation1 + $0x4] ss:$9 sm:$0xff] %v2373_v39  ;;  %v2190_v39 = vsel %vm1738_vm7, %v2144_v15, 0.0 }
 0x452   : > { %2608 = vst [vmem:[#allocation1 + $0x5] ss:$9 sm:$0xff] %v2374_v9  ;;  %v2001_v9 = vmul.f32 %v5317_v34, %v1901_v18 }
 0x453   : > { %2609 = vst [vmem:[#allocation1 + $0x6] ss:$9 sm:$0xff] %v2375_v21 }
 0x454   : > { %2610 = vst [vmem:[#allocation1 + $0x7] ss:$9 sm:$0xff] %v2376_v31 }
 0x457   : > { %v5486_v21 = vpop.permute.xlu2 %2070 }
 0x45b   : > { %v5493_v8 = vld [vmem:[#allocation1] sm:$0xff] }
 0x45c   : > { %2088 = vrot.lane.b32.xlu2 %v2000_v33, %s3484_s21 }
 0x45e   : > { %2100 = vrot.lane.b32.xlu0 %v2006_v22, %s3484_s21 }
 0x462   : > { %2191 = vadd.xlane.f32.xlu1 %v2190_v39  ;;  %v1925_v39 = vmul.f32 0.5, %v5258_v37 }
 0x464   : > { %2090 = vrot.lane.b32.xlu2 %v2001_v9, %s3484_s21 }
 0x46e   : > { %v2177_v31 = vpop.xlane.xlu2 %2176 }
 0x46f   : > { %v2267_v58 = vadd.f32 %v2177_v31, %v5015_v49  ;;  %v2180_v18 = vpop.xlane.xlu0 %2179  ;;  %v1999_v49 = vmul.f32 %v5317_v34, %v1899_v55  ;;  %v2075_v31 = vpop.permute.xlu1 %2074 }
 0x470   : > { %v2268_v47 = vadd.f32 %v2180_v18, %v5033_v35 }
 0x471   : > { %v2301_v52 = vadd.f32 %v5419_v1, %v2267_v58  ;;  %v1957_v58 = vmul.f32 %v1925_v39, %v5258_v37 }
 0x472   : > { %v2302_v9 = vadd.f32 %v5419_v1, %v2268_v47 }
 0x473   : > { %v2377_v61 = vrot.slane %v2301_v52, 1  ;;  %v2378_v53 = vrot.slane %v2301_v52, 2  ;;  %v2379_v43 = vrot.slane %v2301_v52, 3  ;;  %2612 = vst [vmem:[#allocation1] ss:$9 sm:$0xff] %v2301_v52  ;;  %v2380_v33 = vrot.slane %v2301_v52, 4 }
 0x474   : > { %v2381_v24 = vrot.slane %v2301_v52, 5  ;;  %v2382_v22 = vrot.slane %v2301_v52, 6  ;;  %v2383_v15 = vrot.slane %v2301_v52, 7  ;;  %v2384_v52 = vrot.slane %v2302_v9, 1 }
 0x475   : > { %2613 = vst [vmem:[#allocation1 + $0x1] ss:$9 sm:$0xff] %v2377_v61  ;;  %v2154_v35 = vsel %vm2136_vm15, %v1957_v58, %v2075_v31  ;;  %v2387_v55 = vrot.slane %v2302_v9, 4  ;;  %v2389_v18 = vrot.slane %v2302_v9, 6  ;;  %v2390_v47 = vrot.slane %v2302_v9, 7 }
 0x476   : > { %2614 = vst [vmem:[#allocation1 + $0x2] ss:$9 sm:$0xff] %v2378_v53  ;;  %v1920_v53 = vmul.f32 0.5, %v5187_v20 }
 0x477   : > { %2615 = vst [vmem:[#allocation1 + $0x3] ss:$9 sm:$0xff] %v2379_v43  ;;  %v2186_v61 = vpop.xlane.xlu0 %2185  ;;  %v2385_v43 = vrot.slane %v2302_v9, 2 }
 0x478   : > { %2616 = vst [vmem:[#allocation1 + $0x4] ss:$9 sm:$0xff] %v2380_v33  ;;  %v2386_v33 = vrot.slane %v2302_v9, 3 }
 0x479   : > { %2617 = vst [vmem:[#allocation1 + $0x5] ss:$9 sm:$0xff] %v2381_v24  ;;  %v2388_v24 = vrot.slane %v2302_v9, 5 }
 0x47a   : > { %2618 = vst [vmem:[#allocation1 + $0x6] ss:$9 sm:$0xff] %v2382_v22  ;;  %v1928_v22 = vmul.f32 0.5, %v5244_v29 }
 0x47b   : > { %2619 = vst [vmem:[#allocation1 + $0x7] ss:$9 sm:$0xff] %v2383_v15  ;;  %2086 = vrot.lane.b32.xlu1 %v1999_v49, %s3484_s21  ;;  %v1952_v15 = vmul.f32 %v1920_v53, %v5187_v20  ;;  %v2220_v49 = vsel %vm1738_vm7, %v2154_v35, 0.0 }
 0x47c   : > { %v1960_v58 = vmul.f32 %v1928_v22, %v5244_v29 }
 0x47d   : > { %v2149_v39 = vsel %vm2136_vm15, %v1952_v15, %v5470_v16 }
 0x47e   : > { %v2205_v35 = vsel %vm1738_vm7, %v2149_v39, 0.0 }
 0x482   : > { %v5501_v13 = vld [vmem:[#allocation1] sm:$0xff] }
 0x483   : > { %2621 = vst [vmem:[#allocation1] ss:$9 sm:$0xff] %v2302_v9 }
 0x484   : > { %2622 = vst [vmem:[#allocation1 + $0x1] ss:$9 sm:$0xff] %v2384_v52 }
 0x485   : > { %2623 = vst [vmem:[#allocation1 + $0x2] ss:$9 sm:$0xff] %v2385_v43  ;;  %v1921_v43 = vmul.f32 0.5, %v5189_v45 }
 0x486   : > { %2624 = vst [vmem:[#allocation1 + $0x3] ss:$9 sm:$0xff] %v2386_v33 }
 0x487   : > { %2625 = vst [vmem:[#allocation1 + $0x4] ss:$9 sm:$0xff] %v2387_v55  ;;  %v1953_v55 = vmul.f32 %v1921_v43, %v5189_v45 }
 0x488   : > { %2626 = vst [vmem:[#allocation1 + $0x5] ss:$9 sm:$0xff] %v2388_v24  ;;  %2221 = vadd.xlane.f32.xlu0 %v2220_v49 }
 0x489   : > { %2627 = vst [vmem:[#allocation1 + $0x6] ss:$9 sm:$0xff] %v2389_v18  ;;  %v2150_v22 = vsel %vm2136_vm15, %v1953_v55, %v5414_v10  ;;  %v2270_v10 = vadd.f32 %v2186_v61, %v5109_v44 }
 0x48a   : > { %2628 = vst [vmem:[#allocation1 + $0x7] ss:$9 sm:$0xff] %v2390_v47  ;;  %v2183_v31 = vpop.xlane.xlu1 %2182  ;;  %v2081_v52 = vpop.permute.xlu0 %2080  ;;  %v1922_v47 = vmul.f32 0.5, %v5235_v56 }
 0x48b   : > { %v2269_v53 = vadd.f32 %v2183_v31, %v5096_v3  ;;  %v2157_v33 = vsel %vm2136_vm15, %v1960_v58, %v2081_v52  ;;  %v2208_v58 = vsel %vm1738_vm7, %v2150_v22, 0.0  ;;  %v2304_v55 = vadd.f32 %v5419_v1, %v2270_v10 }
 0x48c   : > { %v2229_v24 = vsel %vm1738_vm7, %v2157_v33, 0.0  ;;  %v1954_v43 = vmul.f32 %v1922_v47, %v5235_v56  ;;  %v1917_v33 = vmul.f32 0.5, %v5164_v57  ;;  %v1919_v47 = vmul.f32 0.5, %v5174_v41 }
 0x48d   : > { %v2303_v9 = vadd.f32 %v5419_v1, %v2269_v53  ;;  %2206 = vadd.xlane.f32.xlu2 %v2205_v35  ;;  %v1923_v35 = vmul.f32 0.5, %v5231_v59  ;;  %v2399_v22 = vrot.slane %v2304_v55, 2  ;;  %v2404_v10 = vrot.slane %v2304_v55, 7 }
 0x48e   : > { %v2151_v53 = vsel %vm2136_vm15, %v1954_v43, %v5449_v46  ;;  %v2403_v43 = vrot.slane %v2304_v55, 6 }
 0x48f   : > { %v2391_v16 = vrot.slane %v2303_v9, 1  ;;  %v2392_v15 = vrot.slane %v2303_v9, 2  ;;  %v2393_v3 = vrot.slane %v2303_v9, 3  ;;  %v2394_v49 = vrot.slane %v2303_v9, 4 }
 0x490   : > { %2230 = vadd.xlane.f32.xlu0 %v2229_v24  ;;  %v2395_v39 = vrot.slane %v2303_v9, 5  ;;  %v2396_v31 = vrot.slane %v2303_v9, 6  ;;  %v2397_v52 = vrot.slane %v2303_v9, 7  ;;  %v1955_v24 = vmul.f32 %v1923_v35, %v5231_v59 }
 0x491   : > { %v5520_v18 = vld [vmem:[#allocation1] sm:$0xff] }
 0x492   : > { %2630 = vst [vmem:[#allocation1] ss:$9 sm:$0xff] %v2303_v9  ;;  %v2211_v9 = vsel %vm1738_vm7, %v2151_v53, 0.0  ;;  %v2152_v61 = vsel %vm2136_vm15, %v1955_v24, %v5486_v21  ;;  %v1929_v21 = vmul.f32 0.5, %v5242_v30  ;;  %v1951_v53 = vmul.f32 %v1919_v47, %v5174_v41 }
 0x493   : > { %2631 = vst [vmem:[#allocation1 + $0x1] ss:$9 sm:$0xff] %v2391_v16  ;;  %v1949_v16 = vmul.f32 %v1917_v33, %v5164_v57 }
 0x494   : > { %2632 = vst [vmem:[#allocation1 + $0x2] ss:$9 sm:$0xff] %v2392_v15  ;;  %v2398_v15 = vrot.slane %v2304_v55, 1  ;;  %v1961_v24 = vmul.f32 %v1929_v21, %v5242_v30 }
 0x495   : > { %2633 = vst [vmem:[#allocation1 + $0x3] ss:$9 sm:$0xff] %v2393_v3  ;;  %2209 = vadd.xlane.f32.xlu2 %v2208_v58  ;;  %v2146_v46 = vsel %vm2136_vm15, %v1949_v16, %v5444_v12  ;;  %v2400_v3 = vrot.slane %v2304_v55, 3  ;;  %v2402_v58 = vrot.slane %v2304_v55, 5  ;;  %v2214_v12 = vsel %vm1738_vm7, %v2152_v61, 0.0 }
 0x496   : > { %2634 = vst [vmem:[#allocation1 + $0x4] ss:$9 sm:$0xff] %v2394_v49  ;;  %v2189_v49 = vpop.xlane.xlu1 %2188 }
 0x497   : > { %2635 = vst [vmem:[#allocation1 + $0x5] ss:$9 sm:$0xff] %v2395_v39  ;;  %v1924_v39 = vmul.f32 0.5, %v5264_v32  ;;  %v2271_v35 = vadd.f32 %v2189_v49, %v5131_v62 }
 0x498   : > { %2636 = vst [vmem:[#allocation1 + $0x6] ss:$9 sm:$0xff] %v2396_v31  ;;  %v2401_v31 = vrot.slane %v2304_v55, 4 }
 0x499   : > { %2637 = vst [vmem:[#allocation1 + $0x7] ss:$9 sm:$0xff] %v2397_v52  ;;  %v2196_v52 = vsel %vm1738_vm7, %v2146_v46, 0.0  ;;  %v1956_v33 = vmul.f32 %v1924_v39, %v5264_v32  ;;  %v2305_v46 = vadd.f32 %v5419_v1, %v2271_v35 }
 0x49b   : > { %v2153_v16 = vsel %vm2136_vm15, %v1956_v33, %v5488_v4  ;;  %v2077_v4 = vpop.permute.xlu2 %2076  ;;  %v2405_v39 = vrot.slane %v2305_v46, 1  ;;  %v2408_v21 = vrot.slane %v2305_v46, 4  ;;  %v2409_v33 = vrot.slane %v2305_v46, 5 }
 0x49c   : > { %v2410_v35 = vrot.slane %v2305_v46, 6 }
 0x49d   : > { %2212 = vadd.xlane.f32.xlu2 %v2211_v9  ;;  %v2148_v9 = vsel %vm2136_vm15, %v1951_v53, %v5442_v50  ;;  %v1935_v53 = vmul.f32 0.5, %v5227_v19 }
 0x49e   : > { %v2202_v62 = vsel %vm1738_vm7, %v2148_v9, 0.0 }
 0x4a0   : > { %v5534_v44 = vld [vmem:[#allocation1] sm:$0xff] }
 0x4a1   : > { %2639 = vst [vmem:[#allocation1] ss:$9 sm:$0xff] %v2304_v55  ;;  %v1926_v55 = vmul.f32 0.5, %v5298_v54 }
 0x4a2   : > { %2640 = vst [vmem:[#allocation1 + $0x1] ss:$9 sm:$0xff] %v2398_v15 }
 0x4a3   : > { %2641 = vst [vmem:[#allocation1 + $0x2] ss:$9 sm:$0xff] %v2399_v22  ;;  %v1930_v22 = vmul.f32 0.5, %v5274_v2  ;;  %v1958_v49 = vmul.f32 %v1926_v55, %v5298_v54 }
 0x4a4   : > { %2642 = vst [vmem:[#allocation1 + $0x3] ss:$9 sm:$0xff] %v2400_v3  ;;  %v2217_v3 = vsel %vm1738_vm7, %v2153_v16, 0.0  ;;  %v2411_v16 = vrot.slane %v2305_v46, 7 }
 0x4a5   : > { %2643 = vst [vmem:[#allocation1 + $0x4] ss:$9 sm:$0xff] %v2401_v31  ;;  %2197 = vadd.xlane.f32.xlu1 %v2196_v52  ;;  %2215 = vadd.xlane.f32.xlu2 %v2214_v12  ;;  %v2085_v31 = vpop.permute.xlu0 %2084  ;;  %v1962_v52 = vmul.f32 %v1930_v22, %v5274_v2  ;;  %v2155_v12 = vsel %vm2136_vm15, %v1958_v49, %v2077_v4 }
 0x4a6   : > { %2644 = vst [vmem:[#allocation1 + $0x5] ss:$9 sm:$0xff] %v2402_v58  ;;  %v2406_v58 = vrot.slane %v2305_v46, 2  ;;  %v2223_v9 = vsel %vm1738_vm7, %v2155_v12, 0.0  ;;  %v1869_v22 = vadd.f32 %v5311_v27, %v5459_v42 }
 0x4a7   : > { %2645 = vst [vmem:[#allocation1 + $0x6] ss:$9 sm:$0xff] %v2403_v43  ;;  %v2407_v43 = vrot.slane %v2305_v46, 3 }
 0x4a8   : > { %2646 = vst [vmem:[#allocation1 + $0x7] ss:$9 sm:$0xff] %v2404_v10  ;;  %v2159_v10 = vsel %vm2136_vm15, %v1962_v52, %v2085_v31 }
 0x4aa   : > { %v2083_v15 = vpop.permute.xlu1 %2082 }
 0x4ab   : > { %v2158_v61 = vsel %vm2136_vm15, %v1961_v24, %v2083_v15  ;;  %v2235_v24 = vsel %vm1738_vm7, %v2159_v10, 0.0  ;;  %v1967_v15 = vmul.f32 %v1935_v53, %v5227_v19 }
 0x4ac   : > { %v2232_v50 = vsel %vm1738_vm7, %v2158_v61, 0.0  ;;  %v1936_v61 = vmul.f32 0.5, %v5246_v63 }
 0x4ad   : > { %2203 = vadd.xlane.f32.xlu1 %v2202_v62  ;;  %2218 = vadd.xlane.f32.xlu2 %v2217_v3  ;;  %v2164_v55 = vsel %vm2136_vm15, %v1967_v15, %v5463_v28  ;;  %v1905_v3 = vmax.f32 %v1869_v22, 0.0 }
 0x4ae   : > { %2233 = vadd.xlane.f32.xlu0 %v2232_v50  ;;  %v2250_v62 = vsel %vm1738_vm7, %v2164_v55, 0.0 }
 0x4af   : > { %v5561_v47 = vld [vmem:[#allocation1] sm:$0xff]  ;;  %v2005_v4 = vmul.f32 %v5317_v34, %v1905_v3 }
 0x4b0   : > { %2648 = vst [vmem:[#allocation1] ss:$9 sm:$0xff] %v2305_v46  ;;  %v1968_v46 = vmul.f32 %v1936_v61, %v5246_v63 }
 0x4b1   : > { %2649 = vst [vmem:[#allocation1 + $0x1] ss:$9 sm:$0xff] %v2405_v39  ;;  %v2079_v39 = vpop.permute.xlu2 %2078 }
 0x4b2   : > { %2650 = vst [vmem:[#allocation1 + $0x2] ss:$9 sm:$0xff] %v2406_v58  ;;  %v2165_v50 = vsel %vm2136_vm15, %v1968_v46, %v5477_v60 }
 0x4b3   : > { %2651 = vst [vmem:[#allocation1 + $0x3] ss:$9 sm:$0xff] %v2407_v43  ;;  %v2253_v49 = vsel %vm1738_vm7, %v2165_v50, 0.0 }
 0x4b4   : > { %2652 = vst [vmem:[#allocation1 + $0x4] ss:$9 sm:$0xff] %v2408_v21 }
 0x4b5   : > { %2653 = vst [vmem:[#allocation1 + $0x5] ss:$9 sm:$0xff] %v2409_v33  ;;  %2224 = vadd.xlane.f32.xlu2 %v2223_v9  ;;  %v1927_v33 = vmul.f32 0.5, %v5292_v11 }
 0x4b6   : > { %2654 = vst [vmem:[#allocation1 + $0x6] ss:$9 sm:$0xff] %v2410_v35  ;;  %2236 = vadd.xlane.f32.xlu0 %v2235_v24  ;;  %v1931_v35 = vmul.f32 0.5, %v5272_v26 }
 0x4b7   : > { %2655 = vst [vmem:[#allocation1 + $0x7] ss:$9 sm:$0xff] %v2411_v16  ;;  %v1959_v15 = vmul.f32 %v1927_v33, %v5292_v11 }
 0x4b9   : > { %v2195_v21 = vpop.xlane.xlu2 %2194 }
 0x4bd   : > { %2251 = vadd.xlane.f32.xlu2 %v2250_v62  ;;  %v2201_v16 = vpop.xlane.xlu0 %2200  ;;  %v1963_v62 = vmul.f32 %v1931_v35, %v5272_v26 }
 0x4be   : > { %v5584_v31 = vld [vmem:[#allocation1] sm:$0xff] }
 0x4c5   : > { %2254 = vadd.xlane.f32.xlu2 %v2253_v49 }
 0x4c6   : > { %2098 = vrot.lane.b32.xlu1 %v2005_v4, %s3484_s21  ;;  %v1938_v4 = vmul.f32 0.5, %v5277_v5 }
 0x4d5   : > { %v2192_v28 = vpop.xlane.xlu1 %2191 }
 0x4d6   : > { %v2272_v27 = vadd.f32 %v2192_v28, %v5133_v36  ;;  %v2273_v36 = vadd.f32 %v2195_v21, %v5160_v48  ;;  %v2156_v48 = vsel %vm2136_vm15, %v1959_v15, %v2079_v39  ;;  %v3488_v39 = vmov 48  }
 0x4d7   : > { %3409 = vset.pattern.permute.xlu1 %v3488_v39  ;;  %3410 = vset.pattern.permute.xlu0 %v3488_v39 }
 0x4d8   : > { %v2306_v42 = vadd.f32 %v5419_v1, %v2272_v27  ;;  %v2307_v53 = vadd.f32 %v5419_v1, %v2273_v36  ;;  %v2226_v27 = vsel %vm1738_vm7, %v2156_v48, 0.0  ;;  %3408 = vset.pattern.permute.xlu2 %v3488_v39  ;;  %v3415_v36 = vld [vmem:[%s5858_s5] ss:$0 sm:$0xff] }
 0x4da   : > { %v2412_v58 = vrot.slane %v2306_v42, 1  ;;  %v2413_v52 = vrot.slane %v2306_v42, 2  ;;  %v2414_v12 = vrot.slane %v2306_v42, 3  ;;  %2657 = vst [vmem:[#allocation1] ss:$9 sm:$0xff] %v2306_v42  ;;  %v2415_v60 = vrot.slane %v2306_v42, 4 }
 0x4db   : > { %v2416_v43 = vrot.slane %v2306_v42, 5  ;;  %v2417_v34 = vrot.slane %v2306_v42, 6  ;;  %v2418_v10 = vrot.slane %v2306_v42, 7  ;;  %v2419_v9 = vrot.slane %v2307_v53, 1 }
 0x4dc   : > { %2658 = vst [vmem:[#allocation1 + $0x1] ss:$9 sm:$0xff] %v2412_v58  ;;  %v2420_v55 = vrot.slane %v2307_v53, 2  ;;  %v2421_v61 = vrot.slane %v2307_v53, 3  ;;  %v2422_v22 = vrot.slane %v2307_v53, 4  ;;  %v2423_v46 = vrot.slane %v2307_v53, 5  ;;  %v2101_v58 = vpop.permute.xlu0 %2100 }
 0x4dd   : > { %2659 = vst [vmem:[#allocation1 + $0x2] ss:$9 sm:$0xff] %v2413_v52  ;;  %v2424_v50 = vrot.slane %v2307_v53, 6  ;;  %v2425_v28 = vrot.slane %v2307_v53, 7  ;;  %v1970_v52 = vmul.f32 %v1938_v4, %v5277_v5 }
 0x4de   : > { %2660 = vst [vmem:[#allocation1 + $0x3] ss:$9 sm:$0xff] %v2414_v12 }
 0x4df   : > { %2661 = vst [vmem:[#allocation1 + $0x4] ss:$9 sm:$0xff] %v2415_v60  ;;  %v2167_v12 = vsel %vm2136_vm15, %v1970_v52, %v2101_v58  ;;  %v1873_v60 = vpop.f32.mrf.mxu3 }
 0x4e0   : > { %2662 = vst [vmem:[#allocation1 + $0x5] ss:$9 sm:$0xff] %v2416_v43  ;;  %v2259_v43 = vsel %vm1738_vm7, %v2167_v12, 0.0 }
 0x4e1   : > { %2663 = vst [vmem:[#allocation1 + $0x6] ss:$9 sm:$0xff] %v2417_v34  ;;  %v3414_v34 = vld [vmem:[%s5857_s4] ss:$0 sm:$0xff] }
 0x4e2   : > { %2664 = vst [vmem:[#allocation1 + $0x7] ss:$9 sm:$0xff] %v2418_v10  ;;  %v1874_v21 = vadd.f32 %v3414_v34, %v1873_v60 }
 0x4e4   : > { %v1907_v10 = vmax.f32 %v1874_v21, 0.0  ;;  %v1933_v21 = vmul.f32 0.5, %v5215_v14 }
 0x4e9   : > { %v5590_v24 = vld [vmem:[#allocation1] sm:$0xff] }
 0x4ea   : > { %2666 = vst [vmem:[#allocation1] ss:$9 sm:$0xff] %v2307_v53  ;;  %v2007_v53 = vmul.f32 %v3415_v36, %v1907_v10 }
 0x4eb   : > { %2667 = vst [vmem:[#allocation1 + $0x1] ss:$9 sm:$0xff] %v2419_v9 }
 0x4ec   : > { %2668 = vst [vmem:[#allocation1 + $0x2] ss:$9 sm:$0xff] %v2420_v55 }
 0x4ed   : > { %2669 = vst [vmem:[#allocation1 + $0x3] ss:$9 sm:$0xff] %v2421_v61  ;;  %v2087_v3 = vpop.permute.xlu1 %2086 }
 0x4ee   : > { %2670 = vst [vmem:[#allocation1 + $0x4] ss:$9 sm:$0xff] %v2422_v22  ;;  %v2160_v49 = vsel %vm2136_vm15, %v1963_v62, %v2087_v3 }
 0x4ef   : > { %2671 = vst [vmem:[#allocation1 + $0x5] ss:$9 sm:$0xff] %v2423_v46  ;;  %v2238_v42 = vsel %vm1738_vm7, %v2160_v49, 0.0 }
 0x4f0   : > { %2672 = vst [vmem:[#allocation1 + $0x6] ss:$9 sm:$0xff] %v2424_v50  ;;  %2227 = vadd.xlane.f32.xlu1 %v2226_v27  ;;  %2239 = vadd.xlane.f32.xlu0 %v2238_v42  ;;  %v5623_v42 = vpop.permute.xlu2 %2088 }
 0x4f1   : > { %2673 = vst [vmem:[#allocation1 + $0x7] ss:$9 sm:$0xff] %v2425_v28 }
 0x4f8   : > { %2260 = vadd.xlane.f32.xlu1 %v2259_v43  ;;  %v5613_v15 = vld [vmem:[#allocation1] sm:$0xff]  ;;  %v2091_v43 = vpop.permute.xlu2 %2090 }
 0x504   : > { %2102 = vrot.lane.b32.xlu0 %v2007_v53, %s3484_s21  ;;  %s271_s21 = sand.u32 1, %s3470_s27  }
 0x505   : > { %s5812_s22 = sshll.u32 %s271_s21, 1  ;;  %s3080_s14 = scalar_lea.sflag [#allocation4], %s271_s21 }
 0x506   : > { %s273_s6 = scalar_lea.vmem [#allocation3], %s5812_s22 }
 0x507   : > { %s3092_s9 = sshll.u32 %s273_s6, 4  ;;  %s3093_s9 = int_to_ptr.vmem [resolvable:$true] %s3092_s9 }
 0x511   : > { %2886 = vperm.xlu1 %3409, %v5493_v8   ;;  %v2275_v8 = vadd.f32 %v2201_v16, %v5172_v6 }
 0x513   : > { %v2309_v50 = vadd.f32 %v5419_v1, %v2275_v8 }
 0x515   : > { %v2433_v49 = vrot.slane %v2309_v50, 1  ;;  %v2434_v27 = vrot.slane %v2309_v50, 2  ;;  %v2435_v58 = vrot.slane %v2309_v50, 3  ;;  %v2436_v6 = vrot.slane %v2309_v50, 4 }
 0x516   : > { %v2437_v16 = vrot.slane %v2309_v50, 5  ;;  %v2438_v12 = vrot.slane %v2309_v50, 6 }
 0x518   : > { %v2198_v33 = vpop.xlane.xlu1 %2197 }
 0x519   : > { %v2274_v35 = vadd.f32 %v2198_v33, %v5164_v57  ;;  %2889 = vperm.xlu1 %3409, %v5501_v13   ;;  %v1934_v57 = vmul.f32 0.5, %v5224_v17  ;;  %v1965_v33 = vmul.f32 %v1933_v21, %v5215_v14 }
 0x51b   : > { %v2308_v9 = vadd.f32 %v5419_v1, %v2274_v35  ;;  %v1966_v13 = vmul.f32 %v1934_v57, %v5224_v17 }
 0x51d   : > { %v2426_v55 = vrot.slane %v2308_v9, 1  ;;  %v2427_v61 = vrot.slane %v2308_v9, 2  ;;  %v2428_v48 = vrot.slane %v2308_v9, 3  ;;  %2675 = vst [vmem:[#allocation1] ss:$9 sm:$0xff] %v2308_v9  ;;  %v2429_v22 = vrot.slane %v2308_v9, 4 }
 0x51e   : > { %v2430_v62 = vrot.slane %v2308_v9, 5  ;;  %v2431_v46 = vrot.slane %v2308_v9, 6  ;;  %v2432_v3 = vrot.slane %v2308_v9, 7  ;;  %v2163_v4 = vsel %vm2136_vm15, %v1966_v13, %v5453_v7 }
 0x51f   : > { %2676 = vst [vmem:[#allocation1 + $0x1] ss:$9 sm:$0xff] %v2426_v55  ;;  %v2247_v39 = vsel %vm1738_vm7, %v2163_v4, 0.0  ;;  %v2439_v7 = vrot.slane %v2309_v50, 7  ;;  %v2162_v55 = vsel %vm2136_vm15, %v1965_v33, %v2091_v43 }
 0x520   : > { %2677 = vst [vmem:[#allocation1 + $0x2] ss:$9 sm:$0xff] %v2427_v61  ;;  %v2204_v52 = vpop.xlane.xlu1 %2203 }
 0x521   : > { %2678 = vst [vmem:[#allocation1 + $0x3] ss:$9 sm:$0xff] %v2428_v48  ;;  %v2276_v60 = vadd.f32 %v2204_v52, %v5174_v41  ;;  %v2207_v41 = vpop.xlane.xlu2 %2206 }
 0x522   : > { %2679 = vst [vmem:[#allocation1 + $0x4] ss:$9 sm:$0xff] %v2429_v22 }
 0x523   : > { %2680 = vst [vmem:[#allocation1 + $0x5] ss:$9 sm:$0xff] %v2430_v62  ;;  %v2310_v34 = vadd.f32 %v5419_v1, %v2276_v60  ;;  %v2277_v62 = vadd.f32 %v2207_v41, %v5187_v20 }
 0x524   : > { %2681 = vst [vmem:[#allocation1 + $0x6] ss:$9 sm:$0xff] %v2431_v46  ;;  %v2244_v46 = vsel %vm1738_vm7, %v2162_v55, 0.0 }
 0x525   : > { %2682 = vst [vmem:[#allocation1 + $0x7] ss:$9 sm:$0xff] %v2432_v3  ;;  %v2440_v36 = vrot.slane %v2310_v34, 1  ;;  %v2441_v53 = vrot.slane %v2310_v34, 2  ;;  %v2442_v35 = vrot.slane %v2310_v34, 3  ;;  %v2443_v9 = vrot.slane %v2310_v34, 4 }
 0x526   : > { %v2444_v61 = vrot.slane %v2310_v34, 5  ;;  %v2445_v48 = vrot.slane %v2310_v34, 6  ;;  %v2446_v22 = vrot.slane %v2310_v34, 7  ;;  %v2311_v3 = vadd.f32 %v5419_v1, %v2277_v62 }
 0x528   : > { %v2447_v57 = vrot.slane %v2311_v3, 1  ;;  %v2448_v13 = vrot.slane %v2311_v3, 2  ;;  %v2450_v4 = vrot.slane %v2311_v3, 4  ;;  %v2451_v20 = vrot.slane %v2311_v3, 5 }
 0x52c   : > { %v5621_v28 = vld [vmem:[#allocation1] sm:$0xff] }
 0x52d   : > { %2684 = vst [vmem:[#allocation1] ss:$9 sm:$0xff] %v2309_v50  ;;  %v2449_v50 = vrot.slane %v2311_v3, 3 }
 0x52e   : > { %2685 = vst [vmem:[#allocation1 + $0x1] ss:$9 sm:$0xff] %v2433_v49  ;;  %2248 = vadd.xlane.f32.xlu0 %v2247_v39  ;;  %v2210_v49 = vpop.xlane.xlu2 %2209 }
 0x52f   : > { %2686 = vst [vmem:[#allocation1 + $0x2] ss:$9 sm:$0xff] %v2434_v27  ;;  %v2453_v27 = vrot.slane %v2311_v3, 7  ;;  %v2278_v39 = vadd.f32 %v2210_v49, %v5189_v45 }
 0x530   : > { %2687 = vst [vmem:[#allocation1 + $0x3] ss:$9 sm:$0xff] %v2435_v58  ;;  %v1937_v58 = vmul.f32 0.5, %v5253_v38 }
 0x531   : > { %2688 = vst [vmem:[#allocation1 + $0x4] ss:$9 sm:$0xff] %v2436_v6 }
 0x532   : > { %2689 = vst [vmem:[#allocation1 + $0x5] ss:$9 sm:$0xff] %v2437_v16  ;;  %v1969_v60 = vmul.f32 %v1937_v58, %v5253_v38 }
 0x533   : > { %2690 = vst [vmem:[#allocation1 + $0x6] ss:$9 sm:$0xff] %v2438_v12 }
 0x534   : > { %2691 = vst [vmem:[#allocation1 + $0x7] ss:$9 sm:$0xff] %v2439_v7 }
 0x536   : > { %v2213_v43 = vpop.xlane.xlu2 %2212 }
 0x537   : > { %v2279_v33 = vadd.f32 %v2213_v43, %v5235_v56 }
 0x53b   : > { %v5629_v10 = vld [vmem:[#allocation1] sm:$0xff] }
 0x53c   : > { %2693 = vst [vmem:[#allocation1] ss:$9 sm:$0xff] %v2310_v34 }
 0x53d   : > { %2694 = vst [vmem:[#allocation1 + $0x1] ss:$9 sm:$0xff] %v2440_v36 }
 0x53e   : > { %2695 = vst [vmem:[#allocation1 + $0x2] ss:$9 sm:$0xff] %v2441_v53 }
 0x53f   : > { %2696 = vst [vmem:[#allocation1 + $0x3] ss:$9 sm:$0xff] %v2442_v35  ;;  %v2313_v35 = vadd.f32 %v5419_v1, %v2279_v33 }
 0x540   : > { %2697 = vst [vmem:[#allocation1 + $0x4] ss:$9 sm:$0xff] %v2443_v9 }
 0x541   : > { %2698 = vst [vmem:[#allocation1 + $0x5] ss:$9 sm:$0xff] %v2444_v61  ;;  %v2462_v55 = vrot.slane %v2313_v35, 2  ;;  %v2463_v41 = vrot.slane %v2313_v35, 3  ;;  %v2464_v61 = vrot.slane %v2313_v35, 4  ;;  %v2466_v56 = vrot.slane %v2313_v35, 6 }
 0x542   : > { %2699 = vst [vmem:[#allocation1 + $0x6] ss:$9 sm:$0xff] %v2445_v48  ;;  %2892 = vperm.xlu0 %3410, %v5520_v18   ;;  %v2452_v18 = vrot.slane %v2311_v3, 6  ;;  %v2465_v48 = vrot.slane %v2313_v35, 5  ;;  %v2467_v62 = vrot.slane %v2313_v35, 7 }
 0x543   : > { %2700 = vst [vmem:[#allocation1 + $0x7] ss:$9 sm:$0xff] %v2446_v22  ;;  %2245 = vadd.xlane.f32.xlu1 %v2244_v46  ;;  %v2216_v22 = vpop.xlane.xlu2 %2215 }
 0x544   : > { %v2280_v46 = vadd.f32 %v2216_v22, %v5231_v59 }
 0x54a   : > { %v2701_v8 = vld [vmem:[#allocation1] sm:$0xff]  ;;  %2901 = vperm.xlu0 %3410, %v5584_v31   ;;  %v2312_v31 = vadd.f32 %v5419_v1, %v2278_v39 }
 0x54b   : > { %2702 = vst [vmem:[#allocation1] ss:$9 sm:$0xff] %v2311_v3 }
 0x54c   : > { %2703 = vst [vmem:[#allocation1 + $0x1] ss:$9 sm:$0xff] %v2447_v57  ;;  %v2454_v6 = vrot.slane %v2312_v31, 1  ;;  %v2455_v52 = vrot.slane %v2312_v31, 2  ;;  %v2456_v12 = vrot.slane %v2312_v31, 3  ;;  %v2457_v7 = vrot.slane %v2312_v31, 4 }
 0x54d   : > { %2704 = vst [vmem:[#allocation1 + $0x2] ss:$9 sm:$0xff] %v2448_v13  ;;  %v2458_v45 = vrot.slane %v2312_v31, 5  ;;  %v2459_v34 = vrot.slane %v2312_v31, 6  ;;  %v2460_v36 = vrot.slane %v2312_v31, 7 }
 0x54e   : > { %2705 = vst [vmem:[#allocation1 + $0x3] ss:$9 sm:$0xff] %v2449_v50 }
 0x54f   : > { %2706 = vst [vmem:[#allocation1 + $0x4] ss:$9 sm:$0xff] %v2450_v4 }
 0x550   : > { %2707 = vst [vmem:[#allocation1 + $0x5] ss:$9 sm:$0xff] %v2451_v20  ;;  %v2219_v20 = vpop.xlane.xlu2 %2218 }
 0x551   : > { %2708 = vst [vmem:[#allocation1 + $0x6] ss:$9 sm:$0xff] %v2452_v18  ;;  %v2281_v59 = vadd.f32 %v2219_v20, %v5264_v32 }
 0x552   : > { %2709 = vst [vmem:[#allocation1 + $0x7] ss:$9 sm:$0xff] %v2453_v27  ;;  %2910 = vperm.xlu0 %3410, %v5621_v28   ;;  %v2099_v28 = vpop.permute.xlu1 %2098 }
 0x553   : > { %v2166_v21 = vsel %vm2136_vm15, %v1969_v60, %v2099_v28  ;;  %v2315_v27 = vadd.f32 %v5419_v1, %v2281_v59 }
 0x554   : > { %v2256_v53 = vsel %vm1738_vm7, %v2166_v21, 0.0 }
 0x555   : > { %2257 = vadd.xlane.f32.xlu2 %v2256_v53  ;;  %v2475_v39 = vrot.slane %v2315_v27, 1  ;;  %v2476_v58 = vrot.slane %v2315_v27, 2  ;;  %v2481_v60 = vrot.slane %v2315_v27, 7 }
 0x558   : > { %v2225_v33 = vpop.xlane.xlu2 %2224 }
 0x559   : > { %v2710_v16 = vld [vmem:[#allocation1] sm:$0xff] }
 0x55a   : > { %2711 = vst [vmem:[#allocation1] ss:$9 sm:$0xff] %v2312_v31  ;;  %2919 = vperm.xlu0 %3410, %v2710_v16   ;;  %v2478_v16 = vrot.slane %v2315_v27, 4 }
 0x55b   : > { %2712 = vst [vmem:[#allocation1 + $0x1] ss:$9 sm:$0xff] %v2454_v6  ;;  %v2477_v6 = vrot.slane %v2315_v27, 3 }
 0x55c   : > { %2713 = vst [vmem:[#allocation1 + $0x2] ss:$9 sm:$0xff] %v2455_v52  ;;  %2898 = vperm.xlu1 %3409, %v5561_v47   ;;  %v2461_v47 = vrot.slane %v2313_v35, 1  ;;  %v2222_v52 = vpop.xlane.xlu0 %2221 }
 0x55d   : > { %2714 = vst [vmem:[#allocation1 + $0x3] ss:$9 sm:$0xff] %v2456_v12  ;;  %v2479_v12 = vrot.slane %v2315_v27, 5  ;;  %v2282_v32 = vadd.f32 %v2222_v52, %v5258_v37 }
 0x55e   : > { %2715 = vst [vmem:[#allocation1 + $0x4] ss:$9 sm:$0xff] %v2457_v7  ;;  %v2480_v7 = vrot.slane %v2315_v27, 6 }
 0x55f   : > { %2716 = vst [vmem:[#allocation1 + $0x5] ss:$9 sm:$0xff] %v2458_v45  ;;  %v2316_v45 = vadd.f32 %v5419_v1, %v2282_v32 }
 0x560   : > { %2717 = vst [vmem:[#allocation1 + $0x6] ss:$9 sm:$0xff] %v2459_v34 }
 0x561   : > { %2718 = vst [vmem:[#allocation1 + $0x7] ss:$9 sm:$0xff] %v2460_v36  ;;  %v2482_v43 = vrot.slane %v2316_v45, 1  ;;  %v2483_v34 = vrot.slane %v2316_v45, 2  ;;  %v2484_v21 = vrot.slane %v2316_v45, 3  ;;  %v2485_v36 = vrot.slane %v2316_v45, 4 }
 0x562   : > { %v2486_v53 = vrot.slane %v2316_v45, 5 }
 0x564   : > { %2907 = vperm.xlu1 %3409, %v5613_v15   ;;  %v2314_v15 = vadd.f32 %v5419_v1, %v2280_v46  ;;  %v2231_v37 = vpop.xlane.xlu0 %2230 }
 0x565   : > { %v2285_v52 = vadd.f32 %v2231_v37, %v5244_v29 }
 0x566   : > { %v2468_v3 = vrot.slane %v2314_v15, 1  ;;  %v2469_v13 = vrot.slane %v2314_v15, 2  ;;  %v2470_v50 = vrot.slane %v2314_v15, 3  ;;  %v2471_v4 = vrot.slane %v2314_v15, 4 }
 0x567   : > { %v2473_v49 = vrot.slane %v2314_v15, 6  ;;  %v2474_v18 = vrot.slane %v2314_v15, 7 }
 0x568   : > { %v5649_v9 = vld [vmem:[#allocation1] sm:$0xff] }
 0x569   : > { %2720 = vst [vmem:[#allocation1] ss:$9 sm:$0xff] %v2313_v35  ;;  %v2487_v35 = vrot.slane %v2316_v45, 6 }
 0x56a   : > { %2721 = vst [vmem:[#allocation1 + $0x1] ss:$9 sm:$0xff] %v2461_v47  ;;  %v2488_v47 = vrot.slane %v2316_v45, 7 }
 0x56b   : > { %2722 = vst [vmem:[#allocation1 + $0x2] ss:$9 sm:$0xff] %v2462_v55  ;;  %v2283_v55 = vadd.f32 %v2225_v33, %v5298_v54 }
 0x56c   : > { %2723 = vst [vmem:[#allocation1 + $0x3] ss:$9 sm:$0xff] %v2463_v41  ;;  %2916 = vperm.xlu1 %3409, %v2701_v8   ;;  %v2472_v8 = vrot.slane %v2314_v15, 5 }
 0x56d   : > { %2724 = vst [vmem:[#allocation1 + $0x4] ss:$9 sm:$0xff] %v2464_v61  ;;  %v2317_v41 = vadd.f32 %v5419_v1, %v2283_v55 }
 0x56e   : > { %2725 = vst [vmem:[#allocation1 + $0x5] ss:$9 sm:$0xff] %v2465_v48  ;;  %v2234_v48 = vpop.xlane.xlu0 %2233 }
 0x56f   : > { %2726 = vst [vmem:[#allocation1 + $0x6] ss:$9 sm:$0xff] %v2466_v56  ;;  %v2489_v22 = vrot.slane %v2317_v41, 1  ;;  %v2490_v56 = vrot.slane %v2317_v41, 2  ;;  %v2492_v46 = vrot.slane %v2317_v41, 4 }
 0x570   : > { %2727 = vst [vmem:[#allocation1 + $0x7] ss:$9 sm:$0xff] %v2467_v62  ;;  %v2491_v62 = vrot.slane %v2317_v41, 3 }
 0x577   : > { %v5653_v57 = vld [vmem:[#allocation1] sm:$0xff] }
 0x578   : > { %2729 = vst [vmem:[#allocation1] ss:$9 sm:$0xff] %v2314_v15  ;;  %v2493_v15 = vrot.slane %v2317_v41, 5 }
 0x579   : > { %2730 = vst [vmem:[#allocation1 + $0x1] ss:$9 sm:$0xff] %v2468_v3  ;;  %v2228_v3 = vpop.xlane.xlu1 %2227 }
 0x57a   : > { %2731 = vst [vmem:[#allocation1 + $0x2] ss:$9 sm:$0xff] %v2469_v13  ;;  %v2494_v13 = vrot.slane %v2317_v41, 6  ;;  %v2284_v54 = vadd.f32 %v2228_v3, %v5292_v11 }
 0x57b   : > { %2732 = vst [vmem:[#allocation1 + $0x3] ss:$9 sm:$0xff] %v2470_v50  ;;  %v2495_v50 = vrot.slane %v2317_v41, 7 }
 0x57c   : > { %2733 = vst [vmem:[#allocation1 + $0x4] ss:$9 sm:$0xff] %v2471_v4  ;;  %v2237_v4 = vpop.xlane.xlu0 %2236 }
 0x57d   : > { %2734 = vst [vmem:[#allocation1 + $0x5] ss:$9 sm:$0xff] %v2472_v8  ;;  %v2318_v8 = vadd.f32 %v5419_v1, %v2284_v54 }
 0x57e   : > { %2735 = vst [vmem:[#allocation1 + $0x6] ss:$9 sm:$0xff] %v2473_v49 }
 0x57f   : > { %2736 = vst [vmem:[#allocation1 + $0x7] ss:$9 sm:$0xff] %v2474_v18  ;;  %v2496_v49 = vrot.slane %v2318_v8, 1  ;;  %v2497_v18 = vrot.slane %v2318_v8, 2  ;;  %v2498_v59 = vrot.slane %v2318_v8, 3  ;;  %v2502_v11 = vrot.slane %v2318_v8, 7 }
 0x586   : > { %v5657_v31 = vld [vmem:[#allocation1] sm:$0xff] }
 0x587   : > { %2738 = vst [vmem:[#allocation1] ss:$9 sm:$0xff] %v2315_v27  ;;  %v2499_v27 = vrot.slane %v2318_v8, 4 }
 0x588   : > { %2739 = vst [vmem:[#allocation1 + $0x1] ss:$9 sm:$0xff] %v2475_v39  ;;  %v5667_v39 = vpop.xlane.xlu0 %2239 }
 0x589   : > { %2740 = vst [vmem:[#allocation1 + $0x2] ss:$9 sm:$0xff] %v2476_v58  ;;  %v2500_v58 = vrot.slane %v2318_v8, 5 }
 0x58a   : > { %2741 = vst [vmem:[#allocation1 + $0x3] ss:$9 sm:$0xff] %v2477_v6  ;;  %v2501_v6 = vrot.slane %v2318_v8, 6 }
 0x58b   : > { %2742 = vst [vmem:[#allocation1 + $0x4] ss:$9 sm:$0xff] %v2478_v16  ;;  %v1939_v16 = vmul.f32 0.5, %v5285_v0 }
 0x58c   : > { %2743 = vst [vmem:[#allocation1 + $0x5] ss:$9 sm:$0xff] %v2479_v12 }
 0x58d   : > { %2744 = vst [vmem:[#allocation1 + $0x6] ss:$9 sm:$0xff] %v2480_v7  ;;  %v1971_v12 = vmul.f32 %v1939_v16, %v5285_v0  ;;  %v2319_v7 = vadd.f32 %v5419_v1, %v2285_v52 }
 0x58e   : > { %2745 = vst [vmem:[#allocation1 + $0x7] ss:$9 sm:$0xff] %v2481_v60 }
 0x58f   : > { %v2506_v29 = vrot.slane %v2319_v7, 4  ;;  %v2509_v33 = vrot.slane %v2319_v7, 7 }
 0x590   : > { %v2103_v60 = vpop.permute.xlu0 %2102 }
 0x591   : > { %v2168_v32 = vsel %vm2136_vm15, %v1971_v12, %v2103_v60 }
 0x595   : > { %v2746_v28 = vld [vmem:[#allocation1] sm:$0xff] }
 0x596   : > { %2747 = vst [vmem:[#allocation1] ss:$9 sm:$0xff] %v2316_v45  ;;  %2931 = vperm.xlu1 %3409, %v2746_v28   ;;  %v2262_v45 = vsel %vm1738_vm7, %v2168_v32, 0.0  ;;  %v5698_v32 = vpop.xlane.xlu1 %2260 }
 0x597   : > { %2748 = vst [vmem:[#allocation1 + $0x1] ss:$9 sm:$0xff] %v2482_v43  ;;  %2263 = vadd.xlane.f32.xlu2 %v2262_v45  ;;  %v2503_v43 = vrot.slane %v2319_v7, 1 }
 0x598   : > { %2749 = vst [vmem:[#allocation1 + $0x2] ss:$9 sm:$0xff] %v2483_v34  ;;  %v2504_v34 = vrot.slane %v2319_v7, 2 }
 0x599   : > { %2750 = vst [vmem:[#allocation1 + $0x3] ss:$9 sm:$0xff] %v2484_v21  ;;  %v2505_v21 = vrot.slane %v2319_v7, 3 }
 0x59a   : > { %2751 = vst [vmem:[#allocation1 + $0x4] ss:$9 sm:$0xff] %v2485_v36  ;;  %v2507_v36 = vrot.slane %v2319_v7, 5 }
 0x59b   : > { %2752 = vst [vmem:[#allocation1 + $0x5] ss:$9 sm:$0xff] %v2486_v53  ;;  %v2508_v53 = vrot.slane %v2319_v7, 6 }
 0x59c   : > { %2753 = vst [vmem:[#allocation1 + $0x6] ss:$9 sm:$0xff] %v2487_v35  ;;  %v2286_v35 = vadd.f32 %v2234_v48, %v5242_v30  ;;  %v2287_v30 = vadd.f32 %v2237_v4, %v5274_v2 }
 0x59d   : > { %2754 = vst [vmem:[#allocation1 + $0x7] ss:$9 sm:$0xff] %v2488_v47 }
 0x59e   : > { %v2320_v47 = vadd.f32 %v5419_v1, %v2286_v35  ;;  %v2321_v48 = vadd.f32 %v5419_v1, %v2287_v30  ;;  %v5720_v35 = vadd.s32 4294967272, %v4022_v51 }
 0x5a0   : > { %v2510_v37 = vrot.slane %v2320_v47, 1  ;;  %v2517_v3 = vrot.slane %v2321_v48, 1  ;;  %v2519_v54 = vrot.slane %v2321_v48, 3  ;;  %v2522_v2 = vrot.slane %v2321_v48, 6 }
 0x5a1   : > { %v2523_v4 = vrot.slane %v2321_v48, 7 }
 0x5a4   : > { %v5663_v61 = vld [vmem:[#allocation1] sm:$0xff] }
 0x5a5   : > { %2756 = vst [vmem:[#allocation1] ss:$9 sm:$0xff] %v2317_v41  ;;  %v2511_v41 = vrot.slane %v2320_v47, 2 }
 0x5a6   : > { %2757 = vst [vmem:[#allocation1 + $0x1] ss:$9 sm:$0xff] %v2489_v22  ;;  %v2512_v22 = vrot.slane %v2320_v47, 3 }
 0x5a7   : > { %2758 = vst [vmem:[#allocation1 + $0x2] ss:$9 sm:$0xff] %v2490_v56  ;;  %v2513_v56 = vrot.slane %v2320_v47, 4 }
 0x5a8   : > { %2759 = vst [vmem:[#allocation1 + $0x3] ss:$9 sm:$0xff] %v2491_v62  ;;  %v2514_v62 = vrot.slane %v2320_v47, 5 }
 0x5a9   : > { %2760 = vst [vmem:[#allocation1 + $0x4] ss:$9 sm:$0xff] %v2492_v46  ;;  %v2515_v46 = vrot.slane %v2320_v47, 6 }
 0x5aa   : > { %2761 = vst [vmem:[#allocation1 + $0x5] ss:$9 sm:$0xff] %v2493_v15  ;;  %v2516_v15 = vrot.slane %v2320_v47, 7 }
 0x5ab   : > { %2762 = vst [vmem:[#allocation1 + $0x6] ss:$9 sm:$0xff] %v2494_v13 }
 0x5ac   : > { %2763 = vst [vmem:[#allocation1 + $0x7] ss:$9 sm:$0xff] %v2495_v50  ;;  %v2518_v50 = vrot.slane %v2321_v48, 2 }
 0x5af   : > { %2883 = vperm.xlu2 %3408, %v5466_v40   ;;  %v2288_v40 = vadd.f32 %v5667_v39, %v5272_v26  ;;  %v1932_v26 = vmul.f32 0.5, %v5210_v23 }
 0x5b1   : > { %v1964_v39 = vmul.f32 %v1932_v26, %v5210_v23 }
 0x5b3   : > { %v2764_v20 = vld [vmem:[#allocation1] sm:$0xff]  ;;  %v2161_v52 = vsel %vm2136_vm15, %v1964_v39, %v5623_v42  ;;  %v5707_v42 = vadd.s32 4294967288, %v4022_v51  ;;  %vm3071_vm15 = vcmask 1040384  }
 0x5b4   : > { %2765 = vst [vmem:[#allocation1] ss:$9 sm:$0xff] %v2318_v8  ;;  %2937 = vperm.xlu0 %3410, %v2764_v20   ;;  %v2520_v8 = vrot.slane %v2321_v48, 4  ;;  %v2521_v20 = vrot.slane %v2321_v48, 5  ;;  %v2241_v12 = vsel %vm1738_vm7, %v2161_v52, 0.0  ;;  %vm3037_vm7 = vcmask 1048512  }
 0x5b5   : > { %2766 = vst [vmem:[#allocation1 + $0x1] ss:$9 sm:$0xff] %v2496_v49  ;;  %v2322_v49 = vadd.f32 %v5419_v1, %v2288_v40 }
 0x5b6   : > { %2767 = vst [vmem:[#allocation1 + $0x2] ss:$9 sm:$0xff] %v2497_v18 }
 0x5b7   : > { %2768 = vst [vmem:[#allocation1 + $0x3] ss:$9 sm:$0xff] %v2498_v59  ;;  %2895 = vperm.xlu2 %3408, %v5534_v44   ;;  %v2524_v59 = vrot.slane %v2322_v49, 1  ;;  %v2525_v44 = vrot.slane %v2322_v49, 2  ;;  %v2530_v16 = vrot.slane %v2322_v49, 7 }
 0x5b8   : > { %2769 = vst [vmem:[#allocation1 + $0x4] ss:$9 sm:$0xff] %v2499_v27  ;;  %v2526_v27 = vrot.slane %v2322_v49, 3 }
 0x5b9   : > { %2770 = vst [vmem:[#allocation1 + $0x5] ss:$9 sm:$0xff] %v2500_v58  ;;  %v2527_v58 = vrot.slane %v2322_v49, 4 }
 0x5ba   : > { %2771 = vst [vmem:[#allocation1 + $0x6] ss:$9 sm:$0xff] %v2501_v6  ;;  %v2528_v6 = vrot.slane %v2322_v49, 5 }
 0x5bb   : > { %2772 = vst [vmem:[#allocation1 + $0x7] ss:$9 sm:$0xff] %v2502_v11  ;;  %v2529_v11 = vrot.slane %v2322_v49, 6 }
 0x5c2   : > { %v5675_v28 = vld [vmem:[#allocation1] sm:$0xff] }
 0x5c3   : > { %2774 = vst [vmem:[#allocation1] ss:$9 sm:$0xff] %v2319_v7  ;;  %v5693_v7 = vpop.xlane.xlu2 %2251 }
 0x5c4   : > { %2775 = vst [vmem:[#allocation1 + $0x1] ss:$9 sm:$0xff] %v2503_v43  ;;  %v2887_v43 = vpop.permute.xlu1 %2886 }
 0x5c5   : > { %2776 = vst [vmem:[#allocation1 + $0x2] ss:$9 sm:$0xff] %v2504_v34 }
 0x5c6   : > { %2777 = vst [vmem:[#allocation1 + $0x3] ss:$9 sm:$0xff] %v2505_v21  ;;  %v5709_v21 = vpop.xlane.xlu0 %2248 }
 0x5c7   : > { %2778 = vst [vmem:[#allocation1 + $0x4] ss:$9 sm:$0xff] %v2506_v29 }
 0x5c8   : > { %2779 = vst [vmem:[#allocation1 + $0x5] ss:$9 sm:$0xff] %v2507_v36  ;;  %v2980_v36 = vperm.slane %v2887_v43, %v5707_v42 }
 0x5c9   : > { %2780 = vst [vmem:[#allocation1 + $0x6] ss:$9 sm:$0xff] %v2508_v53 }
 0x5ca   : > { %2781 = vst [vmem:[#allocation1 + $0x7] ss:$9 sm:$0xff] %v2509_v33 }
 0x5cb   : > { %v5696_v60 = vpop.xlane.xlu2 %2254 }
 0x5cc   : > { %v2890_v29 = vpop.permute.xlu1 %2889 }
 0x5d1   : > { %v5679_v55 = vld [vmem:[#allocation1] sm:$0xff] }
 0x5d2   : > { %2783 = vst [vmem:[#allocation1] ss:$9 sm:$0xff] %v2320_v47 }
 0x5d3   : > { %2784 = vst [vmem:[#allocation1 + $0x1] ss:$9 sm:$0xff] %v2510_v37  ;;  %v5701_v45 = vpop.xlane.xlu2 %2257  ;;  %v2893_v37 = vpop.permute.xlu0 %2892 }
 0x5d4   : > { %2785 = vst [vmem:[#allocation1 + $0x2] ss:$9 sm:$0xff] %v2511_v41  ;;  %v2988_v41 = vperm.slane %v2893_v37, %v5720_v35  ;;  %v2246_v30 = vpop.xlane.xlu1 %2245 }
 0x5d5   : > { %2786 = vst [vmem:[#allocation1 + $0x3] ss:$9 sm:$0xff] %v2512_v22  ;;  %v2290_v26 = vadd.f32 %v2246_v30, %v5215_v14  ;;  %v2291_v14 = vadd.f32 %v5709_v21, %v5224_v17  ;;  %v2292_v17 = vadd.f32 %v5693_v7, %v5227_v19  ;;  %v2293_v19 = vadd.f32 %v5696_v60, %v5246_v63 }
 0x5d6   : > { %2787 = vst [vmem:[#allocation1 + $0x4] ss:$9 sm:$0xff] %v2513_v56  ;;  %v2294_v63 = vadd.f32 %v5701_v45, %v5253_v38  ;;  %v2295_v38 = vadd.f32 %v5698_v32, %v5277_v5 }
 0x5d7   : > { %2788 = vst [vmem:[#allocation1 + $0x5] ss:$9 sm:$0xff] %v2514_v62  ;;  %v2324_v39 = vadd.f32 %v5419_v1, %v2290_v26  ;;  %v2326_v21 = vadd.f32 %v5419_v1, %v2292_v17  ;;  %v2327_v7 = vadd.f32 %v5419_v1, %v2293_v19 }
 0x5d8   : > { %2789 = vst [vmem:[#allocation1 + $0x6] ss:$9 sm:$0xff] %v2515_v46  ;;  %v2328_v60 = vadd.f32 %v5419_v1, %v2294_v63  ;;  %v2329_v45 = vadd.f32 %v5419_v1, %v2295_v38  ;;  %v3007_v63 = vadd.s32 4294967232, %v4022_v51 }
 0x5d9   : > { %2790 = vst [vmem:[#allocation1 + $0x7] ss:$9 sm:$0xff] %v2516_v15  ;;  %v2538_v52 = vrot.slane %v2324_v39, 1  ;;  %v2539_v43 = vrot.slane %v2324_v39, 2  ;;  %v2552_v30 = vrot.slane %v2326_v21, 1 }
 0x5da   : > { %v2568_v26 = vrot.slane %v2328_v60, 3 }
 0x5e0   : > { %v2791_v13 = vld [vmem:[#allocation1] sm:$0xff]  ;;  %2242 = vadd.xlane.f32.xlu2 %v2241_v12 }
 0x5e1   : > { %2792 = vst [vmem:[#allocation1] ss:$9 sm:$0xff] %v2321_v48  ;;  %2946 = vperm.xlu1 %3409, %v2791_v13   ;;  %v2899_v13 = vpop.permute.xlu1 %2898 }
 0x5e2   : > { %2793 = vst [vmem:[#allocation1 + $0x1] ss:$9 sm:$0xff] %v2517_v3  ;;  %v5733_v3 = vadd.s32 4294967256, %v4022_v51 }
 0x5e3   : > { %2794 = vst [vmem:[#allocation1 + $0x2] ss:$9 sm:$0xff] %v2518_v50 }
 0x5e4   : > { %2795 = vst [vmem:[#allocation1 + $0x3] ss:$9 sm:$0xff] %v2519_v54  ;;  %v5738_v54 = vadd.s32 4294967248, %v4022_v51 }
 0x5e5   : > { %2796 = vst [vmem:[#allocation1 + $0x4] ss:$9 sm:$0xff] %v2520_v8  ;;  %v2902_v8 = vpop.permute.xlu0 %2901 }
 0x5e6   : > { %2797 = vst [vmem:[#allocation1 + $0x5] ss:$9 sm:$0xff] %v2521_v20  ;;  %v2996_v20 = vperm.slane %v2899_v13, %v5733_v3  ;;  %v2554_v13 = vrot.slane %v2326_v21, 3 }
 0x5e7   : > { %2798 = vst [vmem:[#allocation1 + $0x6] ss:$9 sm:$0xff] %v2522_v2 }
 0x5e8   : > { %2799 = vst [vmem:[#allocation1 + $0x7] ss:$9 sm:$0xff] %v2523_v4 }
 0x5e9   : > { %v2908_v17 = vpop.permute.xlu1 %2907 }
 0x5ef   : > { %v2800_v18 = vld [vmem:[#allocation1] sm:$0xff] }
 0x5f0   : > { %2801 = vst [vmem:[#allocation1] ss:$9 sm:$0xff] %v2322_v49  ;;  %2949 = vperm.xlu0 %3410, %v2800_v18  }
 0x5f1   : > { %2802 = vst [vmem:[#allocation1 + $0x1] ss:$9 sm:$0xff] %v2524_v59  ;;  %v3000_v59 = vperm.slane %v2902_v8, %v5738_v54  ;;  %v2556_v8 = vrot.slane %v2326_v21, 5 }
 0x5f2   : > { %2803 = vst [vmem:[#allocation1 + $0x2] ss:$9 sm:$0xff] %v2525_v44 }
 0x5f3   : > { %2804 = vst [vmem:[#allocation1 + $0x3] ss:$9 sm:$0xff] %v2526_v27 }
 0x5f4   : > { %2805 = vst [vmem:[#allocation1 + $0x4] ss:$9 sm:$0xff] %v2527_v58 }
 0x5f5   : > { %2806 = vst [vmem:[#allocation1 + $0x5] ss:$9 sm:$0xff] %v2528_v6 }
 0x5f6   : > { %2807 = vst [vmem:[#allocation1 + $0x6] ss:$9 sm:$0xff] %v2529_v11 }
 0x5f7   : > { %2808 = vst [vmem:[#allocation1 + $0x7] ss:$9 sm:$0xff] %v2530_v16 }
 0x5f8   : > { %2904 = vperm.xlu2 %3408, %v5590_v24   ;;  %v5712_v24 = vadd.s32 4294967280, %v4022_v51 }
 0x5fa   : > { %v2984_v53 = vperm.slane %v2890_v29, %v5712_v24  ;;  %v2540_v29 = vrot.slane %v2324_v39, 3 }
 0x5fe   : > { %v2809_v15 = vld [vmem:[#allocation1] sm:$0xff] }
 0x600   : > { %2913 = vperm.xlu2 %3408, %v5629_v10  }
 0x608   : > { %2922 = vperm.xlu2 %3408, %v5649_v9  }
 0x60a   : > { %v5704_v34 = vpop.xlane.xlu2 %2263 }
 0x60b   : > { %v2296_v5 = vadd.f32 %v5704_v34, %v5285_v0 }
 0x60d   : > { %v2330_v32 = vadd.f32 %v5419_v1, %v2296_v5 }
 0x60f   : > { %v2586_v0 = vrot.slane %v2330_v32, 7 }
 0x610   : > { %2934 = vperm.xlu2 %3408, %v5663_v61   ;;  %v5724_v61 = vadd.s32 4294967264, %v4022_v51 }
 0x612   : > { %v2884_v10 = vpop.permute.xlu2 %2883 }
 0x613   : > { %v2978_v9 = vperm.slane %v2884_v10, %v4022_v51  ;;  %v2541_v10 = vrot.slane %v2324_v39, 4 }
 0x615   : > { %v2982_v33 = vsel %vm2981_vm8, %v2980_v36, %v2978_v9  ;;  %v2542_v36 = vrot.slane %v2324_v39, 5  ;;  %v2543_v9 = vrot.slane %v2324_v39, 6 }
 0x616   : > { %v2986_v47 = vsel %vm2985_vm12, %v2984_v53, %v2982_v33  ;;  %v2544_v53 = vrot.slane %v2324_v39, 7  ;;  %v2325_v33 = vadd.f32 %v5419_v1, %v2291_v14  ;;  %v2577_v14 = vrot.slane %v2329_v45, 5 }
 0x617   : > { %v2990_v62 = vsel %vm2989_vm13, %v2988_v41, %v2986_v47 }
 0x618   : > { %2940 = vperm.xlu2 %3408, %v5675_v28   ;;  %v2545_v47 = vrot.slane %v2325_v33, 1  ;;  %v2546_v41 = vrot.slane %v2325_v33, 2 }
 0x61a   : > { %v2896_v22 = vpop.permute.xlu2 %2895 }
 0x61b   : > { %v2992_v56 = vperm.slane %v2896_v22, %v5724_v61  ;;  %v2547_v22 = vrot.slane %v2325_v33, 3 }
 0x61d   : > { %v2994_v46 = vsel %vm2993_vm1, %v2992_v56, %v2990_v62  ;;  %v2548_v56 = vrot.slane %v2325_v33, 4  ;;  %v2549_v62 = vrot.slane %v2325_v33, 5 }
 0x61e   : > { %v2998_v49 = vsel %vm2997_vm14, %v2996_v20, %v2994_v46  ;;  %v2550_v46 = vrot.slane %v2325_v33, 6  ;;  %v2557_v20 = vrot.slane %v2326_v21, 6 }
 0x61f   : > { %v3002_v11 = vsel %vm3001_vm5, %v3000_v59, %v2998_v49  ;;  %v2561_v49 = vrot.slane %v2327_v7, 3  ;;  %v2563_v59 = vrot.slane %v2327_v7, 5 }
 0x620   : > { %2943 = vperm.xlu2 %3408, %v5679_v55  }
 0x628   : > { %2952 = vperm.xlu2 %3408, %v2809_v15   ;;  %v2551_v15 = vrot.slane %v2325_v33, 7 }
 0x653   : > { %v2243_v48 = vpop.xlane.xlu2 %2242 }
 0x654   : > { %v2289_v28 = vadd.f32 %v2243_v48, %v5210_v23  ;;  %v5743_v23 = vadd.s32 4294967240, %v4022_v51 }
 0x656   : > { %v2323_v50 = vadd.f32 %v5419_v1, %v2289_v28  ;;  %v2553_v28 = vrot.slane %v2326_v21, 2 }
 0x658   : > { %v2531_v55 = vrot.slane %v2323_v50, 1  ;;  %v2532_v2 = vrot.slane %v2323_v50, 2  ;;  %v2533_v4 = vrot.slane %v2323_v50, 3  ;;  %2810 = vst [vmem:[#allocation1] ss:$9 sm:$0xff] %v2323_v50  ;;  %v2534_v40 = vrot.slane %v2323_v50, 4 }
 0x659   : > { %v2535_v18 = vrot.slane %v2323_v50, 5  ;;  %v2536_v44 = vrot.slane %v2323_v50, 6  ;;  %v2537_v58 = vrot.slane %v2323_v50, 7  ;;  %v2555_v50 = vrot.slane %v2326_v21, 4 }
 0x65a   : > { %2811 = vst [vmem:[#allocation1 + $0x1] ss:$9 sm:$0xff] %v2531_v55  ;;  %v2558_v55 = vrot.slane %v2326_v21, 7 }
 0x65b   : > { %2812 = vst [vmem:[#allocation1 + $0x2] ss:$9 sm:$0xff] %v2532_v2  ;;  %v2905_v27 = vpop.permute.xlu2 %2904  ;;  %v2559_v2 = vrot.slane %v2327_v7, 1 }
 0x65c   : > { %2813 = vst [vmem:[#allocation1 + $0x3] ss:$9 sm:$0xff] %v2533_v4  ;;  %v3004_v6 = vperm.slane %v2905_v27, %v5743_v23  ;;  %v2565_v27 = vrot.slane %v2327_v7, 7 }
 0x65d   : > { %2814 = vst [vmem:[#allocation1 + $0x4] ss:$9 sm:$0xff] %v2534_v40  ;;  %v2560_v40 = vrot.slane %v2327_v7, 2 }
 0x65e   : > { %2815 = vst [vmem:[#allocation1 + $0x5] ss:$9 sm:$0xff] %v2535_v18  ;;  %v5749_v16 = vsel %vm3005_vm11, %v3004_v6, %v3002_v11  ;;  %v2562_v18 = vrot.slane %v2327_v7, 4  ;;  %v2567_v11 = vrot.slane %v2328_v60, 2 }
 0x65f   : > { %2816 = vst [vmem:[#allocation1 + $0x6] ss:$9 sm:$0xff] %v2536_v44  ;;  %v2564_v44 = vrot.slane %v2327_v7, 6 }
 0x660   : > { %2817 = vst [vmem:[#allocation1 + $0x7] ss:$9 sm:$0xff] %v2537_v58  ;;  %v2566_v58 = vrot.slane %v2328_v60, 1 }
 0x667   : > { %v2818_v12 = vld [vmem:[#allocation1] sm:$0xff] }
 0x668   : > { %2819 = vst [vmem:[#allocation1] ss:$9 sm:$0xff] %v2324_v39  ;;  %2955 = vperm.xlu1 %3409, %v2818_v12   ;;  %v2569_v39 = vrot.slane %v2328_v60, 4  ;;  %v2571_v12 = vrot.slane %v2328_v60, 6 }
 0x669   : > { %2820 = vst [vmem:[#allocation1 + $0x1] ss:$9 sm:$0xff] %v2538_v52  ;;  %v2570_v52 = vrot.slane %v2328_v60, 5 }
 0x66a   : > { %2821 = vst [vmem:[#allocation1 + $0x2] ss:$9 sm:$0xff] %v2539_v43  ;;  %v2572_v43 = vrot.slane %v2328_v60, 7 }
 0x66b   : > { %2822 = vst [vmem:[#allocation1 + $0x3] ss:$9 sm:$0xff] %v2540_v29  ;;  %v2573_v29 = vrot.slane %v2329_v45, 1 }
 0x66c   : > { %2823 = vst [vmem:[#allocation1 + $0x4] ss:$9 sm:$0xff] %v2541_v10 }
 0x66d   : > { %2824 = vst [vmem:[#allocation1 + $0x5] ss:$9 sm:$0xff] %v2542_v36  ;;  %v2574_v36 = vrot.slane %v2329_v45, 2 }
 0x66e   : > { %2825 = vst [vmem:[#allocation1 + $0x6] ss:$9 sm:$0xff] %v2543_v9  ;;  %v2575_v9 = vrot.slane %v2329_v45, 3 }
 0x66f   : > { %2826 = vst [vmem:[#allocation1 + $0x7] ss:$9 sm:$0xff] %v2544_v53  ;;  %v2576_v53 = vrot.slane %v2329_v45, 4 }
 0x676   : > { %v2827_v37 = vld [vmem:[#allocation1] sm:$0xff] }
 0x677   : > { %2828 = vst [vmem:[#allocation1] ss:$9 sm:$0xff] %v2325_v33  ;;  %2958 = vperm.xlu0 %3410, %v2827_v37   ;;  %v2578_v33 = vrot.slane %v2329_v45, 6  ;;  %v2580_v37 = vrot.slane %v2330_v32, 1 }
 0x678   : > { %2829 = vst [vmem:[#allocation1 + $0x1] ss:$9 sm:$0xff] %v2545_v47  ;;  %v2579_v47 = vrot.slane %v2329_v45, 7 }
 0x679   : > { %2830 = vst [vmem:[#allocation1 + $0x2] ss:$9 sm:$0xff] %v2546_v41 }
 0x67a   : > { %2831 = vst [vmem:[#allocation1 + $0x3] ss:$9 sm:$0xff] %v2547_v22  ;;  %v2581_v22 = vrot.slane %v2330_v32, 2 }
 0x67b   : > { %2832 = vst [vmem:[#allocation1 + $0x4] ss:$9 sm:$0xff] %v2548_v56  ;;  %v2582_v56 = vrot.slane %v2330_v32, 3 }
 0x67c   : > { %2833 = vst [vmem:[#allocation1 + $0x5] ss:$9 sm:$0xff] %v2549_v62  ;;  %v2583_v62 = vrot.slane %v2330_v32, 4 }
 0x67d   : > { %2834 = vst [vmem:[#allocation1 + $0x6] ss:$9 sm:$0xff] %v2550_v46  ;;  %v2584_v46 = vrot.slane %v2330_v32, 5 }
 0x67e   : > { %2835 = vst [vmem:[#allocation1 + $0x7] ss:$9 sm:$0xff] %v2551_v15  ;;  %v2585_v15 = vrot.slane %v2330_v32, 6 }
 0x685   : > { %v2836_v48 = vld [vmem:[#allocation1] sm:$0xff] }
 0x686   : > { %2961 = vperm.xlu2 %3408, %v2836_v48   ;;  %2837 = vst [vmem:[#allocation1] ss:$9 sm:$0xff] %v2326_v21  ;;  %v2911_v48 = vpop.permute.xlu0 %2910 }
 0x687   : > { %2838 = vst [vmem:[#allocation1 + $0x1] ss:$9 sm:$0xff] %v2552_v30  ;;  %v2917_v30 = vpop.permute.xlu1 %2916 }
 0x688   : > { %2839 = vst [vmem:[#allocation1 + $0x2] ss:$9 sm:$0xff] %v2553_v28 }
 0x689   : > { %2840 = vst [vmem:[#allocation1 + $0x3] ss:$9 sm:$0xff] %v2554_v13 }
 0x68a   : > { %2841 = vst [vmem:[#allocation1 + $0x4] ss:$9 sm:$0xff] %v2555_v50 }
 0x68b   : > { %2842 = vst [vmem:[#allocation1 + $0x5] ss:$9 sm:$0xff] %v2556_v8 }
 0x68c   : > { %2843 = vst [vmem:[#allocation1 + $0x6] ss:$9 sm:$0xff] %v2557_v20 }
 0x68d   : > { %2844 = vst [vmem:[#allocation1 + $0x7] ss:$9 sm:$0xff] %v2558_v55 }
 0x68e   : > { %v5775_v50 = vpop.permute.xlu0 %2919 }
 0x68f   : > { %v2932_v13 = vpop.permute.xlu1 %2931 }
 0x694   : > { %v2845_v4 = vld [vmem:[#allocation1] sm:$0xff] }
 0x695   : > { %2964 = vperm.xlu1 %3409, %v2845_v4   ;;  %2846 = vst [vmem:[#allocation1] ss:$9 sm:$0xff] %v2327_v7  ;;  %v3039_v4 = vperm.slane %v2932_v13, %v4022_v51 }
 0x696   : > { %2847 = vst [vmem:[#allocation1 + $0x1] ss:$9 sm:$0xff] %v2559_v2  ;;  %v2938_v55 = vpop.permute.xlu0 %2937 }
 0x697   : > { %2848 = vst [vmem:[#allocation1 + $0x2] ss:$9 sm:$0xff] %v2560_v40  ;;  %v2947_v8 = vpop.permute.xlu1 %2946 }
 0x698   : > { %2849 = vst [vmem:[#allocation1 + $0x3] ss:$9 sm:$0xff] %v2561_v49 }
 0x699   : > { %2850 = vst [vmem:[#allocation1 + $0x4] ss:$9 sm:$0xff] %v2562_v18 }
 0x69a   : > { %2851 = vst [vmem:[#allocation1 + $0x5] ss:$9 sm:$0xff] %v2563_v59  ;;  %v3042_v59 = vperm.slane %v2938_v55, %v5712_v24 }
 0x69b   : > { %2852 = vst [vmem:[#allocation1 + $0x6] ss:$9 sm:$0xff] %v2564_v44 }
 0x69c   : > { %2853 = vst [vmem:[#allocation1 + $0x7] ss:$9 sm:$0xff] %v2565_v27 }
 0x69e   : > { %v2950_v2 = vpop.permute.xlu0 %2949 }
 0x6a3   : > { %v2854_v6 = vld [vmem:[#allocation1] sm:$0xff] }
 0x6a4   : > { %2967 = vperm.xlu0 %3410, %v2854_v6   ;;  %2855 = vst [vmem:[#allocation1] ss:$9 sm:$0xff] %v2328_v60 }
 0x6a5   : > { %2856 = vst [vmem:[#allocation1 + $0x1] ss:$9 sm:$0xff] %v2566_v58 }
 0x6a6   : > { %2857 = vst [vmem:[#allocation1 + $0x2] ss:$9 sm:$0xff] %v2567_v11 }
 0x6a7   : > { %2858 = vst [vmem:[#allocation1 + $0x3] ss:$9 sm:$0xff] %v2568_v26  ;;  %v3011_v26 = vadd.s32 4294967224, %v4022_v51 }
 0x6a8   : > { %2859 = vst [vmem:[#allocation1 + $0x4] ss:$9 sm:$0xff] %v2569_v39  ;;  %v3008_v39 = vperm.slane %v2908_v17, %v3007_v63 }
 0x6a9   : > { %2860 = vst [vmem:[#allocation1 + $0x5] ss:$9 sm:$0xff] %v2570_v52 }
 0x6aa   : > { %2861 = vst [vmem:[#allocation1 + $0x6] ss:$9 sm:$0xff] %v2571_v12 }
 0x6ab   : > { %2862 = vst [vmem:[#allocation1 + $0x7] ss:$9 sm:$0xff] %v2572_v43  ;;  %v3010_v43 = vsel %vm3009_vm4, %v3008_v39, %v5749_v16  ;;  %v3023_v16 = vadd.s32 4294967200, %v4022_v51 }
 0x6b2   : > { %v2863_v10 = vld [vmem:[#allocation1] sm:$0xff] }
 0x6b3   : > { %2970 = vperm.xlu2 %3408, %v2863_v10   ;;  %2864 = vst [vmem:[#allocation1] ss:$9 sm:$0xff] %v2329_v45  ;;  %v3012_v10 = vperm.slane %v2911_v48, %v3011_v26 }
 0x6b4   : > { %2865 = vst [vmem:[#allocation1 + $0x1] ss:$9 sm:$0xff] %v2573_v29 }
 0x6b5   : > { %2866 = vst [vmem:[#allocation1 + $0x2] ss:$9 sm:$0xff] %v2574_v36  ;;  %v3019_v36 = vadd.s32 4294967208, %v4022_v51 }
 0x6b6   : > { %2867 = vst [vmem:[#allocation1 + $0x3] ss:$9 sm:$0xff] %v2575_v9 }
 0x6b7   : > { %2868 = vst [vmem:[#allocation1 + $0x4] ss:$9 sm:$0xff] %v2576_v53  ;;  %v3027_v53 = vadd.s32 4294967192, %v4022_v51  ;;  %v3020_v5 = vperm.slane %v2917_v30, %v3019_v36 }
 0x6b8   : > { %2869 = vst [vmem:[#allocation1 + $0x5] ss:$9 sm:$0xff] %v2577_v14 }
 0x6b9   : > { %2870 = vst [vmem:[#allocation1 + $0x6] ss:$9 sm:$0xff] %v2578_v33 }
 0x6ba   : > { %2871 = vst [vmem:[#allocation1 + $0x7] ss:$9 sm:$0xff] %v2579_v47 }
 0x6bb   : > { %2928 = vperm.xlu2 %3408, %v5657_v31   ;;  %v2914_v31 = vpop.permute.xlu2 %2913 }
 0x6c1   : > { %v2872_v41 = vld [vmem:[#allocation1] sm:$0xff] }
 0x6c2   : > { %2973 = vperm.xlu1 %3409, %v2872_v41   ;;  %2873 = vst [vmem:[#allocation1] ss:$9 sm:$0xff] %v2330_v32 }
 0x6c3   : > { %2874 = vst [vmem:[#allocation1 + $0x1] ss:$9 sm:$0xff] %v2580_v37  ;;  %v5773_v34 = vpop.permute.xlu2 %2922 }
 0x6c4   : > { %2875 = vst [vmem:[#allocation1 + $0x2] ss:$9 sm:$0xff] %v2581_v22 }
 0x6c5   : > { %2876 = vst [vmem:[#allocation1 + $0x3] ss:$9 sm:$0xff] %v2582_v56 }
 0x6c6   : > { %2877 = vst [vmem:[#allocation1 + $0x4] ss:$9 sm:$0xff] %v2583_v62  ;;  %v3031_v62 = vadd.s32 4294967184, %v4022_v51 }
 0x6c7   : > { %2878 = vst [vmem:[#allocation1 + $0x5] ss:$9 sm:$0xff] %v2584_v46 }
 0x6c8   : > { %2879 = vst [vmem:[#allocation1 + $0x6] ss:$9 sm:$0xff] %v2585_v15  ;;  %v3028_v15 = vperm.slane %v5773_v34, %v3027_v53 }
 0x6c9   : > { %2880 = vst [vmem:[#allocation1 + $0x7] ss:$9 sm:$0xff] %v2586_v0  ;;  %v3024_v0 = vperm.slane %v5775_v50, %v3023_v16 }
 0x6ca   : > { %2925 = vperm.xlu1 %3409, %v5653_v57  }
 0x6cb   : > { %v2935_v21 = vpop.permute.xlu2 %2934 }
 0x6cc   : > { %v3040_v57 = vperm.slane %v2935_v21, %v5707_v42  ;;  %v3015_v42 = vadd.s32 4294967216, %v4022_v51  ;;  %v3035_v21 = vadd.s32 4294967176, %v4022_v51 }
 0x6ce   : > { %v3041_v49 = vsel %vm2981_vm8, %v3040_v57, %v3039_v4  ;;  %v3016_v38 = vperm.slane %v2914_v31, %v3015_v42  ;;  %vm3076_vm8 = vcmp.lt.s32.totalorder %v314_v25, 256 }
 0x6cf   : > { %v3043_v60 = vsel %vm2985_vm12, %v3042_v59, %v3041_v49 }
 0x6d0   : > { %v2881_v1 = vld [vmem:[#allocation1] sm:$0xff] }
 0x6d1   : > { %2976 = vperm.xlu0 %3410, %v2881_v1  }
 0x6d3   : > { %v2941_v28 = vpop.permute.xlu2 %2940 }
 0x6d4   : > { %v3044_v18 = vperm.slane %v2941_v28, %v5720_v35  ;;  %v3048_v35 = vperm.slane %v2947_v8, %v5733_v3 }
 0x6d6   : > { %v3045_v58 = vsel %vm2989_vm13, %v3044_v18, %v3043_v60 }
 0x6da   : > { %v2956_v19 = vpop.permute.xlu1 %2955 }
 0x6db   : > { %v2944_v20 = vpop.permute.xlu2 %2943  ;;  %v3054_v45 = vperm.slane %v2956_v19, %v3007_v63 }
 0x6dc   : > { %v3046_v44 = vperm.slane %v2944_v20, %v5724_v61  ;;  %v3050_v61 = vperm.slane %v2950_v2, %v5738_v54  ;;  %v3014_v54 = vsel %vm3013_vm9, %v3012_v10, %v3010_v43 }
 0x6dd   : > { %v3018_v33 = vsel %vm3017_vm2, %v3016_v38, %v3014_v54 }
 0x6de   : > { %v3047_v11 = vsel %vm2993_vm1, %v3046_v44, %v3045_v58  ;;  %v3022_v46 = vsel %vm3021_vm10, %v3020_v5, %v3018_v33 }
 0x6df   : > { %v3049_v52 = vsel %vm2997_vm14, %v3048_v35, %v3047_v11  ;;  %v3026_v30 = vsel %vm3025_vm6, %v3024_v0, %v3022_v46 }
 0x6e0   : > { %v3051_v9 = vsel %vm3001_vm5, %v3050_v61, %v3049_v52  ;;  %v3030_v34 = vsel %vm3029_vm0, %v3028_v15, %v3026_v30 }
 0x6e3   : > { %v2953_v7 = vpop.permute.xlu2 %2952 }
 0x6e4   : > { %v3052_v12 = vperm.slane %v2953_v7, %v5743_v23 }
 0x6e6   : > { %v3053_v23 = vsel %vm3005_vm11, %v3052_v12, %v3051_v9 }
 0x6e7   : > { %v3055_v47 = vsel %vm3009_vm4, %v3054_v45, %v3053_v23 }
 0x6e9   : > { %v2959_v6 = vpop.permute.xlu0 %2958 }
 0x6ea   : > { %v3056_v3 = vperm.slane %v2959_v6, %v3011_v26 }
 0x6eb   : > { %v2962_v27 = vpop.permute.xlu2 %2961 }
 0x6ec   : > { %v3057_v32 = vsel %vm3013_vm9, %v3056_v3, %v3055_v47  ;;  %v3058_v22 = vperm.slane %v2962_v27, %v3015_v42 }
 0x6ee   : > { %v3059_v1 = vsel %vm3017_vm2, %v3058_v22, %v3057_v32 }
 0x707   : > { %v2965_v40 = vpop.permute.xlu1 %2964 }
 0x708   : > { %v3060_v37 = vperm.slane %v2965_v40, %v3019_v36 }
 0x70a   : > { %v3061_v17 = vsel %vm3021_vm10, %v3060_v37, %v3059_v1 }
 0x70d   : > { %v2971_v29 = vpop.permute.xlu2 %2970 }
 0x70e   : > { %v3064_v50 = vperm.slane %v2971_v29, %v3027_v53 }
 0x715   : > { %v2929_v48 = vpop.permute.xlu2 %2928 }
 0x716   : > { %v2968_v14 = vpop.permute.xlu0 %2967  ;;  %v3036_v55 = vperm.slane %v2929_v48, %v3035_v21 }
 0x717   : > { %v3062_v56 = vperm.slane %v2968_v14, %v3023_v16 }
 0x719   : > { %v3063_v28 = vsel %vm3025_vm6, %v3062_v56, %v3061_v17 }
 0x71a   : > { %v3065_v51 = vsel %vm3029_vm0, %v3064_v50, %v3063_v28 }
 0x734   : > { %v2974_v24 = vpop.permute.xlu1 %2973 }
 0x735   : > { %v3066_v13 = vperm.slane %v2974_v24, %v3031_v62 }
 0x737   : > { %v3067_v7 = vsel %vm3033_vm3, %v3066_v13, %v3065_v51 }
 0x73c   : > { %v2926_v41 = vpop.permute.xlu1 %2925 }
 0x73d   : > { %v3032_v31 = vperm.slane %v2926_v41, %v3031_v62 }
 0x73f   : > { %v3034_v8 = vsel %vm3033_vm3, %v3032_v31, %v3030_v34 }
 0x740   : > { %v3038_v2 = vsel %vm3037_vm7, %v3036_v55, %v3034_v8 }
 0x743   : > { %v2977_v20 = vpop.permute.xlu0 %2976 }
 0x744   : > { %v3068_v19 = vperm.slane %v2977_v20, %v3035_v21 }
 0x746   : > { %v3069_v57 = vsel %vm3037_vm7, %v3068_v19, %v3067_v7 }
 0x747   : > { %v3070_v4 = vrot.slane %v3069_v57, 7 }
 0x749   : > { %v3072_v40 = vsel %vm3071_vm15, %v3038_v2, %v3070_v4 }
 0x74a   : > { %3078 = vst.msk [vmem:[%s273_s6] sm:$0x3] %vm3076_vm8, %v3072_v40 }
 0x74b   : > { %3443 = shalt.err (!%p3440_p3)
}
 0x74c   : > { %3325 = dma.vmem_to_hbm [thread:$0]  (%p3570_p5), %s3093_s9, 32, %s3095_s10, %s3080_s14  }
 0x74d PF: > { %p3331_p4 = scmp.ge.s32.totalorder %s3478_s29, 2  ;;  %s3106_s21 = sand.u32 1, %s3466_s26  }
 0x74e   : > { %s3107_s23 = scalar_lea.sflag [#allocation4], %s3106_s21 }
 0x74f   : > { %p3328_p7 = pnand %p3331_p4, %p3574_p6 }
 0x751   : > { %p3329_p8 = pneg %p3328_p7 }
 0x753   : > { %3461 = dma.done.wait (%p3329_p8), %s3107_s23, 32  }
 0x754   : > { %3463 = vsyncadd (%p3329_p8), %s3107_s23, 4294967264  ;;  %p18_p9 = scmp.ge.s32.totalorder %s3557_s8, 10   ;;  %s6158_s26 = smov %s3470_s27 }
 0x755   : > { %s6159_s27 = smov %s3474_s28  ;;  %s6160_s28 = smov %s3568_s11 }
 0x756   : > { %s6161_s29 = smov %s3557_s8  ;;  %20 = sbr.rel (!%p18_p9) target bundleno = 5 (0x5), region = 90 }
 0x75b   :  { %3113 = vsyncpa [#allocation4], 1 }
 0x75c   :  { %3115 = vsyncpa [#allocation4 + $0x1], 1 }

</bundles_post_ra>
